<compile_context>
chip_gen: v5e
topology: v5e:2x2
jax: 0.10.0
libtpu: 0.0.40
codegen_flags: <defaults>
</compile_context>

<pallas_src>
import functools

import jax
import jax.numpy as jnp
from jax.experimental import pallas as pl
from jax.experimental.pallas import tpu as pltpu

# ---------------- config (small synthetic shapes) ----------------
B = 2             # batch
S = 8             # BERT sequence length
D = 32            # config.last_state_dim (BERT hidden size)
NUM_HEADS = 2
HEAD_DIM = D // NUM_HEADS
FFN = 64
NUM_LAYERS = 2    # synthetic BERT encoder depth
VOCAB = 64
MAX_POS = 16
NUM_TAGS = 5      # len(config.ner_classes_list)
LSTM_H = D // 2   # BiLSTM hidden per direction (16)
LSTM_LAYERS = 2
T_PAD = 6         # max #word-start tokens in the batch (pad_sequence target length)
LN_EPS = 1e-12
TAGS_PAD = 128    # lane-dense classifier output width; sliced back to NUM_TAGS outside


def _full_spec(shape):
    """Full-array block (whole tensor VMEM-resident) for a grid=(1,) kernel."""
    nd = len(shape)
    return pl.BlockSpec(shape, lambda i, _nd=nd: (0,) * _nd)


# ---------------- kernel 1: fused BERT encoder ----------------
def _encoder_kernel(x_ref, mask_ref, embg_ref, embb_ref,
                    wqkv_ref, bqkv_ref, wo_ref, bo_ref,
                    ln1g_ref, ln1b_ref, w1_ref, b1_ref, w2_ref, b2_ref,
                    ln2g_ref, ln2b_ref, o_ref,
                    *, num_layers, num_heads, seq, batch, head_dim):
    def ln(v, g, b):
        mu = jnp.mean(v, axis=-1, keepdims=True)
        var = jnp.mean((v - mu) ** 2, axis=-1, keepdims=True)
        return (v - mu) * jax.lax.rsqrt(var + LN_EPS) * g + b

    def mm(a, w):  # bf16 MXU operands, f32 accumulation
        return jnp.dot(a.astype(jnp.bfloat16), w.astype(jnp.bfloat16),
                       preferred_element_type=jnp.float32)

    d = x_ref.shape[1]
    scale = 1.0 / (head_dim ** 0.5)

    x = ln(x_ref[...], embg_ref[...], embb_ref[...])          # embeddings LayerNorm, (B*S, D)
    bias = (1.0 - mask_ref[...]) * -1e9                        # (B, S) additive key-mask bias

    for l in range(num_layers):                                # static unroll over layers
        qkv = mm(x, wqkv_ref[l]) + bqkv_ref[l]                 # (B*S, 3D) fused Q|K|V
        ctx_rows = []
        for b in range(batch):                                 # all (b, h) pairs in one kernel
            rows = slice(b * seq, (b + 1) * seq)
            bias_b = bias[b:b + 1, :]                          # (1, S), broadcasts over queries
            heads = []
            for h in range(num_heads):
                q = qkv[rows, h * head_dim:(h + 1) * head_dim]
                k = qkv[rows, d + h * head_dim:d + (h + 1) * head_dim]
                v = qkv[rows, 2 * d + h * head_dim:2 * d + (h + 1) * head_dim]
                s = mm(q, k.T) * scale + bias_b                # (S, S), f32
                s = s - jnp.max(s, axis=-1, keepdims=True)
                p = jnp.exp(s)
                p = p * pl.reciprocal(jnp.sum(p, axis=-1, keepdims=True), approx=True)
                heads.append(mm(p, v))                         # (S, Dh)
            ctx_rows.append(jnp.concatenate(heads, axis=-1))   # (S, D)
        ctx = jnp.concatenate(ctx_rows, axis=0)                # (B*S, D)

        x = ln(x + mm(ctx, wo_ref[l]) + bo_ref[l], ln1g_ref[l], ln1b_ref[l])
        hdn = jax.nn.gelu(mm(x, w1_ref[l]) + b1_ref[l], approximate=True)
        x = ln(x + mm(hdn, w2_ref[l]) + b2_ref[l], ln2g_ref[l], ln2b_ref[l])

    o_ref[...] = x


def pallas_bert_encoder(x_emb_2d, attn_mask_f32, pck):
    kern = functools.partial(_encoder_kernel, num_layers=NUM_LAYERS,
                             num_heads=NUM_HEADS, seq=S, batch=B, head_dim=HEAD_DIM)
    args = [x_emb_2d, attn_mask_f32, pck["emb_g"], pck["emb_b"],
            pck["wqkv"], pck["bqkv"], pck["wo"], pck["bo"],
            pck["ln1g"], pck["ln1b"], pck["w1"], pck["b1"],
            pck["w2"], pck["b2"], pck["ln2g"], pck["ln2b"]]
    out = pl.pallas_call(
        kern,
        out_shape=jax.ShapeDtypeStruct((B * S, D), jnp.float32),
        grid=(1,),
        in_specs=[_full_spec(a.shape) for a in args],
        out_specs=pl.BlockSpec((B * S, D), lambda i: (0, 0)),
        compiler_params=pltpu.CompilerParams(dimension_semantics=("arbitrary",)),
    )(*args)
    return out.reshape(B, S, D)


# ---------------- kernel 2: fused bidirectional LSTM (2 layers) + classifier ----------------
def _bilstm_cls_kernel(x_ref, wih_ref, whh_ref, b_ref, wc_ref, bc_ref, o_ref,
                       *, t_len, batch, hid, lstm_layers):
    h2 = 2 * hid   # fused state width: lanes [0:hid] = forward dir, [hid:2*hid] = backward dir

    def mm(a, w_bf16):
        return jnp.dot(a.astype(jnp.bfloat16), w_bf16, preferred_element_type=jnp.float32)

    xs = [x_ref[t] for t in range(t_len)]              # per-step (B, Din) f32, static loads
    for l in range(lstm_layers):                       # static unroll over LSTM layers
        wih = wih_ref[l].astype(jnp.bfloat16)          # (2*Din, 8*hid) block-diag, gate-grouped
        whh = whh_ref[l].astype(jnp.bfloat16)          # (2*hid, 8*hid)
        bias = b_ref[l]                                # (1, 8*hid) f32
        h = jnp.zeros((batch, h2), jnp.float32)
        c = jnp.zeros((batch, h2), jnp.float32)
        out_f = [None] * t_len
        out_b = [None] * t_len
        for t in range(t_len):                         # static unroll: fwd reads t, bwd reads T-1-t
            x_cat = jnp.concatenate([xs[t], xs[t_len - 1 - t]], axis=1)    # (B, 2*Din)
            gates = mm(x_cat, wih) + mm(h, whh) + bias                     # (B, 8*hid) f32
            i = jax.nn.sigmoid(gates[:, 0 * h2:1 * h2])                    # both dirs at once
            f = jax.nn.sigmoid(gates[:, 1 * h2:2 * h2])
            g = jnp.tanh(gates[:, 2 * h2:3 * h2])
            o = jax.nn.sigmoid(gates[:, 3 * h2:4 * h2])
            c = f * c + i * g
            h = o * jnp.tanh(c)
            out_f[t] = h[:, 0:hid]
            out_b[t_len - 1 - t] = h[:, hid:h2]
        xs = [jnp.concatenate([out_f[t], out_b[t]], axis=1) for t in range(t_len)]

    y = jnp.concatenate(xs, axis=0)                    # (T*B, 2*hid), time-major
    wc = wc_ref[...].astype(jnp.bfloat16)              # (2*hid, TAGS_PAD)
    o_ref[...] = mm(y, wc) + bc_ref[...]               # lane-dense (T*B, 128) store


def pallas_bilstm_classifier(padded_btd, pck):
    x_tbd = jnp.transpose(padded_btd, (1, 0, 2))       # time-major (T, B, D)
    t_len, bx, din = x_tbd.shape
    kern = functools.partial(_bilstm_cls_kernel, t_len=t_len, batch=bx,
                             hid=LSTM_H, lstm_layers=LSTM_LAYERS)
    args = [x_tbd, pck["lstm_wih"], pck["lstm_whh"], pck["lstm_b"],
            pck["wc_pad"], pck["bc_pad"]]
    out = pl.pallas_call(
        kern,
        out_shape=jax.ShapeDtypeStruct((t_len * bx, TAGS_PAD), jnp.float32),
        grid=(1,),
        in_specs=[_full_spec(a.shape) for a in args],
        out_specs=pl.BlockSpec((t_len * bx, TAGS_PAD), lambda i: (0, 0)),
        compiler_params=pltpu.CompilerParams(dimension_semantics=("arbitrary",)),
    )(*args)
    logits = out.reshape(t_len, bx, TAGS_PAD).transpose(1, 0, 2)[:, :, :NUM_TAGS]
    return logits


# ---------------- parameter init / packing ----------------
def init_params(key):
    ks = iter(jax.random.split(key, 256))

    def w(shape):
        return jax.random.normal(next(ks), shape, jnp.float32) * 0.02

    def zeros(shape):
        return jnp.zeros(shape, jnp.float32)

    p = {
        "word_emb": w((VOCAB, D)),
        "pos_emb": w((MAX_POS, D)),
        "type_emb": w((2, D)),
        "emb_ln": (jnp.ones((D,), jnp.float32), zeros((D,))),
    }
    layers = []
    for _ in range(NUM_LAYERS):
        layers.append(dict(
            wq=w((D, D)), bq=zeros((D,)),
            wk=w((D, D)), bk=zeros((D,)),
            wv=w((D, D)), bv=zeros((D,)),
            wo=w((D, D)), bo=zeros((D,)),
            attn_ln=(jnp.ones((D,), jnp.float32), zeros((D,))),
            w1=w((D, FFN)), b1=zeros((FFN,)),
            w2=w((FFN, D)), b2=zeros((D,)),
            ffn_ln=(jnp.ones((D,), jnp.float32), zeros((D,))),
        ))
    p["layers"] = layers

    lstm = []
    in_dim = D
    for _ in range(LSTM_LAYERS):
        lstm.append(dict(
            wih_f=w((in_dim, 4 * LSTM_H)), whh_f=w((LSTM_H, 4 * LSTM_H)), b_f=zeros((4 * LSTM_H,)),
            wih_b=w((in_dim, 4 * LSTM_H)), whh_b=w((LSTM_H, 4 * LSTM_H)), b_b=zeros((4 * LSTM_H,)),
        ))
        in_dim = 2 * LSTM_H
    p["lstm"] = lstm

    p["wc"] = w((D, NUM_TAGS))
    p["bc"] = zeros((NUM_TAGS,))
    return p


def _pack_bilstm_layer(wih_f, whh_f, b_f, wih_b, whh_b, b_b, hid):
    """Block-diagonal fwd/bwd weights with gate-grouped columns:
    columns = [i_f|i_b, f_f|f_b, g_f|g_b, o_f|o_b], each group 2*hid wide (fwd then bwd)."""
    din = wih_f.shape[0]
    wih = jnp.zeros((2 * din, 8 * hid), jnp.float32)
    whh = jnp.zeros((2 * hid, 8 * hid), jnp.float32)
    bias = jnp.zeros((8 * hid,), jnp.float32)
    for k in range(4):                                     # PyTorch gate order: i, f, g, o
        cf = slice(2 * hid * k, 2 * hid * k + hid)
        cb = slice(2 * hid * k + hid, 2 * hid * (k + 1))
        src = slice(k * hid, (k + 1) * hid)
        wih = wih.at[0:din, cf].set(wih_f[:, src])
        wih = wih.at[din:2 * din, cb].set(wih_b[:, src])
        whh = whh.at[0:hid, cf].set(whh_f[:, src])
        whh = whh.at[hid:2 * hid, cb].set(whh_b[:, src])
        bias = bias.at[cf].set(b_f[src])
        bias = bias.at[cb].set(b_b[src])
    return wih, whh, bias[None, :]


def pack_params(p):
    layers = p["layers"]

    def stk(fn):
        return jnp.stack([fn(lp) for lp in layers])

    pck = {
        "word_emb": p["word_emb"], "pos_emb": p["pos_emb"], "type_emb": p["type_emb"],
        "emb_g": p["emb_ln"][0][None, :], "emb_b": p["emb_ln"][1][None, :],
        "wqkv": stk(lambda lp: jnp.concatenate([lp["wq"], lp["wk"], lp["wv"]], axis=1)),
        "bqkv": stk(lambda lp: jnp.concatenate([lp["bq"], lp["bk"], lp["bv"]])[None, :]),
        "wo": stk(lambda lp: lp["wo"]),
        "bo": stk(lambda lp: lp["bo"][None, :]),
        "ln1g": stk(lambda lp: lp["attn_ln"][0][None, :]),
        "ln1b": stk(lambda lp: lp["attn_ln"][1][None, :]),
        "w1": stk(lambda lp: lp["w1"]),
        "b1": stk(lambda lp: lp["b1"][None, :]),
        "w2": stk(lambda lp: lp["w2"]),
        "b2": stk(lambda lp: lp["b2"][None, :]),
        "ln2g": stk(lambda lp: lp["ffn_ln"][0][None, :]),
        "ln2b": stk(lambda lp: lp["ffn_ln"][1][None, :]),
    }
    wihs, whhs, bs = [], [], []
    for lp in p["lstm"]:
        wih, whh, b = _pack_bilstm_layer(lp["wih_f"], lp["whh_f"], lp["b_f"],
                                         lp["wih_b"], lp["whh_b"], lp["b_b"], LSTM_H)
        wihs.append(wih)
        whhs.append(whh)
        bs.append(b)
    pck["lstm_wih"] = jnp.stack(wihs)     # (2, 2*D, 8*LSTM_H)
    pck["lstm_whh"] = jnp.stack(whhs)     # (2, 2*LSTM_H, 8*LSTM_H)
    pck["lstm_b"] = jnp.stack(bs)         # (2, 1, 8*LSTM_H)
    pck["wc_pad"] = jnp.zeros((D, TAGS_PAD), jnp.float32).at[:, :NUM_TAGS].set(p["wc"])
    pck["bc_pad"] = jnp.zeros((1, TAGS_PAD), jnp.float32).at[0, :NUM_TAGS].set(p["bc"])
    return pck


# ---------------- plain-JAX glue ----------------
def embed(pck, input_ids):
    pos = jnp.arange(S)
    x = (jnp.take(pck["word_emb"], input_ids, axis=0)
         + pck["pos_emb"][pos][None, :, :]
         + pck["type_emb"][0][None, None, :])
    return x.reshape(B * S, D)


def gather_and_pad(bert_out, sentence_mask):
    """Emulates [layer[starts.nonzero().squeeze(1)]] + pad_sequence(batch_first=True)."""
    dest = jnp.cumsum(sentence_mask, axis=1) - 1
    dest = jnp.where(sentence_mask > 0, dest, T_PAD)      # route unselected tokens to a dump row
    padded = jnp.zeros((B, T_PAD + 1, D), jnp.float32)
    padded = padded.at[jnp.arange(B)[:, None], dest].set(bert_out)
    return padded[:, :T_PAD, :]


def bert_ner_forward(pck, batch_sentence_id, batch_mask, batch_sentence_mask, batch_labels=None):
    x_emb = embed(pck, batch_sentence_id)
    bert_out = pallas_bert_encoder(x_emb, batch_mask.astype(jnp.float32), pck)
    padded = gather_and_pad(bert_out, batch_sentence_mask)
    # nn.Dropout(): identity in eval mode
    logits = pallas_bilstm_classifier(padded, pck)
    # TODO(synk): CRF loss path (batch_labels is not None) intentionally omitted.
    return (logits,)


if __name__ == "__main__":
    key = jax.random.PRNGKey(0)
    pkey, dkey = jax.random.split(key)
    params = init_params(pkey)
    packed = pack_params(params)

    batch_sentence_id = jax.random.randint(dkey, (B, S), 0, VOCAB, dtype=jnp.int32)
    batch_mask = jnp.array([[1, 1, 1, 1, 1, 1, 1, 1],
                            [1, 1, 1, 1, 1, 1, 0, 0]], dtype=jnp.int32)
    # word-start masks; nonzero counts are [6, 4] -> pad_sequence length = 6 = T_PAD
    batch_sentence_mask = jnp.array([[1, 1, 0, 1, 1, 1, 1, 0],
                                     [1, 0, 1, 0, 1, 0, 1, 0]], dtype=jnp.int32)

    fwd = jax.jit(bert_ner_forward)
    (logits,) = fwd(packed, batch_sentence_id, batch_mask, batch_sentence_mask)
    jax.block_until_ready(logits)
    assert logits.shape == (B, T_PAD, NUM_TAGS)
    print("KERNEL_OK")
</pallas_src>

<mosaic_0001>
module attributes {stable_mosaic.version = 11 : i64} {
  func.func @_encoder_kernel(%arg0: i32, %arg1: memref<16x32xf32, #tpu.memory_space<vmem>>, %arg2: memref<2x8xf32, #tpu.memory_space<vmem>>, %arg3: memref<1x32xf32, #tpu.memory_space<vmem>>, %arg4: memref<1x32xf32, #tpu.memory_space<vmem>>, %arg5: memref<2x32x96xf32, #tpu.memory_space<vmem>>, %arg6: memref<2x1x96xf32, #tpu.memory_space<vmem>>, %arg7: memref<2x32x32xf32, #tpu.memory_space<vmem>>, %arg8: memref<2x1x32xf32, #tpu.memory_space<vmem>>, %arg9: memref<2x1x32xf32, #tpu.memory_space<vmem>>, %arg10: memref<2x1x32xf32, #tpu.memory_space<vmem>>, %arg11: memref<2x32x64xf32, #tpu.memory_space<vmem>>, %arg12: memref<2x1x64xf32, #tpu.memory_space<vmem>>, %arg13: memref<2x64x32xf32, #tpu.memory_space<vmem>>, %arg14: memref<2x1x32xf32, #tpu.memory_space<vmem>>, %arg15: memref<2x1x32xf32, #tpu.memory_space<vmem>>, %arg16: memref<2x1x32xf32, #tpu.memory_space<vmem>>, %arg17: memref<16x32xf32, #tpu.memory_space<vmem>>) attributes {dimension_semantics = [#tpu.dimension_semantics<arbitrary>], iteration_bounds = array<i64: 1>, scalar_prefetch = 0 : i64, scratch_operands = 0 : i64, tpu.core_type = #tpu.core_type<tc>, window_params = [{pipeline_mode = #tpu.pipeline_mode<synchronous>, transform_indices = @transform_0, window_bounds = array<i64: 16, 32>}, {pipeline_mode = #tpu.pipeline_mode<synchronous>, transform_indices = @transform_1, window_bounds = array<i64: 2, 8>}, {pipeline_mode = #tpu.pipeline_mode<synchronous>, transform_indices = @transform_2, window_bounds = array<i64: 1, 32>}, {pipeline_mode = #tpu.pipeline_mode<synchronous>, transform_indices = @transform_3, window_bounds = array<i64: 1, 32>}, {pipeline_mode = #tpu.pipeline_mode<synchronous>, transform_indices = @transform_4, window_bounds = array<i64: 2, 32, 96>}, {pipeline_mode = #tpu.pipeline_mode<synchronous>, transform_indices = @transform_5, window_bounds = array<i64: 2, 1, 96>}, {pipeline_mode = #tpu.pipeline_mode<synchronous>, transform_indices = @transform_6, window_bounds = array<i64: 2, 32, 32>}, {pipeline_mode = #tpu.pipeline_mode<synchronous>, transform_indices = @transform_7, window_bounds = array<i64: 2, 1, 32>}, {pipeline_mode = #tpu.pipeline_mode<synchronous>, transform_indices = @transform_8, window_bounds = array<i64: 2, 1, 32>}, {pipeline_mode = #tpu.pipeline_mode<synchronous>, transform_indices = @transform_9, window_bounds = array<i64: 2, 1, 32>}, {pipeline_mode = #tpu.pipeline_mode<synchronous>, transform_indices = @transform_10, window_bounds = array<i64: 2, 32, 64>}, {pipeline_mode = #tpu.pipeline_mode<synchronous>, transform_indices = @transform_11, window_bounds = array<i64: 2, 1, 64>}, {pipeline_mode = #tpu.pipeline_mode<synchronous>, transform_indices = @transform_12, window_bounds = array<i64: 2, 64, 32>}, {pipeline_mode = #tpu.pipeline_mode<synchronous>, transform_indices = @transform_13, window_bounds = array<i64: 2, 1, 32>}, {pipeline_mode = #tpu.pipeline_mode<synchronous>, transform_indices = @transform_14, window_bounds = array<i64: 2, 1, 32>}, {pipeline_mode = #tpu.pipeline_mode<synchronous>, transform_indices = @transform_15, window_bounds = array<i64: 2, 1, 32>}, {pipeline_mode = #tpu.pipeline_mode<synchronous>, transform_indices = @transform_16, window_bounds = array<i64: 16, 32>}]} {
    %c0 = arith.constant 0 : index
    %c0_0 = arith.constant 0 : index
    %0 = vector.load %arg1[%c0, %c0_0] : memref<16x32xf32, #tpu.memory_space<vmem>>, vector<16x32xf32>
    %c0_1 = arith.constant 0 : index
    %c0_2 = arith.constant 0 : index
    %1 = vector.load %arg3[%c0_1, %c0_2] : memref<1x32xf32, #tpu.memory_space<vmem>>, vector<1x32xf32>
    %c0_3 = arith.constant 0 : index
    %c0_4 = arith.constant 0 : index
    %2 = vector.load %arg4[%c0_3, %c0_4] : memref<1x32xf32, #tpu.memory_space<vmem>>, vector<1x32xf32>
    %cst = arith.constant dense<0.000000e+00> : vector<16xf32>
    %3 = vector.multi_reduction <add>, %0, %cst [1] : vector<16x32xf32> to vector<16xf32>
    %4 = vector.shape_cast %3 : vector<16xf32> to vector<16x1xf32>
    %cst_5 = arith.constant 3.200000e+01 : f32
    %5 = vector.broadcast %cst_5 : f32 to vector<16x1xf32>
    %6 = arith.divf %4, %5 : vector<16x1xf32>
    %7 = vector.broadcast %6 : vector<16x1xf32> to vector<16x32xf32>
    %8 = arith.subf %0, %7 : vector<16x32xf32>
    %9 = arith.mulf %8, %8 : vector<16x32xf32>
    %cst_6 = arith.constant dense<0.000000e+00> : vector<16xf32>
    %10 = vector.multi_reduction <add>, %9, %cst_6 [1] : vector<16x32xf32> to vector<16xf32>
    %11 = vector.shape_cast %10 : vector<16xf32> to vector<16x1xf32>
    %cst_7 = arith.constant 3.200000e+01 : f32
    %12 = vector.broadcast %cst_7 : f32 to vector<16x1xf32>
    %13 = arith.divf %11, %12 : vector<16x1xf32>
    %14 = vector.broadcast %6 : vector<16x1xf32> to vector<16x32xf32>
    %15 = arith.subf %0, %14 : vector<16x32xf32>
    %cst_8 = arith.constant 9.99999996E-13 : f32
    %16 = vector.broadcast %cst_8 : f32 to vector<16x1xf32>
    %17 = arith.addf %13, %16 : vector<16x1xf32>
    %18 = math.rsqrt %17 : vector<16x1xf32>
    %19 = vector.broadcast %18 : vector<16x1xf32> to vector<16x32xf32>
    %20 = arith.mulf %15, %19 : vector<16x32xf32>
    %21 = vector.broadcast %1 : vector<1x32xf32> to vector<16x32xf32>
    %22 = arith.mulf %20, %21 : vector<16x32xf32>
    %23 = vector.broadcast %2 : vector<1x32xf32> to vector<16x32xf32>
    %24 = arith.addf %22, %23 : vector<16x32xf32>
    %c0_9 = arith.constant 0 : index
    %c0_10 = arith.constant 0 : index
    %25 = vector.load %arg2[%c0_9, %c0_10] : memref<2x8xf32, #tpu.memory_space<vmem>>, vector<2x8xf32>
    %cst_11 = arith.constant 1.000000e+00 : f32
    %26 = vector.broadcast %cst_11 : f32 to vector<2x8xf32>
    %27 = arith.subf %26, %25 : vector<2x8xf32>
    %cst_12 = arith.constant -1.000000e+09 : f32
    %28 = vector.broadcast %cst_12 : f32 to vector<2x8xf32>
    %29 = arith.mulf %27, %28 : vector<2x8xf32>
    %c0_13 = arith.constant 0 : index
    %c0_14 = arith.constant 0 : index
    %c0_15 = arith.constant 0 : index
    %30 = vector.load %arg5[%c0_13, %c0_14, %c0_15] : memref<2x32x96xf32, #tpu.memory_space<vmem>>, vector<1x32x96xf32>
    %31 = vector.shape_cast %30 : vector<1x32x96xf32> to vector<32x96xf32>
    %32 = arith.truncf %24 : vector<16x32xf32> to vector<16x32xbf16>
    %33 = arith.truncf %31 : vector<32x96xf32> to vector<32x96xbf16>
    %cst_16 = arith.constant dense<0.000000e+00> : vector<16x96xf32>
    %34 = tpu.matmul %32, %33, %cst_16 {dimension_numbers = #tpu.dot_dimension_numbers<[1], [0], [0], [1], [0, 0, 1, 1], [], []>} : vector<16x32xbf16>, vector<32x96xbf16>, vector<16x96xf32> -> vector<16x96xf32>
    %c0_17 = arith.constant 0 : index
    %c0_18 = arith.constant 0 : index
    %c0_19 = arith.constant 0 : index
    %35 = vector.load %arg6[%c0_17, %c0_18, %c0_19] : memref<2x1x96xf32, #tpu.memory_space<vmem>>, vector<1x1x96xf32>
    %36 = vector.shape_cast %35 : vector<1x1x96xf32> to vector<1x96xf32>
    %37 = vector.broadcast %36 : vector<1x96xf32> to vector<16x96xf32>
    %38 = arith.addf %34, %37 : vector<16x96xf32>
    %39 = vector.extract_strided_slice %29 {offsets = [0, 0], sizes = [1, 8], strides = [1, 1]} : vector<2x8xf32> to vector<1x8xf32>
    %40 = vector.extract_strided_slice %38 {offsets = [0, 0], sizes = [8, 16], strides = [1, 1]} : vector<16x96xf32> to vector<8x16xf32>
    %41 = vector.extract_strided_slice %38 {offsets = [0, 32], sizes = [8, 16], strides = [1, 1]} : vector<16x96xf32> to vector<8x16xf32>
    %42 = vector.extract_strided_slice %38 {offsets = [0, 64], sizes = [8, 16], strides = [1, 1]} : vector<16x96xf32> to vector<8x16xf32>
    %43 = tpu.transpose %41, [1, 0] : vector<8x16xf32> -> vector<16x8xf32>
    %44 = arith.truncf %40 : vector<8x16xf32> to vector<8x16xbf16>
    %45 = arith.truncf %43 : vector<16x8xf32> to vector<16x8xbf16>
    %cst_20 = arith.constant dense<0.000000e+00> : vector<8x8xf32>
    %46 = tpu.matmul %44, %45, %cst_20 {dimension_numbers = #tpu.dot_dimension_numbers<[1], [0], [0], [1], [0, 0, 1, 1], [], []>} : vector<8x16xbf16>, vector<16x8xbf16>, vector<8x8xf32> -> vector<8x8xf32>
    %cst_21 = arith.constant 2.500000e-01 : f32
    %47 = vector.broadcast %cst_21 : f32 to vector<8x8xf32>
    %48 = arith.mulf %46, %47 : vector<8x8xf32>
    %49 = vector.broadcast %39 : vector<1x8xf32> to vector<8x8xf32>
    %50 = arith.addf %48, %49 : vector<8x8xf32>
    %cst_22 = arith.constant dense<0xFF800000> : vector<8xf32>
    %51 = vector.multi_reduction <maximumf>, %50, %cst_22 [1] : vector<8x8xf32> to vector<8xf32>
    %52 = vector.shape_cast %51 : vector<8xf32> to vector<8x1xf32>
    %53 = vector.broadcast %52 : vector<8x1xf32> to vector<8x8xf32>
    %54 = arith.subf %50, %53 : vector<8x8xf32>
    %55 = math.exp %54 : vector<8x8xf32>
    %cst_23 = arith.constant dense<0.000000e+00> : vector<8xf32>
    %56 = vector.multi_reduction <add>, %55, %cst_23 [1] : vector<8x8xf32> to vector<8xf32>
    %57 = vector.shape_cast %56 : vector<8xf32> to vector<8x1xf32>
    %58 = tpu.reciprocal %57 {approx = true} : vector<8x1xf32> -> vector<8x1xf32>
    %59 = vector.broadcast %58 : vector<8x1xf32> to vector<8x8xf32>
    %60 = arith.mulf %55, %59 : vector<8x8xf32>
    %61 = arith.truncf %60 : vector<8x8xf32> to vector<8x8xbf16>
    %62 = arith.truncf %42 : vector<8x16xf32> to vector<8x16xbf16>
    %cst_24 = arith.constant dense<0.000000e+00> : vector<8x16xf32>
    %63 = tpu.matmul %61, %62, %cst_24 {dimension_numbers = #tpu.dot_dimension_numbers<[1], [0], [0], [1], [0, 0, 1, 1], [], []>} : vector<8x8xbf16>, vector<8x16xbf16>, vector<8x16xf32> -> vector<8x16xf32>
    %64 = vector.extract_strided_slice %38 {offsets = [0, 16], sizes = [8, 16], strides = [1, 1]} : vector<16x96xf32> to vector<8x16xf32>
    %65 = vector.extract_strided_slice %38 {offsets = [0, 48], sizes = [8, 16], strides = [1, 1]} : vector<16x96xf32> to vector<8x16xf32>
    %66 = vector.extract_strided_slice %38 {offsets = [0, 80], sizes = [8, 16], strides = [1, 1]} : vector<16x96xf32> to vector<8x16xf32>
    %67 = tpu.transpose %65, [1, 0] : vector<8x16xf32> -> vector<16x8xf32>
    %68 = arith.truncf %64 : vector<8x16xf32> to vector<8x16xbf16>
    %69 = arith.truncf %67 : vector<16x8xf32> to vector<16x8xbf16>
    %cst_25 = arith.constant dense<0.000000e+00> : vector<8x8xf32>
    %70 = tpu.matmul %68, %69, %cst_25 {dimension_numbers = #tpu.dot_dimension_numbers<[1], [0], [0], [1], [0, 0, 1, 1], [], []>} : vector<8x16xbf16>, vector<16x8xbf16>, vector<8x8xf32> -> vector<8x8xf32>
    %cst_26 = arith.constant 2.500000e-01 : f32
    %71 = vector.broadcast %cst_26 : f32 to vector<8x8xf32>
    %72 = arith.mulf %70, %71 : vector<8x8xf32>
    %73 = vector.broadcast %39 : vector<1x8xf32> to vector<8x8xf32>
    %74 = arith.addf %72, %73 : vector<8x8xf32>
    %cst_27 = arith.constant dense<0xFF800000> : vector<8xf32>
    %75 = vector.multi_reduction <maximumf>, %74, %cst_27 [1] : vector<8x8xf32> to vector<8xf32>
    %76 = vector.shape_cast %75 : vector<8xf32> to vector<8x1xf32>
    %77 = vector.broadcast %76 : vector<8x1xf32> to vector<8x8xf32>
    %78 = arith.subf %74, %77 : vector<8x8xf32>
    %79 = math.exp %78 : vector<8x8xf32>
    %cst_28 = arith.constant dense<0.000000e+00> : vector<8xf32>
    %80 = vector.multi_reduction <add>, %79, %cst_28 [1] : vector<8x8xf32> to vector<8xf32>
    %81 = vector.shape_cast %80 : vector<8xf32> to vector<8x1xf32>
    %82 = tpu.reciprocal %81 {approx = true} : vector<8x1xf32> -> vector<8x1xf32>
    %83 = vector.broadcast %82 : vector<8x1xf32> to vector<8x8xf32>
    %84 = arith.mulf %79, %83 : vector<8x8xf32>
    %85 = arith.truncf %84 : vector<8x8xf32> to vector<8x8xbf16>
    %86 = arith.truncf %66 : vector<8x16xf32> to vector<8x16xbf16>
    %cst_29 = arith.constant dense<0.000000e+00> : vector<8x16xf32>
    %87 = tpu.matmul %85, %86, %cst_29 {dimension_numbers = #tpu.dot_dimension_numbers<[1], [0], [0], [1], [0, 0, 1, 1], [], []>} : vector<8x8xbf16>, vector<8x16xbf16>, vector<8x16xf32> -> vector<8x16xf32>
    %88 = tpu.concatenate %63, %87 in 1 : vector<8x16xf32>, vector<8x16xf32> -> vector<8x32xf32>
    %89 = vector.extract_strided_slice %29 {offsets = [1, 0], sizes = [1, 8], strides = [1, 1]} : vector<2x8xf32> to vector<1x8xf32>
    %90 = vector.extract_strided_slice %38 {offsets = [8, 0], sizes = [8, 16], strides = [1, 1]} : vector<16x96xf32> to vector<8x16xf32>
    %91 = vector.extract_strided_slice %38 {offsets = [8, 32], sizes = [8, 16], strides = [1, 1]} : vector<16x96xf32> to vector<8x16xf32>
    %92 = vector.extract_strided_slice %38 {offsets = [8, 64], sizes = [8, 16], strides = [1, 1]} : vector<16x96xf32> to vector<8x16xf32>
    %93 = tpu.transpose %91, [1, 0] : vector<8x16xf32> -> vector<16x8xf32>
    %94 = arith.truncf %90 : vector<8x16xf32> to vector<8x16xbf16>
    %95 = arith.truncf %93 : vector<16x8xf32> to vector<16x8xbf16>
    %cst_30 = arith.constant dense<0.000000e+00> : vector<8x8xf32>
    %96 = tpu.matmul %94, %95, %cst_30 {dimension_numbers = #tpu.dot_dimension_numbers<[1], [0], [0], [1], [0, 0, 1, 1], [], []>} : vector<8x16xbf16>, vector<16x8xbf16>, vector<8x8xf32> -> vector<8x8xf32>
    %cst_31 = arith.constant 2.500000e-01 : f32
    %97 = vector.broadcast %cst_31 : f32 to vector<8x8xf32>
    %98 = arith.mulf %96, %97 : vector<8x8xf32>
    %99 = vector.broadcast %89 : vector<1x8xf32> to vector<8x8xf32>
    %100 = arith.addf %98, %99 : vector<8x8xf32>
    %cst_32 = arith.constant dense<0xFF800000> : vector<8xf32>
    %101 = vector.multi_reduction <maximumf>, %100, %cst_32 [1] : vector<8x8xf32> to vector<8xf32>
    %102 = vector.shape_cast %101 : vector<8xf32> to vector<8x1xf32>
    %103 = vector.broadcast %102 : vector<8x1xf32> to vector<8x8xf32>
    %104 = arith.subf %100, %103 : vector<8x8xf32>
    %105 = math.exp %104 : vector<8x8xf32>
    %cst_33 = arith.constant dense<0.000000e+00> : vector<8xf32>
    %106 = vector.multi_reduction <add>, %105, %cst_33 [1] : vector<8x8xf32> to vector<8xf32>
    %107 = vector.shape_cast %106 : vector<8xf32> to vector<8x1xf32>
    %108 = tpu.reciprocal %107 {approx = true} : vector<8x1xf32> -> vector<8x1xf32>
    %109 = vector.broadcast %108 : vector<8x1xf32> to vector<8x8xf32>
    %110 = arith.mulf %105, %109 : vector<8x8xf32>
    %111 = arith.truncf %110 : vector<8x8xf32> to vector<8x8xbf16>
    %112 = arith.truncf %92 : vector<8x16xf32> to vector<8x16xbf16>
    %cst_34 = arith.constant dense<0.000000e+00> : vector<8x16xf32>
    %113 = tpu.matmul %111, %112, %cst_34 {dimension_numbers = #tpu.dot_dimension_numbers<[1], [0], [0], [1], [0, 0, 1, 1], [], []>} : vector<8x8xbf16>, vector<8x16xbf16>, vector<8x16xf32> -> vector<8x16xf32>
    %114 = vector.extract_strided_slice %38 {offsets = [8, 16], sizes = [8, 16], strides = [1, 1]} : vector<16x96xf32> to vector<8x16xf32>
    %115 = vector.extract_strided_slice %38 {offsets = [8, 48], sizes = [8, 16], strides = [1, 1]} : vector<16x96xf32> to vector<8x16xf32>
    %116 = vector.extract_strided_slice %38 {offsets = [8, 80], sizes = [8, 16], strides = [1, 1]} : vector<16x96xf32> to vector<8x16xf32>
    %117 = tpu.transpose %115, [1, 0] : vector<8x16xf32> -> vector<16x8xf32>
    %118 = arith.truncf %114 : vector<8x16xf32> to vector<8x16xbf16>
    %119 = arith.truncf %117 : vector<16x8xf32> to vector<16x8xbf16>
    %cst_35 = arith.constant dense<0.000000e+00> : vector<8x8xf32>
    %120 = tpu.matmul %118, %119, %cst_35 {dimension_numbers = #tpu.dot_dimension_numbers<[1], [0], [0], [1], [0, 0, 1, 1], [], []>} : vector<8x16xbf16>, vector<16x8xbf16>, vector<8x8xf32> -> vector<8x8xf32>
    %cst_36 = arith.constant 2.500000e-01 : f32
    %121 = vector.broadcast %cst_36 : f32 to vector<8x8xf32>
    %122 = arith.mulf %120, %121 : vector<8x8xf32>
    %123 = vector.broadcast %89 : vector<1x8xf32> to vector<8x8xf32>
    %124 = arith.addf %122, %123 : vector<8x8xf32>
    %cst_37 = arith.constant dense<0xFF800000> : vector<8xf32>
    %125 = vector.multi_reduction <maximumf>, %124, %cst_37 [1] : vector<8x8xf32> to vector<8xf32>
    %126 = vector.shape_cast %125 : vector<8xf32> to vector<8x1xf32>
    %127 = vector.broadcast %126 : vector<8x1xf32> to vector<8x8xf32>
    %128 = arith.subf %124, %127 : vector<8x8xf32>
    %129 = math.exp %128 : vector<8x8xf32>
    %cst_38 = arith.constant dense<0.000000e+00> : vector<8xf32>
    %130 = vector.multi_reduction <add>, %129, %cst_38 [1] : vector<8x8xf32> to vector<8xf32>
    %131 = vector.shape_cast %130 : vector<8xf32> to vector<8x1xf32>
    %132 = tpu.reciprocal %131 {approx = true} : vector<8x1xf32> -> vector<8x1xf32>
    %133 = vector.broadcast %132 : vector<8x1xf32> to vector<8x8xf32>
    %134 = arith.mulf %129, %133 : vector<8x8xf32>
    %135 = arith.truncf %134 : vector<8x8xf32> to vector<8x8xbf16>
    %136 = arith.truncf %116 : vector<8x16xf32> to vector<8x16xbf16>
    %cst_39 = arith.constant dense<0.000000e+00> : vector<8x16xf32>
    %137 = tpu.matmul %135, %136, %cst_39 {dimension_numbers = #tpu.dot_dimension_numbers<[1], [0], [0], [1], [0, 0, 1, 1], [], []>} : vector<8x8xbf16>, vector<8x16xbf16>, vector<8x16xf32> -> vector<8x16xf32>
    %138 = tpu.concatenate %113, %137 in 1 : vector<8x16xf32>, vector<8x16xf32> -> vector<8x32xf32>
    %139 = tpu.concatenate %88, %138 in 0 : vector<8x32xf32>, vector<8x32xf32> -> vector<16x32xf32>
    %c0_40 = arith.constant 0 : index
    %c0_41 = arith.constant 0 : index
    %c0_42 = arith.constant 0 : index
    %140 = vector.load %arg7[%c0_40, %c0_41, %c0_42] : memref<2x32x32xf32, #tpu.memory_space<vmem>>, vector<1x32x32xf32>
    %141 = vector.shape_cast %140 : vector<1x32x32xf32> to vector<32x32xf32>
    %142 = arith.truncf %139 : vector<16x32xf32> to vector<16x32xbf16>
    %143 = arith.truncf %141 : vector<32x32xf32> to vector<32x32xbf16>
    %cst_43 = arith.constant dense<0.000000e+00> : vector<16x32xf32>
    %144 = tpu.matmul %142, %143, %cst_43 {dimension_numbers = #tpu.dot_dimension_numbers<[1], [0], [0], [1], [0, 0, 1, 1], [], []>} : vector<16x32xbf16>, vector<32x32xbf16>, vector<16x32xf32> -> vector<16x32xf32>
    %145 = arith.addf %24, %144 : vector<16x32xf32>
    %c0_44 = arith.constant 0 : index
    %c0_45 = arith.constant 0 : index
    %c0_46 = arith.constant 0 : index
    %146 = vector.load %arg8[%c0_44, %c0_45, %c0_46] : memref<2x1x32xf32, #tpu.memory_space<vmem>>, vector<1x1x32xf32>
    %147 = vector.shape_cast %146 : vector<1x1x32xf32> to vector<1x32xf32>
    %148 = vector.broadcast %147 : vector<1x32xf32> to vector<16x32xf32>
    %149 = arith.addf %145, %148 : vector<16x32xf32>
    %c0_47 = arith.constant 0 : index
    %c0_48 = arith.constant 0 : index
    %c0_49 = arith.constant 0 : index
    %150 = vector.load %arg9[%c0_47, %c0_48, %c0_49] : memref<2x1x32xf32, #tpu.memory_space<vmem>>, vector<1x1x32xf32>
    %151 = vector.shape_cast %150 : vector<1x1x32xf32> to vector<1x32xf32>
    %c0_50 = arith.constant 0 : index
    %c0_51 = arith.constant 0 : index
    %c0_52 = arith.constant 0 : index
    %152 = vector.load %arg10[%c0_50, %c0_51, %c0_52] : memref<2x1x32xf32, #tpu.memory_space<vmem>>, vector<1x1x32xf32>
    %153 = vector.shape_cast %152 : vector<1x1x32xf32> to vector<1x32xf32>
    %cst_53 = arith.constant dense<0.000000e+00> : vector<16xf32>
    %154 = vector.multi_reduction <add>, %149, %cst_53 [1] : vector<16x32xf32> to vector<16xf32>
    %155 = vector.shape_cast %154 : vector<16xf32> to vector<16x1xf32>
    %cst_54 = arith.constant 3.200000e+01 : f32
    %156 = vector.broadcast %cst_54 : f32 to vector<16x1xf32>
    %157 = arith.divf %155, %156 : vector<16x1xf32>
    %158 = vector.broadcast %157 : vector<16x1xf32> to vector<16x32xf32>
    %159 = arith.subf %149, %158 : vector<16x32xf32>
    %160 = arith.mulf %159, %159 : vector<16x32xf32>
    %cst_55 = arith.constant dense<0.000000e+00> : vector<16xf32>
    %161 = vector.multi_reduction <add>, %160, %cst_55 [1] : vector<16x32xf32> to vector<16xf32>
    %162 = vector.shape_cast %161 : vector<16xf32> to vector<16x1xf32>
    %cst_56 = arith.constant 3.200000e+01 : f32
    %163 = vector.broadcast %cst_56 : f32 to vector<16x1xf32>
    %164 = arith.divf %162, %163 : vector<16x1xf32>
    %165 = vector.broadcast %157 : vector<16x1xf32> to vector<16x32xf32>
    %166 = arith.subf %149, %165 : vector<16x32xf32>
    %cst_57 = arith.constant 9.99999996E-13 : f32
    %167 = vector.broadcast %cst_57 : f32 to vector<16x1xf32>
    %168 = arith.addf %164, %167 : vector<16x1xf32>
    %169 = math.rsqrt %168 : vector<16x1xf32>
    %170 = vector.broadcast %169 : vector<16x1xf32> to vector<16x32xf32>
    %171 = arith.mulf %166, %170 : vector<16x32xf32>
    %172 = vector.broadcast %151 : vector<1x32xf32> to vector<16x32xf32>
    %173 = arith.mulf %171, %172 : vector<16x32xf32>
    %174 = vector.broadcast %153 : vector<1x32xf32> to vector<16x32xf32>
    %175 = arith.addf %173, %174 : vector<16x32xf32>
    %c0_58 = arith.constant 0 : index
    %c0_59 = arith.constant 0 : index
    %c0_60 = arith.constant 0 : index
    %176 = vector.load %arg11[%c0_58, %c0_59, %c0_60] : memref<2x32x64xf32, #tpu.memory_space<vmem>>, vector<1x32x64xf32>
    %177 = vector.shape_cast %176 : vector<1x32x64xf32> to vector<32x64xf32>
    %178 = arith.truncf %175 : vector<16x32xf32> to vector<16x32xbf16>
    %179 = arith.truncf %177 : vector<32x64xf32> to vector<32x64xbf16>
    %cst_61 = arith.constant dense<0.000000e+00> : vector<16x64xf32>
    %180 = tpu.matmul %178, %179, %cst_61 {dimension_numbers = #tpu.dot_dimension_numbers<[1], [0], [0], [1], [0, 0, 1, 1], [], []>} : vector<16x32xbf16>, vector<32x64xbf16>, vector<16x64xf32> -> vector<16x64xf32>
    %c0_62 = arith.constant 0 : index
    %c0_63 = arith.constant 0 : index
    %c0_64 = arith.constant 0 : index
    %181 = vector.load %arg12[%c0_62, %c0_63, %c0_64] : memref<2x1x64xf32, #tpu.memory_space<vmem>>, vector<1x1x64xf32>
    %182 = vector.shape_cast %181 : vector<1x1x64xf32> to vector<1x64xf32>
    %183 = vector.broadcast %182 : vector<1x64xf32> to vector<16x64xf32>
    %184 = arith.addf %180, %183 : vector<16x64xf32>
    %185 = arith.mulf %184, %184 : vector<16x64xf32>
    %186 = arith.mulf %184, %185 : vector<16x64xf32>
    %cst_65 = arith.constant 4.471500e-02 : f32
    %187 = vector.broadcast %cst_65 : f32 to vector<16x64xf32>
    %188 = arith.mulf %187, %186 : vector<16x64xf32>
    %189 = arith.addf %184, %188 : vector<16x64xf32>
    %cst_66 = arith.constant 0.797884583 : f32
    %190 = vector.broadcast %cst_66 : f32 to vector<16x64xf32>
    %191 = arith.mulf %190, %189 : vector<16x64xf32>
    %192 = math.tanh %191 : vector<16x64xf32>
    %cst_67 = arith.constant 1.000000e+00 : f32
    %193 = vector.broadcast %cst_67 : f32 to vector<16x64xf32>
    %194 = arith.addf %193, %192 : vector<16x64xf32>
    %cst_68 = arith.constant 5.000000e-01 : f32
    %195 = vector.broadcast %cst_68 : f32 to vector<16x64xf32>
    %196 = arith.mulf %195, %194 : vector<16x64xf32>
    %197 = arith.mulf %184, %196 : vector<16x64xf32>
    %c0_69 = arith.constant 0 : index
    %c0_70 = arith.constant 0 : index
    %c0_71 = arith.constant 0 : index
    %198 = vector.load %arg13[%c0_69, %c0_70, %c0_71] : memref<2x64x32xf32, #tpu.memory_space<vmem>>, vector<1x64x32xf32>
    %199 = vector.shape_cast %198 : vector<1x64x32xf32> to vector<64x32xf32>
    %200 = arith.truncf %197 : vector<16x64xf32> to vector<16x64xbf16>
    %201 = arith.truncf %199 : vector<64x32xf32> to vector<64x32xbf16>
    %cst_72 = arith.constant dense<0.000000e+00> : vector<16x32xf32>
    %202 = tpu.matmul %200, %201, %cst_72 {dimension_numbers = #tpu.dot_dimension_numbers<[1], [0], [0], [1], [0, 0, 1, 1], [], []>} : vector<16x64xbf16>, vector<64x32xbf16>, vector<16x32xf32> -> vector<16x32xf32>
    %203 = arith.addf %175, %202 : vector<16x32xf32>
    %c0_73 = arith.constant 0 : index
    %c0_74 = arith.constant 0 : index
    %c0_75 = arith.constant 0 : index
    %204 = vector.load %arg14[%c0_73, %c0_74, %c0_75] : memref<2x1x32xf32, #tpu.memory_space<vmem>>, vector<1x1x32xf32>
    %205 = vector.shape_cast %204 : vector<1x1x32xf32> to vector<1x32xf32>
    %206 = vector.broadcast %205 : vector<1x32xf32> to vector<16x32xf32>
    %207 = arith.addf %203, %206 : vector<16x32xf32>
    %c0_76 = arith.constant 0 : index
    %c0_77 = arith.constant 0 : index
    %c0_78 = arith.constant 0 : index
    %208 = vector.load %arg15[%c0_76, %c0_77, %c0_78] : memref<2x1x32xf32, #tpu.memory_space<vmem>>, vector<1x1x32xf32>
    %209 = vector.shape_cast %208 : vector<1x1x32xf32> to vector<1x32xf32>
    %c0_79 = arith.constant 0 : index
    %c0_80 = arith.constant 0 : index
    %c0_81 = arith.constant 0 : index
    %210 = vector.load %arg16[%c0_79, %c0_80, %c0_81] : memref<2x1x32xf32, #tpu.memory_space<vmem>>, vector<1x1x32xf32>
    %211 = vector.shape_cast %210 : vector<1x1x32xf32> to vector<1x32xf32>
    %cst_82 = arith.constant dense<0.000000e+00> : vector<16xf32>
    %212 = vector.multi_reduction <add>, %207, %cst_82 [1] : vector<16x32xf32> to vector<16xf32>
    %213 = vector.shape_cast %212 : vector<16xf32> to vector<16x1xf32>
    %cst_83 = arith.constant 3.200000e+01 : f32
    %214 = vector.broadcast %cst_83 : f32 to vector<16x1xf32>
    %215 = arith.divf %213, %214 : vector<16x1xf32>
    %216 = vector.broadcast %215 : vector<16x1xf32> to vector<16x32xf32>
    %217 = arith.subf %207, %216 : vector<16x32xf32>
    %218 = arith.mulf %217, %217 : vector<16x32xf32>
    %cst_84 = arith.constant dense<0.000000e+00> : vector<16xf32>
    %219 = vector.multi_reduction <add>, %218, %cst_84 [1] : vector<16x32xf32> to vector<16xf32>
    %220 = vector.shape_cast %219 : vector<16xf32> to vector<16x1xf32>
    %cst_85 = arith.constant 3.200000e+01 : f32
    %221 = vector.broadcast %cst_85 : f32 to vector<16x1xf32>
    %222 = arith.divf %220, %221 : vector<16x1xf32>
    %223 = vector.broadcast %215 : vector<16x1xf32> to vector<16x32xf32>
    %224 = arith.subf %207, %223 : vector<16x32xf32>
    %cst_86 = arith.constant 9.99999996E-13 : f32
    %225 = vector.broadcast %cst_86 : f32 to vector<16x1xf32>
    %226 = arith.addf %222, %225 : vector<16x1xf32>
    %227 = math.rsqrt %226 : vector<16x1xf32>
    %228 = vector.broadcast %227 : vector<16x1xf32> to vector<16x32xf32>
    %229 = arith.mulf %224, %228 : vector<16x32xf32>
    %230 = vector.broadcast %209 : vector<1x32xf32> to vector<16x32xf32>
    %231 = arith.mulf %229, %230 : vector<16x32xf32>
    %232 = vector.broadcast %211 : vector<1x32xf32> to vector<16x32xf32>
    %233 = arith.addf %231, %232 : vector<16x32xf32>
    %c1 = arith.constant 1 : index
    %c0_87 = arith.constant 0 : index
    %c0_88 = arith.constant 0 : index
    %234 = vector.load %arg5[%c1, %c0_87, %c0_88] : memref<2x32x96xf32, #tpu.memory_space<vmem>>, vector<1x32x96xf32>
    %235 = vector.shape_cast %234 : vector<1x32x96xf32> to vector<32x96xf32>
    %236 = arith.truncf %233 : vector<16x32xf32> to vector<16x32xbf16>
    %237 = arith.truncf %235 : vector<32x96xf32> to vector<32x96xbf16>
    %cst_89 = arith.constant dense<0.000000e+00> : vector<16x96xf32>
    %238 = tpu.matmul %236, %237, %cst_89 {dimension_numbers = #tpu.dot_dimension_numbers<[1], [0], [0], [1], [0, 0, 1, 1], [], []>} : vector<16x32xbf16>, vector<32x96xbf16>, vector<16x96xf32> -> vector<16x96xf32>
    %c1_90 = arith.constant 1 : index
    %c0_91 = arith.constant 0 : index
    %c0_92 = arith.constant 0 : index
    %239 = vector.load %arg6[%c1_90, %c0_91, %c0_92] : memref<2x1x96xf32, #tpu.memory_space<vmem>>, vector<1x1x96xf32>
    %240 = vector.shape_cast %239 : vector<1x1x96xf32> to vector<1x96xf32>
    %241 = vector.broadcast %240 : vector<1x96xf32> to vector<16x96xf32>
    %242 = arith.addf %238, %241 : vector<16x96xf32>
    %243 = vector.extract_strided_slice %29 {offsets = [0, 0], sizes = [1, 8], strides = [1, 1]} : vector<2x8xf32> to vector<1x8xf32>
    %244 = vector.extract_strided_slice %242 {offsets = [0, 0], sizes = [8, 16], strides = [1, 1]} : vector<16x96xf32> to vector<8x16xf32>
    %245 = vector.extract_strided_slice %242 {offsets = [0, 32], sizes = [8, 16], strides = [1, 1]} : vector<16x96xf32> to vector<8x16xf32>
    %246 = vector.extract_strided_slice %242 {offsets = [0, 64], sizes = [8, 16], strides = [1, 1]} : vector<16x96xf32> to vector<8x16xf32>
    %247 = tpu.transpose %245, [1, 0] : vector<8x16xf32> -> vector<16x8xf32>
    %248 = arith.truncf %244 : vector<8x16xf32> to vector<8x16xbf16>
    %249 = arith.truncf %247 : vector<16x8xf32> to vector<16x8xbf16>
    %cst_93 = arith.constant dense<0.000000e+00> : vector<8x8xf32>
    %250 = tpu.matmul %248, %249, %cst_93 {dimension_numbers = #tpu.dot_dimension_numbers<[1], [0], [0], [1], [0, 0, 1, 1], [], []>} : vector<8x16xbf16>, vector<16x8xbf16>, vector<8x8xf32> -> vector<8x8xf32>
    %cst_94 = arith.constant 2.500000e-01 : f32
    %251 = vector.broadcast %cst_94 : f32 to vector<8x8xf32>
    %252 = arith.mulf %250, %251 : vector<8x8xf32>
    %253 = vector.broadcast %243 : vector<1x8xf32> to vector<8x8xf32>
    %254 = arith.addf %252, %253 : vector<8x8xf32>
    %cst_95 = arith.constant dense<0xFF800000> : vector<8xf32>
    %255 = vector.multi_reduction <maximumf>, %254, %cst_95 [1] : vector<8x8xf32> to vector<8xf32>
    %256 = vector.shape_cast %255 : vector<8xf32> to vector<8x1xf32>
    %257 = vector.broadcast %256 : vector<8x1xf32> to vector<8x8xf32>
    %258 = arith.subf %254, %257 : vector<8x8xf32>
    %259 = math.exp %258 : vector<8x8xf32>
    %cst_96 = arith.constant dense<0.000000e+00> : vector<8xf32>
    %260 = vector.multi_reduction <add>, %259, %cst_96 [1] : vector<8x8xf32> to vector<8xf32>
    %261 = vector.shape_cast %260 : vector<8xf32> to vector<8x1xf32>
    %262 = tpu.reciprocal %261 {approx = true} : vector<8x1xf32> -> vector<8x1xf32>
    %263 = vector.broadcast %262 : vector<8x1xf32> to vector<8x8xf32>
    %264 = arith.mulf %259, %263 : vector<8x8xf32>
    %265 = arith.truncf %264 : vector<8x8xf32> to vector<8x8xbf16>
    %266 = arith.truncf %246 : vector<8x16xf32> to vector<8x16xbf16>
    %cst_97 = arith.constant dense<0.000000e+00> : vector<8x16xf32>
    %267 = tpu.matmul %265, %266, %cst_97 {dimension_numbers = #tpu.dot_dimension_numbers<[1], [0], [0], [1], [0, 0, 1, 1], [], []>} : vector<8x8xbf16>, vector<8x16xbf16>, vector<8x16xf32> -> vector<8x16xf32>
    %268 = vector.extract_strided_slice %242 {offsets = [0, 16], sizes = [8, 16], strides = [1, 1]} : vector<16x96xf32> to vector<8x16xf32>
    %269 = vector.extract_strided_slice %242 {offsets = [0, 48], sizes = [8, 16], strides = [1, 1]} : vector<16x96xf32> to vector<8x16xf32>
    %270 = vector.extract_strided_slice %242 {offsets = [0, 80], sizes = [8, 16], strides = [1, 1]} : vector<16x96xf32> to vector<8x16xf32>
    %271 = tpu.transpose %269, [1, 0] : vector<8x16xf32> -> vector<16x8xf32>
    %272 = arith.truncf %268 : vector<8x16xf32> to vector<8x16xbf16>
    %273 = arith.truncf %271 : vector<16x8xf32> to vector<16x8xbf16>
    %cst_98 = arith.constant dense<0.000000e+00> : vector<8x8xf32>
    %274 = tpu.matmul %272, %273, %cst_98 {dimension_numbers = #tpu.dot_dimension_numbers<[1], [0], [0], [1], [0, 0, 1, 1], [], []>} : vector<8x16xbf16>, vector<16x8xbf16>, vector<8x8xf32> -> vector<8x8xf32>
    %cst_99 = arith.constant 2.500000e-01 : f32
    %275 = vector.broadcast %cst_99 : f32 to vector<8x8xf32>
    %276 = arith.mulf %274, %275 : vector<8x8xf32>
    %277 = vector.broadcast %243 : vector<1x8xf32> to vector<8x8xf32>
    %278 = arith.addf %276, %277 : vector<8x8xf32>
    %cst_100 = arith.constant dense<0xFF800000> : vector<8xf32>
    %279 = vector.multi_reduction <maximumf>, %278, %cst_100 [1] : vector<8x8xf32> to vector<8xf32>
    %280 = vector.shape_cast %279 : vector<8xf32> to vector<8x1xf32>
    %281 = vector.broadcast %280 : vector<8x1xf32> to vector<8x8xf32>
    %282 = arith.subf %278, %281 : vector<8x8xf32>
    %283 = math.exp %282 : vector<8x8xf32>
    %cst_101 = arith.constant dense<0.000000e+00> : vector<8xf32>
    %284 = vector.multi_reduction <add>, %283, %cst_101 [1] : vector<8x8xf32> to vector<8xf32>
    %285 = vector.shape_cast %284 : vector<8xf32> to vector<8x1xf32>
    %286 = tpu.reciprocal %285 {approx = true} : vector<8x1xf32> -> vector<8x1xf32>
    %287 = vector.broadcast %286 : vector<8x1xf32> to vector<8x8xf32>
    %288 = arith.mulf %283, %287 : vector<8x8xf32>
    %289 = arith.truncf %288 : vector<8x8xf32> to vector<8x8xbf16>
    %290 = arith.truncf %270 : vector<8x16xf32> to vector<8x16xbf16>
    %cst_102 = arith.constant dense<0.000000e+00> : vector<8x16xf32>
    %291 = tpu.matmul %289, %290, %cst_102 {dimension_numbers = #tpu.dot_dimension_numbers<[1], [0], [0], [1], [0, 0, 1, 1], [], []>} : vector<8x8xbf16>, vector<8x16xbf16>, vector<8x16xf32> -> vector<8x16xf32>
    %292 = tpu.concatenate %267, %291 in 1 : vector<8x16xf32>, vector<8x16xf32> -> vector<8x32xf32>
    %293 = vector.extract_strided_slice %29 {offsets = [1, 0], sizes = [1, 8], strides = [1, 1]} : vector<2x8xf32> to vector<1x8xf32>
    %294 = vector.extract_strided_slice %242 {offsets = [8, 0], sizes = [8, 16], strides = [1, 1]} : vector<16x96xf32> to vector<8x16xf32>
    %295 = vector.extract_strided_slice %242 {offsets = [8, 32], sizes = [8, 16], strides = [1, 1]} : vector<16x96xf32> to vector<8x16xf32>
    %296 = vector.extract_strided_slice %242 {offsets = [8, 64], sizes = [8, 16], strides = [1, 1]} : vector<16x96xf32> to vector<8x16xf32>
    %297 = tpu.transpose %295, [1, 0] : vector<8x16xf32> -> vector<16x8xf32>
    %298 = arith.truncf %294 : vector<8x16xf32> to vector<8x16xbf16>
    %299 = arith.truncf %297 : vector<16x8xf32> to vector<16x8xbf16>
    %cst_103 = arith.constant dense<0.000000e+00> : vector<8x8xf32>
    %300 = tpu.matmul %298, %299, %cst_103 {dimension_numbers = #tpu.dot_dimension_numbers<[1], [0], [0], [1], [0, 0, 1, 1], [], []>} : vector<8x16xbf16>, vector<16x8xbf16>, vector<8x8xf32> -> vector<8x8xf32>
    %cst_104 = arith.constant 2.500000e-01 : f32
    %301 = vector.broadcast %cst_104 : f32 to vector<8x8xf32>
    %302 = arith.mulf %300, %301 : vector<8x8xf32>
    %303 = vector.broadcast %293 : vector<1x8xf32> to vector<8x8xf32>
    %304 = arith.addf %302, %303 : vector<8x8xf32>
    %cst_105 = arith.constant dense<0xFF800000> : vector<8xf32>
    %305 = vector.multi_reduction <maximumf>, %304, %cst_105 [1] : vector<8x8xf32> to vector<8xf32>
    %306 = vector.shape_cast %305 : vector<8xf32> to vector<8x1xf32>
    %307 = vector.broadcast %306 : vector<8x1xf32> to vector<8x8xf32>
    %308 = arith.subf %304, %307 : vector<8x8xf32>
    %309 = math.exp %308 : vector<8x8xf32>
    %cst_106 = arith.constant dense<0.000000e+00> : vector<8xf32>
    %310 = vector.multi_reduction <add>, %309, %cst_106 [1] : vector<8x8xf32> to vector<8xf32>
    %311 = vector.shape_cast %310 : vector<8xf32> to vector<8x1xf32>
    %312 = tpu.reciprocal %311 {approx = true} : vector<8x1xf32> -> vector<8x1xf32>
    %313 = vector.broadcast %312 : vector<8x1xf32> to vector<8x8xf32>
    %314 = arith.mulf %309, %313 : vector<8x8xf32>
    %315 = arith.truncf %314 : vector<8x8xf32> to vector<8x8xbf16>
    %316 = arith.truncf %296 : vector<8x16xf32> to vector<8x16xbf16>
    %cst_107 = arith.constant dense<0.000000e+00> : vector<8x16xf32>
    %317 = tpu.matmul %315, %316, %cst_107 {dimension_numbers = #tpu.dot_dimension_numbers<[1], [0], [0], [1], [0, 0, 1, 1], [], []>} : vector<8x8xbf16>, vector<8x16xbf16>, vector<8x16xf32> -> vector<8x16xf32>
    %318 = vector.extract_strided_slice %242 {offsets = [8, 16], sizes = [8, 16], strides = [1, 1]} : vector<16x96xf32> to vector<8x16xf32>
    %319 = vector.extract_strided_slice %242 {offsets = [8, 48], sizes = [8, 16], strides = [1, 1]} : vector<16x96xf32> to vector<8x16xf32>
    %320 = vector.extract_strided_slice %242 {offsets = [8, 80], sizes = [8, 16], strides = [1, 1]} : vector<16x96xf32> to vector<8x16xf32>
    %321 = tpu.transpose %319, [1, 0] : vector<8x16xf32> -> vector<16x8xf32>
    %322 = arith.truncf %318 : vector<8x16xf32> to vector<8x16xbf16>
    %323 = arith.truncf %321 : vector<16x8xf32> to vector<16x8xbf16>
    %cst_108 = arith.constant dense<0.000000e+00> : vector<8x8xf32>
    %324 = tpu.matmul %322, %323, %cst_108 {dimension_numbers = #tpu.dot_dimension_numbers<[1], [0], [0], [1], [0, 0, 1, 1], [], []>} : vector<8x16xbf16>, vector<16x8xbf16>, vector<8x8xf32> -> vector<8x8xf32>
    %cst_109 = arith.constant 2.500000e-01 : f32
    %325 = vector.broadcast %cst_109 : f32 to vector<8x8xf32>
    %326 = arith.mulf %324, %325 : vector<8x8xf32>
    %327 = vector.broadcast %293 : vector<1x8xf32> to vector<8x8xf32>
    %328 = arith.addf %326, %327 : vector<8x8xf32>
    %cst_110 = arith.constant dense<0xFF800000> : vector<8xf32>
    %329 = vector.multi_reduction <maximumf>, %328, %cst_110 [1] : vector<8x8xf32> to vector<8xf32>
    %330 = vector.shape_cast %329 : vector<8xf32> to vector<8x1xf32>
    %331 = vector.broadcast %330 : vector<8x1xf32> to vector<8x8xf32>
    %332 = arith.subf %328, %331 : vector<8x8xf32>
    %333 = math.exp %332 : vector<8x8xf32>
    %cst_111 = arith.constant dense<0.000000e+00> : vector<8xf32>
    %334 = vector.multi_reduction <add>, %333, %cst_111 [1] : vector<8x8xf32> to vector<8xf32>
    %335 = vector.shape_cast %334 : vector<8xf32> to vector<8x1xf32>
    %336 = tpu.reciprocal %335 {approx = true} : vector<8x1xf32> -> vector<8x1xf32>
    %337 = vector.broadcast %336 : vector<8x1xf32> to vector<8x8xf32>
    %338 = arith.mulf %333, %337 : vector<8x8xf32>
    %339 = arith.truncf %338 : vector<8x8xf32> to vector<8x8xbf16>
    %340 = arith.truncf %320 : vector<8x16xf32> to vector<8x16xbf16>
    %cst_112 = arith.constant dense<0.000000e+00> : vector<8x16xf32>
    %341 = tpu.matmul %339, %340, %cst_112 {dimension_numbers = #tpu.dot_dimension_numbers<[1], [0], [0], [1], [0, 0, 1, 1], [], []>} : vector<8x8xbf16>, vector<8x16xbf16>, vector<8x16xf32> -> vector<8x16xf32>
    %342 = tpu.concatenate %317, %341 in 1 : vector<8x16xf32>, vector<8x16xf32> -> vector<8x32xf32>
    %343 = tpu.concatenate %292, %342 in 0 : vector<8x32xf32>, vector<8x32xf32> -> vector<16x32xf32>
    %c1_113 = arith.constant 1 : index
    %c0_114 = arith.constant 0 : index
    %c0_115 = arith.constant 0 : index
    %344 = vector.load %arg7[%c1_113, %c0_114, %c0_115] : memref<2x32x32xf32, #tpu.memory_space<vmem>>, vector<1x32x32xf32>
    %345 = vector.shape_cast %344 : vector<1x32x32xf32> to vector<32x32xf32>
    %346 = arith.truncf %343 : vector<16x32xf32> to vector<16x32xbf16>
    %347 = arith.truncf %345 : vector<32x32xf32> to vector<32x32xbf16>
    %cst_116 = arith.constant dense<0.000000e+00> : vector<16x32xf32>
    %348 = tpu.matmul %346, %347, %cst_116 {dimension_numbers = #tpu.dot_dimension_numbers<[1], [0], [0], [1], [0, 0, 1, 1], [], []>} : vector<16x32xbf16>, vector<32x32xbf16>, vector<16x32xf32> -> vector<16x32xf32>
    %349 = arith.addf %233, %348 : vector<16x32xf32>
    %c1_117 = arith.constant 1 : index
    %c0_118 = arith.constant 0 : index
    %c0_119 = arith.constant 0 : index
    %350 = vector.load %arg8[%c1_117, %c0_118, %c0_119] : memref<2x1x32xf32, #tpu.memory_space<vmem>>, vector<1x1x32xf32>
    %351 = vector.shape_cast %350 : vector<1x1x32xf32> to vector<1x32xf32>
    %352 = vector.broadcast %351 : vector<1x32xf32> to vector<16x32xf32>
    %353 = arith.addf %349, %352 : vector<16x32xf32>
    %c1_120 = arith.constant 1 : index
    %c0_121 = arith.constant 0 : index
    %c0_122 = arith.constant 0 : index
    %354 = vector.load %arg9[%c1_120, %c0_121, %c0_122] : memref<2x1x32xf32, #tpu.memory_space<vmem>>, vector<1x1x32xf32>
    %355 = vector.shape_cast %354 : vector<1x1x32xf32> to vector<1x32xf32>
    %c1_123 = arith.constant 1 : index
    %c0_124 = arith.constant 0 : index
    %c0_125 = arith.constant 0 : index
    %356 = vector.load %arg10[%c1_123, %c0_124, %c0_125] : memref<2x1x32xf32, #tpu.memory_space<vmem>>, vector<1x1x32xf32>
    %357 = vector.shape_cast %356 : vector<1x1x32xf32> to vector<1x32xf32>
    %cst_126 = arith.constant dense<0.000000e+00> : vector<16xf32>
    %358 = vector.multi_reduction <add>, %353, %cst_126 [1] : vector<16x32xf32> to vector<16xf32>
    %359 = vector.shape_cast %358 : vector<16xf32> to vector<16x1xf32>
    %cst_127 = arith.constant 3.200000e+01 : f32
    %360 = vector.broadcast %cst_127 : f32 to vector<16x1xf32>
    %361 = arith.divf %359, %360 : vector<16x1xf32>
    %362 = vector.broadcast %361 : vector<16x1xf32> to vector<16x32xf32>
    %363 = arith.subf %353, %362 : vector<16x32xf32>
    %364 = arith.mulf %363, %363 : vector<16x32xf32>
    %cst_128 = arith.constant dense<0.000000e+00> : vector<16xf32>
    %365 = vector.multi_reduction <add>, %364, %cst_128 [1] : vector<16x32xf32> to vector<16xf32>
    %366 = vector.shape_cast %365 : vector<16xf32> to vector<16x1xf32>
    %cst_129 = arith.constant 3.200000e+01 : f32
    %367 = vector.broadcast %cst_129 : f32 to vector<16x1xf32>
    %368 = arith.divf %366, %367 : vector<16x1xf32>
    %369 = vector.broadcast %361 : vector<16x1xf32> to vector<16x32xf32>
    %370 = arith.subf %353, %369 : vector<16x32xf32>
    %cst_130 = arith.constant 9.99999996E-13 : f32
    %371 = vector.broadcast %cst_130 : f32 to vector<16x1xf32>
    %372 = arith.addf %368, %371 : vector<16x1xf32>
    %373 = math.rsqrt %372 : vector<16x1xf32>
    %374 = vector.broadcast %373 : vector<16x1xf32> to vector<16x32xf32>
    %375 = arith.mulf %370, %374 : vector<16x32xf32>
    %376 = vector.broadcast %355 : vector<1x32xf32> to vector<16x32xf32>
    %377 = arith.mulf %375, %376 : vector<16x32xf32>
    %378 = vector.broadcast %357 : vector<1x32xf32> to vector<16x32xf32>
    %379 = arith.addf %377, %378 : vector<16x32xf32>
    %c1_131 = arith.constant 1 : index
    %c0_132 = arith.constant 0 : index
    %c0_133 = arith.constant 0 : index
    %380 = vector.load %arg11[%c1_131, %c0_132, %c0_133] : memref<2x32x64xf32, #tpu.memory_space<vmem>>, vector<1x32x64xf32>
    %381 = vector.shape_cast %380 : vector<1x32x64xf32> to vector<32x64xf32>
    %382 = arith.truncf %379 : vector<16x32xf32> to vector<16x32xbf16>
    %383 = arith.truncf %381 : vector<32x64xf32> to vector<32x64xbf16>
    %cst_134 = arith.constant dense<0.000000e+00> : vector<16x64xf32>
    %384 = tpu.matmul %382, %383, %cst_134 {dimension_numbers = #tpu.dot_dimension_numbers<[1], [0], [0], [1], [0, 0, 1, 1], [], []>} : vector<16x32xbf16>, vector<32x64xbf16>, vector<16x64xf32> -> vector<16x64xf32>
    %c1_135 = arith.constant 1 : index
    %c0_136 = arith.constant 0 : index
    %c0_137 = arith.constant 0 : index
    %385 = vector.load %arg12[%c1_135, %c0_136, %c0_137] : memref<2x1x64xf32, #tpu.memory_space<vmem>>, vector<1x1x64xf32>
    %386 = vector.shape_cast %385 : vector<1x1x64xf32> to vector<1x64xf32>
    %387 = vector.broadcast %386 : vector<1x64xf32> to vector<16x64xf32>
    %388 = arith.addf %384, %387 : vector<16x64xf32>
    %389 = arith.mulf %388, %388 : vector<16x64xf32>
    %390 = arith.mulf %388, %389 : vector<16x64xf32>
    %cst_138 = arith.constant 4.471500e-02 : f32
    %391 = vector.broadcast %cst_138 : f32 to vector<16x64xf32>
    %392 = arith.mulf %391, %390 : vector<16x64xf32>
    %393 = arith.addf %388, %392 : vector<16x64xf32>
    %cst_139 = arith.constant 0.797884583 : f32
    %394 = vector.broadcast %cst_139 : f32 to vector<16x64xf32>
    %395 = arith.mulf %394, %393 : vector<16x64xf32>
    %396 = math.tanh %395 : vector<16x64xf32>
    %cst_140 = arith.constant 1.000000e+00 : f32
    %397 = vector.broadcast %cst_140 : f32 to vector<16x64xf32>
    %398 = arith.addf %397, %396 : vector<16x64xf32>
    %cst_141 = arith.constant 5.000000e-01 : f32
    %399 = vector.broadcast %cst_141 : f32 to vector<16x64xf32>
    %400 = arith.mulf %399, %398 : vector<16x64xf32>
    %401 = arith.mulf %388, %400 : vector<16x64xf32>
    %c1_142 = arith.constant 1 : index
    %c0_143 = arith.constant 0 : index
    %c0_144 = arith.constant 0 : index
    %402 = vector.load %arg13[%c1_142, %c0_143, %c0_144] : memref<2x64x32xf32, #tpu.memory_space<vmem>>, vector<1x64x32xf32>
    %403 = vector.shape_cast %402 : vector<1x64x32xf32> to vector<64x32xf32>
    %404 = arith.truncf %401 : vector<16x64xf32> to vector<16x64xbf16>
    %405 = arith.truncf %403 : vector<64x32xf32> to vector<64x32xbf16>
    %cst_145 = arith.constant dense<0.000000e+00> : vector<16x32xf32>
    %406 = tpu.matmul %404, %405, %cst_145 {dimension_numbers = #tpu.dot_dimension_numbers<[1], [0], [0], [1], [0, 0, 1, 1], [], []>} : vector<16x64xbf16>, vector<64x32xbf16>, vector<16x32xf32> -> vector<16x32xf32>
    %407 = arith.addf %379, %406 : vector<16x32xf32>
    %c1_146 = arith.constant 1 : index
    %c0_147 = arith.constant 0 : index
    %c0_148 = arith.constant 0 : index
    %408 = vector.load %arg14[%c1_146, %c0_147, %c0_148] : memref<2x1x32xf32, #tpu.memory_space<vmem>>, vector<1x1x32xf32>
    %409 = vector.shape_cast %408 : vector<1x1x32xf32> to vector<1x32xf32>
    %410 = vector.broadcast %409 : vector<1x32xf32> to vector<16x32xf32>
    %411 = arith.addf %407, %410 : vector<16x32xf32>
    %c1_149 = arith.constant 1 : index
    %c0_150 = arith.constant 0 : index
    %c0_151 = arith.constant 0 : index
    %412 = vector.load %arg15[%c1_149, %c0_150, %c0_151] : memref<2x1x32xf32, #tpu.memory_space<vmem>>, vector<1x1x32xf32>
    %413 = vector.shape_cast %412 : vector<1x1x32xf32> to vector<1x32xf32>
    %c1_152 = arith.constant 1 : index
    %c0_153 = arith.constant 0 : index
    %c0_154 = arith.constant 0 : index
    %414 = vector.load %arg16[%c1_152, %c0_153, %c0_154] : memref<2x1x32xf32, #tpu.memory_space<vmem>>, vector<1x1x32xf32>
    %415 = vector.shape_cast %414 : vector<1x1x32xf32> to vector<1x32xf32>
    %cst_155 = arith.constant dense<0.000000e+00> : vector<16xf32>
    %416 = vector.multi_reduction <add>, %411, %cst_155 [1] : vector<16x32xf32> to vector<16xf32>
    %417 = vector.shape_cast %416 : vector<16xf32> to vector<16x1xf32>
    %cst_156 = arith.constant 3.200000e+01 : f32
    %418 = vector.broadcast %cst_156 : f32 to vector<16x1xf32>
    %419 = arith.divf %417, %418 : vector<16x1xf32>
    %420 = vector.broadcast %419 : vector<16x1xf32> to vector<16x32xf32>
    %421 = arith.subf %411, %420 : vector<16x32xf32>
    %422 = arith.mulf %421, %421 : vector<16x32xf32>
    %cst_157 = arith.constant dense<0.000000e+00> : vector<16xf32>
    %423 = vector.multi_reduction <add>, %422, %cst_157 [1] : vector<16x32xf32> to vector<16xf32>
    %424 = vector.shape_cast %423 : vector<16xf32> to vector<16x1xf32>
    %cst_158 = arith.constant 3.200000e+01 : f32
    %425 = vector.broadcast %cst_158 : f32 to vector<16x1xf32>
    %426 = arith.divf %424, %425 : vector<16x1xf32>
    %427 = vector.broadcast %419 : vector<16x1xf32> to vector<16x32xf32>
    %428 = arith.subf %411, %427 : vector<16x32xf32>
    %cst_159 = arith.constant 9.99999996E-13 : f32
    %429 = vector.broadcast %cst_159 : f32 to vector<16x1xf32>
    %430 = arith.addf %426, %429 : vector<16x1xf32>
    %431 = math.rsqrt %430 : vector<16x1xf32>
    %432 = vector.broadcast %431 : vector<16x1xf32> to vector<16x32xf32>
    %433 = arith.mulf %428, %432 : vector<16x32xf32>
    %434 = vector.broadcast %413 : vector<1x32xf32> to vector<16x32xf32>
    %435 = arith.mulf %433, %434 : vector<16x32xf32>
    %436 = vector.broadcast %415 : vector<1x32xf32> to vector<16x32xf32>
    %437 = arith.addf %435, %436 : vector<16x32xf32>
    %c0_160 = arith.constant 0 : index
    %c0_161 = arith.constant 0 : index
    %438 = vector.load %arg17[%c0_160, %c0_161] : memref<16x32xf32, #tpu.memory_space<vmem>>, vector<16x32xf32>
    tpu.vector_store %arg17[%c0_160, %c0_161], %437 {strides = array<i32>} : memref<16x32xf32, #tpu.memory_space<vmem>>, vector<16x32xf32>,
    return
  }
  func.func @transform_0(%arg0: i32) -> (i32, i32) {
    %c0_i32 = arith.constant 0 : i32
    %c0_i32_0 = arith.constant 0 : i32
    %c0_i32_1 = arith.constant 0 : i32
    return %c0_i32, %c0_i32_0 : i32, i32
  }
  func.func @transform_1(%arg0: i32) -> (i32, i32) {
    %c0_i32 = arith.constant 0 : i32
    %c0_i32_0 = arith.constant 0 : i32
    %c0_i32_1 = arith.constant 0 : i32
    return %c0_i32, %c0_i32_0 : i32, i32
  }
  func.func @transform_2(%arg0: i32) -> (i32, i32) {
    %c0_i32 = arith.constant 0 : i32
    %c0_i32_0 = arith.constant 0 : i32
    %c0_i32_1 = arith.constant 0 : i32
    return %c0_i32, %c0_i32_0 : i32, i32
  }
  func.func @transform_3(%arg0: i32) -> (i32, i32) {
    %c0_i32 = arith.constant 0 : i32
    %c0_i32_0 = arith.constant 0 : i32
    %c0_i32_1 = arith.constant 0 : i32
    return %c0_i32, %c0_i32_0 : i32, i32
  }
  func.func @transform_4(%arg0: i32) -> (i32, i32, i32) {
    %c0_i32 = arith.constant 0 : i32
    %c0_i32_0 = arith.constant 0 : i32
    %c0_i32_1 = arith.constant 0 : i32
    %c0_i32_2 = arith.constant 0 : i32
    return %c0_i32, %c0_i32_0, %c0_i32_1 : i32, i32, i32
  }
  func.func @transform_5(%arg0: i32) -> (i32, i32, i32) {
    %c0_i32 = arith.constant 0 : i32
    %c0_i32_0 = arith.constant 0 : i32
    %c0_i32_1 = arith.constant 0 : i32
    %c0_i32_2 = arith.constant 0 : i32
    return %c0_i32, %c0_i32_0, %c0_i32_1 : i32, i32, i32
  }
  func.func @transform_6(%arg0: i32) -> (i32, i32, i32) {
    %c0_i32 = arith.constant 0 : i32
    %c0_i32_0 = arith.constant 0 : i32
    %c0_i32_1 = arith.constant 0 : i32
    %c0_i32_2 = arith.constant 0 : i32
    return %c0_i32, %c0_i32_0, %c0_i32_1 : i32, i32, i32
  }
  func.func @transform_7(%arg0: i32) -> (i32, i32, i32) {
    %c0_i32 = arith.constant 0 : i32
    %c0_i32_0 = arith.constant 0 : i32
    %c0_i32_1 = arith.constant 0 : i32
    %c0_i32_2 = arith.constant 0 : i32
    return %c0_i32, %c0_i32_0, %c0_i32_1 : i32, i32, i32
  }
  func.func @transform_8(%arg0: i32) -> (i32, i32, i32) {
    %c0_i32 = arith.constant 0 : i32
    %c0_i32_0 = arith.constant 0 : i32
    %c0_i32_1 = arith.constant 0 : i32
    %c0_i32_2 = arith.constant 0 : i32
    return %c0_i32, %c0_i32_0, %c0_i32_1 : i32, i32, i32
  }
  func.func @transform_9(%arg0: i32) -> (i32, i32, i32) {
    %c0_i32 = arith.constant 0 : i32
    %c0_i32_0 = arith.constant 0 : i32
    %c0_i32_1 = arith.constant 0 : i32
    %c0_i32_2 = arith.constant 0 : i32
    return %c0_i32, %c0_i32_0, %c0_i32_1 : i32, i32, i32
  }
  func.func @transform_10(%arg0: i32) -> (i32, i32, i32) {
    %c0_i32 = arith.constant 0 : i32
    %c0_i32_0 = arith.constant 0 : i32
    %c0_i32_1 = arith.constant 0 : i32
    %c0_i32_2 = arith.constant 0 : i32
    return %c0_i32, %c0_i32_0, %c0_i32_1 : i32, i32, i32
  }
  func.func @transform_11(%arg0: i32) -> (i32, i32, i32) {
    %c0_i32 = arith.constant 0 : i32
    %c0_i32_0 = arith.constant 0 : i32
    %c0_i32_1 = arith.constant 0 : i32
    %c0_i32_2 = arith.constant 0 : i32
    return %c0_i32, %c0_i32_0, %c0_i32_1 : i32, i32, i32
  }
  func.func @transform_12(%arg0: i32) -> (i32, i32, i32) {
    %c0_i32 = arith.constant 0 : i32
    %c0_i32_0 = arith.constant 0 : i32
    %c0_i32_1 = arith.constant 0 : i32
    %c0_i32_2 = arith.constant 0 : i32
    return %c0_i32, %c0_i32_0, %c0_i32_1 : i32, i32, i32
  }
  func.func @transform_13(%arg0: i32) -> (i32, i32, i32) {
    %c0_i32 = arith.constant 0 : i32
    %c0_i32_0 = arith.constant 0 : i32
    %c0_i32_1 = arith.constant 0 : i32
    %c0_i32_2 = arith.constant 0 : i32
    return %c0_i32, %c0_i32_0, %c0_i32_1 : i32, i32, i32
  }
  func.func @transform_14(%arg0: i32) -> (i32, i32, i32) {
    %c0_i32 = arith.constant 0 : i32
    %c0_i32_0 = arith.constant 0 : i32
    %c0_i32_1 = arith.constant 0 : i32
    %c0_i32_2 = arith.constant 0 : i32
    return %c0_i32, %c0_i32_0, %c0_i32_1 : i32, i32, i32
  }
  func.func @transform_15(%arg0: i32) -> (i32, i32, i32) {
    %c0_i32 = arith.constant 0 : i32
    %c0_i32_0 = arith.constant 0 : i32
    %c0_i32_1 = arith.constant 0 : i32
    %c0_i32_2 = arith.constant 0 : i32
    return %c0_i32, %c0_i32_0, %c0_i32_1 : i32, i32, i32
  }
  func.func @transform_16(%arg0: i32) -> (i32, i32) {
    %c0_i32 = arith.constant 0 : i32
    %c0_i32_0 = arith.constant 0 : i32
    %c0_i32_1 = arith.constant 0 : i32
    return %c0_i32, %c0_i32_0 : i32, i32
  }
}

module attributes {stable_mosaic.version = 11 : i64} {
  func.func @_bilstm_cls_kernel(%arg0: i32, %arg1: memref<6x2x32xf32, #tpu.memory_space<vmem>>, %arg2: memref<2x64x128xf32, #tpu.memory_space<vmem>>, %arg3: memref<2x32x128xf32, #tpu.memory_space<vmem>>, %arg4: memref<2x1x128xf32, #tpu.memory_space<vmem>>, %arg5: memref<32x128xf32, #tpu.memory_space<vmem>>, %arg6: memref<1x128xf32, #tpu.memory_space<vmem>>, %arg7: memref<12x128xf32, #tpu.memory_space<vmem>>) attributes {dimension_semantics = [#tpu.dimension_semantics<arbitrary>], iteration_bounds = array<i64: 1>, scalar_prefetch = 0 : i64, scratch_operands = 0 : i64, tpu.core_type = #tpu.core_type<tc>, window_params = [{pipeline_mode = #tpu.pipeline_mode<synchronous>, transform_indices = @transform_0, window_bounds = array<i64: 6, 2, 32>}, {pipeline_mode = #tpu.pipeline_mode<synchronous>, transform_indices = @transform_1, window_bounds = array<i64: 2, 64, 128>}, {pipeline_mode = #tpu.pipeline_mode<synchronous>, transform_indices = @transform_2, window_bounds = array<i64: 2, 32, 128>}, {pipeline_mode = #tpu.pipeline_mode<synchronous>, transform_indices = @transform_3, window_bounds = array<i64: 2, 1, 128>}, {pipeline_mode = #tpu.pipeline_mode<synchronous>, transform_indices = @transform_4, window_bounds = array<i64: 32, 128>}, {pipeline_mode = #tpu.pipeline_mode<synchronous>, transform_indices = @transform_5, window_bounds = array<i64: 1, 128>}, {pipeline_mode = #tpu.pipeline_mode<synchronous>, transform_indices = @transform_6, window_bounds = array<i64: 12, 128>}]} {
    %c0 = arith.constant 0 : index
    %c0_0 = arith.constant 0 : index
    %c0_1 = arith.constant 0 : index
    %0 = vector.load %arg1[%c0, %c0_0, %c0_1] : memref<6x2x32xf32, #tpu.memory_space<vmem>>, vector<1x2x32xf32>
    %1 = vector.shape_cast %0 : vector<1x2x32xf32> to vector<2x32xf32>
    %c1 = arith.constant 1 : index
    %c0_2 = arith.constant 0 : index
    %c0_3 = arith.constant 0 : index
    %2 = vector.load %arg1[%c1, %c0_2, %c0_3] : memref<6x2x32xf32, #tpu.memory_space<vmem>>, vector<1x2x32xf32>
    %3 = vector.shape_cast %2 : vector<1x2x32xf32> to vector<2x32xf32>
    %c2 = arith.constant 2 : index
    %c0_4 = arith.constant 0 : index
    %c0_5 = arith.constant 0 : index
    %4 = vector.load %arg1[%c2, %c0_4, %c0_5] : memref<6x2x32xf32, #tpu.memory_space<vmem>>, vector<1x2x32xf32>
    %5 = vector.shape_cast %4 : vector<1x2x32xf32> to vector<2x32xf32>
    %c3 = arith.constant 3 : index
    %c0_6 = arith.constant 0 : index
    %c0_7 = arith.constant 0 : index
    %6 = vector.load %arg1[%c3, %c0_6, %c0_7] : memref<6x2x32xf32, #tpu.memory_space<vmem>>, vector<1x2x32xf32>
    %7 = vector.shape_cast %6 : vector<1x2x32xf32> to vector<2x32xf32>
    %c4 = arith.constant 4 : index
    %c0_8 = arith.constant 0 : index
    %c0_9 = arith.constant 0 : index
    %8 = vector.load %arg1[%c4, %c0_8, %c0_9] : memref<6x2x32xf32, #tpu.memory_space<vmem>>, vector<1x2x32xf32>
    %9 = vector.shape_cast %8 : vector<1x2x32xf32> to vector<2x32xf32>
    %c5 = arith.constant 5 : index
    %c0_10 = arith.constant 0 : index
    %c0_11 = arith.constant 0 : index
    %10 = vector.load %arg1[%c5, %c0_10, %c0_11] : memref<6x2x32xf32, #tpu.memory_space<vmem>>, vector<1x2x32xf32>
    %11 = vector.shape_cast %10 : vector<1x2x32xf32> to vector<2x32xf32>
    %c0_12 = arith.constant 0 : index
    %c0_13 = arith.constant 0 : index
    %c0_14 = arith.constant 0 : index
    %12 = vector.load %arg2[%c0_12, %c0_13, %c0_14] : memref<2x64x128xf32, #tpu.memory_space<vmem>>, vector<1x64x128xf32>
    %13 = vector.shape_cast %12 : vector<1x64x128xf32> to vector<64x128xf32>
    %14 = arith.truncf %13 : vector<64x128xf32> to vector<64x128xbf16>
    %c0_15 = arith.constant 0 : index
    %c0_16 = arith.constant 0 : index
    %c0_17 = arith.constant 0 : index
    %15 = vector.load %arg3[%c0_15, %c0_16, %c0_17] : memref<2x32x128xf32, #tpu.memory_space<vmem>>, vector<1x32x128xf32>
    %16 = vector.shape_cast %15 : vector<1x32x128xf32> to vector<32x128xf32>
    %17 = arith.truncf %16 : vector<32x128xf32> to vector<32x128xbf16>
    %c0_18 = arith.constant 0 : index
    %c0_19 = arith.constant 0 : index
    %c0_20 = arith.constant 0 : index
    %18 = vector.load %arg4[%c0_18, %c0_19, %c0_20] : memref<2x1x128xf32, #tpu.memory_space<vmem>>, vector<1x1x128xf32>
    %19 = vector.shape_cast %18 : vector<1x1x128xf32> to vector<1x128xf32>
    %cst = arith.constant 0.000000e+00 : f32
    %20 = vector.broadcast %cst : f32 to vector<2x32xf32>
    %cst_21 = arith.constant 0.000000e+00 : f32
    %21 = vector.broadcast %cst_21 : f32 to vector<2x32xf32>
    %22 = tpu.concatenate %1, %11 in 1 : vector<2x32xf32>, vector<2x32xf32> -> vector<2x64xf32>
    %23 = arith.truncf %22 : vector<2x64xf32> to vector<2x64xbf16>
    %cst_22 = arith.constant dense<0.000000e+00> : vector<2x128xf32>
    %24 = tpu.matmul %23, %14, %cst_22 {dimension_numbers = #tpu.dot_dimension_numbers<[1], [0], [0], [1], [0, 0, 1, 1], [], []>} : vector<2x64xbf16>, vector<64x128xbf16>, vector<2x128xf32> -> vector<2x128xf32>
    %25 = arith.truncf %20 : vector<2x32xf32> to vector<2x32xbf16>
    %cst_23 = arith.constant dense<0.000000e+00> : vector<2x128xf32>
    %26 = tpu.matmul %25, %17, %cst_23 {dimension_numbers = #tpu.dot_dimension_numbers<[1], [0], [0], [1], [0, 0, 1, 1], [], []>} : vector<2x32xbf16>, vector<32x128xbf16>, vector<2x128xf32> -> vector<2x128xf32>
    %27 = arith.addf %24, %26 : vector<2x128xf32>
    %28 = vector.broadcast %19 : vector<1x128xf32> to vector<2x128xf32>
    %29 = arith.addf %27, %28 : vector<2x128xf32>
    %30 = vector.extract_strided_slice %29 {offsets = [0, 0], sizes = [2, 32], strides = [1, 1]} : vector<2x128xf32> to vector<2x32xf32>
    %31 = arith.negf %30 : vector<2x32xf32>
    %32 = math.exp %31 : vector<2x32xf32>
    %cst_24 = arith.constant 1.000000e+00 : f32
    %33 = vector.broadcast %cst_24 : f32 to vector<2x32xf32>
    %34 = arith.addf %33, %32 : vector<2x32xf32>
    %35 = arith.divf %33, %34 : vector<2x32xf32>
    %36 = vector.extract_strided_slice %29 {offsets = [0, 32], sizes = [2, 32], strides = [1, 1]} : vector<2x128xf32> to vector<2x32xf32>
    %37 = arith.negf %36 : vector<2x32xf32>
    %38 = math.exp %37 : vector<2x32xf32>
    %cst_25 = arith.constant 1.000000e+00 : f32
    %39 = vector.broadcast %cst_25 : f32 to vector<2x32xf32>
    %40 = arith.addf %39, %38 : vector<2x32xf32>
    %41 = arith.divf %39, %40 : vector<2x32xf32>
    %42 = vector.extract_strided_slice %29 {offsets = [0, 64], sizes = [2, 32], strides = [1, 1]} : vector<2x128xf32> to vector<2x32xf32>
    %43 = math.tanh %42 : vector<2x32xf32>
    %44 = vector.extract_strided_slice %29 {offsets = [0, 96], sizes = [2, 32], strides = [1, 1]} : vector<2x128xf32> to vector<2x32xf32>
    %45 = arith.negf %44 : vector<2x32xf32>
    %46 = math.exp %45 : vector<2x32xf32>
    %cst_26 = arith.constant 1.000000e+00 : f32
    %47 = vector.broadcast %cst_26 : f32 to vector<2x32xf32>
    %48 = arith.addf %47, %46 : vector<2x32xf32>
    %49 = arith.divf %47, %48 : vector<2x32xf32>
    %50 = arith.mulf %41, %21 : vector<2x32xf32>
    %51 = arith.mulf %35, %43 : vector<2x32xf32>
    %52 = arith.addf %50, %51 : vector<2x32xf32>
    %53 = math.tanh %52 : vector<2x32xf32>
    %54 = arith.mulf %49, %53 : vector<2x32xf32>
    %55 = vector.extract_strided_slice %54 {offsets = [0, 0], sizes = [2, 16], strides = [1, 1]} : vector<2x32xf32> to vector<2x16xf32>
    %56 = vector.extract_strided_slice %54 {offsets = [0, 16], sizes = [2, 16], strides = [1, 1]} : vector<2x32xf32> to vector<2x16xf32>
    %57 = tpu.concatenate %3, %9 in 1 : vector<2x32xf32>, vector<2x32xf32> -> vector<2x64xf32>
    %58 = arith.truncf %57 : vector<2x64xf32> to vector<2x64xbf16>
    %cst_27 = arith.constant dense<0.000000e+00> : vector<2x128xf32>
    %59 = tpu.matmul %58, %14, %cst_27 {dimension_numbers = #tpu.dot_dimension_numbers<[1], [0], [0], [1], [0, 0, 1, 1], [], []>} : vector<2x64xbf16>, vector<64x128xbf16>, vector<2x128xf32> -> vector<2x128xf32>
    %60 = arith.truncf %54 : vector<2x32xf32> to vector<2x32xbf16>
    %cst_28 = arith.constant dense<0.000000e+00> : vector<2x128xf32>
    %61 = tpu.matmul %60, %17, %cst_28 {dimension_numbers = #tpu.dot_dimension_numbers<[1], [0], [0], [1], [0, 0, 1, 1], [], []>} : vector<2x32xbf16>, vector<32x128xbf16>, vector<2x128xf32> -> vector<2x128xf32>
    %62 = arith.addf %59, %61 : vector<2x128xf32>
    %63 = vector.broadcast %19 : vector<1x128xf32> to vector<2x128xf32>
    %64 = arith.addf %62, %63 : vector<2x128xf32>
    %65 = vector.extract_strided_slice %64 {offsets = [0, 0], sizes = [2, 32], strides = [1, 1]} : vector<2x128xf32> to vector<2x32xf32>
    %66 = arith.negf %65 : vector<2x32xf32>
    %67 = math.exp %66 : vector<2x32xf32>
    %cst_29 = arith.constant 1.000000e+00 : f32
    %68 = vector.broadcast %cst_29 : f32 to vector<2x32xf32>
    %69 = arith.addf %68, %67 : vector<2x32xf32>
    %70 = arith.divf %68, %69 : vector<2x32xf32>
    %71 = vector.extract_strided_slice %64 {offsets = [0, 32], sizes = [2, 32], strides = [1, 1]} : vector<2x128xf32> to vector<2x32xf32>
    %72 = arith.negf %71 : vector<2x32xf32>
    %73 = math.exp %72 : vector<2x32xf32>
    %cst_30 = arith.constant 1.000000e+00 : f32
    %74 = vector.broadcast %cst_30 : f32 to vector<2x32xf32>
    %75 = arith.addf %74, %73 : vector<2x32xf32>
    %76 = arith.divf %74, %75 : vector<2x32xf32>
    %77 = vector.extract_strided_slice %64 {offsets = [0, 64], sizes = [2, 32], strides = [1, 1]} : vector<2x128xf32> to vector<2x32xf32>
    %78 = math.tanh %77 : vector<2x32xf32>
    %79 = vector.extract_strided_slice %64 {offsets = [0, 96], sizes = [2, 32], strides = [1, 1]} : vector<2x128xf32> to vector<2x32xf32>
    %80 = arith.negf %79 : vector<2x32xf32>
    %81 = math.exp %80 : vector<2x32xf32>
    %cst_31 = arith.constant 1.000000e+00 : f32
    %82 = vector.broadcast %cst_31 : f32 to vector<2x32xf32>
    %83 = arith.addf %82, %81 : vector<2x32xf32>
    %84 = arith.divf %82, %83 : vector<2x32xf32>
    %85 = arith.mulf %76, %52 : vector<2x32xf32>
    %86 = arith.mulf %70, %78 : vector<2x32xf32>
    %87 = arith.addf %85, %86 : vector<2x32xf32>
    %88 = math.tanh %87 : vector<2x32xf32>
    %89 = arith.mulf %84, %88 : vector<2x32xf32>
    %90 = vector.extract_strided_slice %89 {offsets = [0, 0], sizes = [2, 16], strides = [1, 1]} : vector<2x32xf32> to vector<2x16xf32>
    %91 = vector.extract_strided_slice %89 {offsets = [0, 16], sizes = [2, 16], strides = [1, 1]} : vector<2x32xf32> to vector<2x16xf32>
    %92 = tpu.concatenate %5, %7 in 1 : vector<2x32xf32>, vector<2x32xf32> -> vector<2x64xf32>
    %93 = arith.truncf %92 : vector<2x64xf32> to vector<2x64xbf16>
    %cst_32 = arith.constant dense<0.000000e+00> : vector<2x128xf32>
    %94 = tpu.matmul %93, %14, %cst_32 {dimension_numbers = #tpu.dot_dimension_numbers<[1], [0], [0], [1], [0, 0, 1, 1], [], []>} : vector<2x64xbf16>, vector<64x128xbf16>, vector<2x128xf32> -> vector<2x128xf32>
    %95 = arith.truncf %89 : vector<2x32xf32> to vector<2x32xbf16>
    %cst_33 = arith.constant dense<0.000000e+00> : vector<2x128xf32>
    %96 = tpu.matmul %95, %17, %cst_33 {dimension_numbers = #tpu.dot_dimension_numbers<[1], [0], [0], [1], [0, 0, 1, 1], [], []>} : vector<2x32xbf16>, vector<32x128xbf16>, vector<2x128xf32> -> vector<2x128xf32>
    %97 = arith.addf %94, %96 : vector<2x128xf32>
    %98 = vector.broadcast %19 : vector<1x128xf32> to vector<2x128xf32>
    %99 = arith.addf %97, %98 : vector<2x128xf32>
    %100 = vector.extract_strided_slice %99 {offsets = [0, 0], sizes = [2, 32], strides = [1, 1]} : vector<2x128xf32> to vector<2x32xf32>
    %101 = arith.negf %100 : vector<2x32xf32>
    %102 = math.exp %101 : vector<2x32xf32>
    %cst_34 = arith.constant 1.000000e+00 : f32
    %103 = vector.broadcast %cst_34 : f32 to vector<2x32xf32>
    %104 = arith.addf %103, %102 : vector<2x32xf32>
    %105 = arith.divf %103, %104 : vector<2x32xf32>
    %106 = vector.extract_strided_slice %99 {offsets = [0, 32], sizes = [2, 32], strides = [1, 1]} : vector<2x128xf32> to vector<2x32xf32>
    %107 = arith.negf %106 : vector<2x32xf32>
    %108 = math.exp %107 : vector<2x32xf32>
    %cst_35 = arith.constant 1.000000e+00 : f32
    %109 = vector.broadcast %cst_35 : f32 to vector<2x32xf32>
    %110 = arith.addf %109, %108 : vector<2x32xf32>
    %111 = arith.divf %109, %110 : vector<2x32xf32>
    %112 = vector.extract_strided_slice %99 {offsets = [0, 64], sizes = [2, 32], strides = [1, 1]} : vector<2x128xf32> to vector<2x32xf32>
    %113 = math.tanh %112 : vector<2x32xf32>
    %114 = vector.extract_strided_slice %99 {offsets = [0, 96], sizes = [2, 32], strides = [1, 1]} : vector<2x128xf32> to vector<2x32xf32>
    %115 = arith.negf %114 : vector<2x32xf32>
    %116 = math.exp %115 : vector<2x32xf32>
    %cst_36 = arith.constant 1.000000e+00 : f32
    %117 = vector.broadcast %cst_36 : f32 to vector<2x32xf32>
    %118 = arith.addf %117, %116 : vector<2x32xf32>
    %119 = arith.divf %117, %118 : vector<2x32xf32>
    %120 = arith.mulf %111, %87 : vector<2x32xf32>
    %121 = arith.mulf %105, %113 : vector<2x32xf32>
    %122 = arith.addf %120, %121 : vector<2x32xf32>
    %123 = math.tanh %122 : vector<2x32xf32>
    %124 = arith.mulf %119, %123 : vector<2x32xf32>
    %125 = vector.extract_strided_slice %124 {offsets = [0, 0], sizes = [2, 16], strides = [1, 1]} : vector<2x32xf32> to vector<2x16xf32>
    %126 = vector.extract_strided_slice %124 {offsets = [0, 16], sizes = [2, 16], strides = [1, 1]} : vector<2x32xf32> to vector<2x16xf32>
    %127 = tpu.concatenate %7, %5 in 1 : vector<2x32xf32>, vector<2x32xf32> -> vector<2x64xf32>
    %128 = arith.truncf %127 : vector<2x64xf32> to vector<2x64xbf16>
    %cst_37 = arith.constant dense<0.000000e+00> : vector<2x128xf32>
    %129 = tpu.matmul %128, %14, %cst_37 {dimension_numbers = #tpu.dot_dimension_numbers<[1], [0], [0], [1], [0, 0, 1, 1], [], []>} : vector<2x64xbf16>, vector<64x128xbf16>, vector<2x128xf32> -> vector<2x128xf32>
    %130 = arith.truncf %124 : vector<2x32xf32> to vector<2x32xbf16>
    %cst_38 = arith.constant dense<0.000000e+00> : vector<2x128xf32>
    %131 = tpu.matmul %130, %17, %cst_38 {dimension_numbers = #tpu.dot_dimension_numbers<[1], [0], [0], [1], [0, 0, 1, 1], [], []>} : vector<2x32xbf16>, vector<32x128xbf16>, vector<2x128xf32> -> vector<2x128xf32>
    %132 = arith.addf %129, %131 : vector<2x128xf32>
    %133 = vector.broadcast %19 : vector<1x128xf32> to vector<2x128xf32>
    %134 = arith.addf %132, %133 : vector<2x128xf32>
    %135 = vector.extract_strided_slice %134 {offsets = [0, 0], sizes = [2, 32], strides = [1, 1]} : vector<2x128xf32> to vector<2x32xf32>
    %136 = arith.negf %135 : vector<2x32xf32>
    %137 = math.exp %136 : vector<2x32xf32>
    %cst_39 = arith.constant 1.000000e+00 : f32
    %138 = vector.broadcast %cst_39 : f32 to vector<2x32xf32>
    %139 = arith.addf %138, %137 : vector<2x32xf32>
    %140 = arith.divf %138, %139 : vector<2x32xf32>
    %141 = vector.extract_strided_slice %134 {offsets = [0, 32], sizes = [2, 32], strides = [1, 1]} : vector<2x128xf32> to vector<2x32xf32>
    %142 = arith.negf %141 : vector<2x32xf32>
    %143 = math.exp %142 : vector<2x32xf32>
    %cst_40 = arith.constant 1.000000e+00 : f32
    %144 = vector.broadcast %cst_40 : f32 to vector<2x32xf32>
    %145 = arith.addf %144, %143 : vector<2x32xf32>
    %146 = arith.divf %144, %145 : vector<2x32xf32>
    %147 = vector.extract_strided_slice %134 {offsets = [0, 64], sizes = [2, 32], strides = [1, 1]} : vector<2x128xf32> to vector<2x32xf32>
    %148 = math.tanh %147 : vector<2x32xf32>
    %149 = vector.extract_strided_slice %134 {offsets = [0, 96], sizes = [2, 32], strides = [1, 1]} : vector<2x128xf32> to vector<2x32xf32>
    %150 = arith.negf %149 : vector<2x32xf32>
    %151 = math.exp %150 : vector<2x32xf32>
    %cst_41 = arith.constant 1.000000e+00 : f32
    %152 = vector.broadcast %cst_41 : f32 to vector<2x32xf32>
    %153 = arith.addf %152, %151 : vector<2x32xf32>
    %154 = arith.divf %152, %153 : vector<2x32xf32>
    %155 = arith.mulf %146, %122 : vector<2x32xf32>
    %156 = arith.mulf %140, %148 : vector<2x32xf32>
    %157 = arith.addf %155, %156 : vector<2x32xf32>
    %158 = math.tanh %157 : vector<2x32xf32>
    %159 = arith.mulf %154, %158 : vector<2x32xf32>
    %160 = vector.extract_strided_slice %159 {offsets = [0, 0], sizes = [2, 16], strides = [1, 1]} : vector<2x32xf32> to vector<2x16xf32>
    %161 = vector.extract_strided_slice %159 {offsets = [0, 16], sizes = [2, 16], strides = [1, 1]} : vector<2x32xf32> to vector<2x16xf32>
    %162 = tpu.concatenate %9, %3 in 1 : vector<2x32xf32>, vector<2x32xf32> -> vector<2x64xf32>
    %163 = arith.truncf %162 : vector<2x64xf32> to vector<2x64xbf16>
    %cst_42 = arith.constant dense<0.000000e+00> : vector<2x128xf32>
    %164 = tpu.matmul %163, %14, %cst_42 {dimension_numbers = #tpu.dot_dimension_numbers<[1], [0], [0], [1], [0, 0, 1, 1], [], []>} : vector<2x64xbf16>, vector<64x128xbf16>, vector<2x128xf32> -> vector<2x128xf32>
    %165 = arith.truncf %159 : vector<2x32xf32> to vector<2x32xbf16>
    %cst_43 = arith.constant dense<0.000000e+00> : vector<2x128xf32>
    %166 = tpu.matmul %165, %17, %cst_43 {dimension_numbers = #tpu.dot_dimension_numbers<[1], [0], [0], [1], [0, 0, 1, 1], [], []>} : vector<2x32xbf16>, vector<32x128xbf16>, vector<2x128xf32> -> vector<2x128xf32>
    %167 = arith.addf %164, %166 : vector<2x128xf32>
    %168 = vector.broadcast %19 : vector<1x128xf32> to vector<2x128xf32>
    %169 = arith.addf %167, %168 : vector<2x128xf32>
    %170 = vector.extract_strided_slice %169 {offsets = [0, 0], sizes = [2, 32], strides = [1, 1]} : vector<2x128xf32> to vector<2x32xf32>
    %171 = arith.negf %170 : vector<2x32xf32>
    %172 = math.exp %171 : vector<2x32xf32>
    %cst_44 = arith.constant 1.000000e+00 : f32
    %173 = vector.broadcast %cst_44 : f32 to vector<2x32xf32>
    %174 = arith.addf %173, %172 : vector<2x32xf32>
    %175 = arith.divf %173, %174 : vector<2x32xf32>
    %176 = vector.extract_strided_slice %169 {offsets = [0, 32], sizes = [2, 32], strides = [1, 1]} : vector<2x128xf32> to vector<2x32xf32>
    %177 = arith.negf %176 : vector<2x32xf32>
    %178 = math.exp %177 : vector<2x32xf32>
    %cst_45 = arith.constant 1.000000e+00 : f32
    %179 = vector.broadcast %cst_45 : f32 to vector<2x32xf32>
    %180 = arith.addf %179, %178 : vector<2x32xf32>
    %181 = arith.divf %179, %180 : vector<2x32xf32>
    %182 = vector.extract_strided_slice %169 {offsets = [0, 64], sizes = [2, 32], strides = [1, 1]} : vector<2x128xf32> to vector<2x32xf32>
    %183 = math.tanh %182 : vector<2x32xf32>
    %184 = vector.extract_strided_slice %169 {offsets = [0, 96], sizes = [2, 32], strides = [1, 1]} : vector<2x128xf32> to vector<2x32xf32>
    %185 = arith.negf %184 : vector<2x32xf32>
    %186 = math.exp %185 : vector<2x32xf32>
    %cst_46 = arith.constant 1.000000e+00 : f32
    %187 = vector.broadcast %cst_46 : f32 to vector<2x32xf32>
    %188 = arith.addf %187, %186 : vector<2x32xf32>
    %189 = arith.divf %187, %188 : vector<2x32xf32>
    %190 = arith.mulf %181, %157 : vector<2x32xf32>
    %191 = arith.mulf %175, %183 : vector<2x32xf32>
    %192 = arith.addf %190, %191 : vector<2x32xf32>
    %193 = math.tanh %192 : vector<2x32xf32>
    %194 = arith.mulf %189, %193 : vector<2x32xf32>
    %195 = vector.extract_strided_slice %194 {offsets = [0, 0], sizes = [2, 16], strides = [1, 1]} : vector<2x32xf32> to vector<2x16xf32>
    %196 = vector.extract_strided_slice %194 {offsets = [0, 16], sizes = [2, 16], strides = [1, 1]} : vector<2x32xf32> to vector<2x16xf32>
    %197 = tpu.concatenate %11, %1 in 1 : vector<2x32xf32>, vector<2x32xf32> -> vector<2x64xf32>
    %198 = arith.truncf %197 : vector<2x64xf32> to vector<2x64xbf16>
    %cst_47 = arith.constant dense<0.000000e+00> : vector<2x128xf32>
    %199 = tpu.matmul %198, %14, %cst_47 {dimension_numbers = #tpu.dot_dimension_numbers<[1], [0], [0], [1], [0, 0, 1, 1], [], []>} : vector<2x64xbf16>, vector<64x128xbf16>, vector<2x128xf32> -> vector<2x128xf32>
    %200 = arith.truncf %194 : vector<2x32xf32> to vector<2x32xbf16>
    %cst_48 = arith.constant dense<0.000000e+00> : vector<2x128xf32>
    %201 = tpu.matmul %200, %17, %cst_48 {dimension_numbers = #tpu.dot_dimension_numbers<[1], [0], [0], [1], [0, 0, 1, 1], [], []>} : vector<2x32xbf16>, vector<32x128xbf16>, vector<2x128xf32> -> vector<2x128xf32>
    %202 = arith.addf %199, %201 : vector<2x128xf32>
    %203 = vector.broadcast %19 : vector<1x128xf32> to vector<2x128xf32>
    %204 = arith.addf %202, %203 : vector<2x128xf32>
    %205 = vector.extract_strided_slice %204 {offsets = [0, 0], sizes = [2, 32], strides = [1, 1]} : vector<2x128xf32> to vector<2x32xf32>
    %206 = arith.negf %205 : vector<2x32xf32>
    %207 = math.exp %206 : vector<2x32xf32>
    %cst_49 = arith.constant 1.000000e+00 : f32
    %208 = vector.broadcast %cst_49 : f32 to vector<2x32xf32>
    %209 = arith.addf %208, %207 : vector<2x32xf32>
    %210 = arith.divf %208, %209 : vector<2x32xf32>
    %211 = vector.extract_strided_slice %204 {offsets = [0, 32], sizes = [2, 32], strides = [1, 1]} : vector<2x128xf32> to vector<2x32xf32>
    %212 = arith.negf %211 : vector<2x32xf32>
    %213 = math.exp %212 : vector<2x32xf32>
    %cst_50 = arith.constant 1.000000e+00 : f32
    %214 = vector.broadcast %cst_50 : f32 to vector<2x32xf32>
    %215 = arith.addf %214, %213 : vector<2x32xf32>
    %216 = arith.divf %214, %215 : vector<2x32xf32>
    %217 = vector.extract_strided_slice %204 {offsets = [0, 64], sizes = [2, 32], strides = [1, 1]} : vector<2x128xf32> to vector<2x32xf32>
    %218 = math.tanh %217 : vector<2x32xf32>
    %219 = vector.extract_strided_slice %204 {offsets = [0, 96], sizes = [2, 32], strides = [1, 1]} : vector<2x128xf32> to vector<2x32xf32>
    %220 = arith.negf %219 : vector<2x32xf32>
    %221 = math.exp %220 : vector<2x32xf32>
    %cst_51 = arith.constant 1.000000e+00 : f32
    %222 = vector.broadcast %cst_51 : f32 to vector<2x32xf32>
    %223 = arith.addf %222, %221 : vector<2x32xf32>
    %224 = arith.divf %222, %223 : vector<2x32xf32>
    %225 = arith.mulf %216, %192 : vector<2x32xf32>
    %226 = arith.mulf %210, %218 : vector<2x32xf32>
    %227 = arith.addf %225, %226 : vector<2x32xf32>
    %228 = math.tanh %227 : vector<2x32xf32>
    %229 = arith.mulf %224, %228 : vector<2x32xf32>
    %230 = vector.extract_strided_slice %229 {offsets = [0, 0], sizes = [2, 16], strides = [1, 1]} : vector<2x32xf32> to vector<2x16xf32>
    %231 = vector.extract_strided_slice %229 {offsets = [0, 16], sizes = [2, 16], strides = [1, 1]} : vector<2x32xf32> to vector<2x16xf32>
    %232 = tpu.concatenate %55, %231 in 1 : vector<2x16xf32>, vector<2x16xf32> -> vector<2x32xf32>
    %233 = tpu.concatenate %90, %196 in 1 : vector<2x16xf32>, vector<2x16xf32> -> vector<2x32xf32>
    %234 = tpu.concatenate %125, %161 in 1 : vector<2x16xf32>, vector<2x16xf32> -> vector<2x32xf32>
    %235 = tpu.concatenate %160, %126 in 1 : vector<2x16xf32>, vector<2x16xf32> -> vector<2x32xf32>
    %236 = tpu.concatenate %195, %91 in 1 : vector<2x16xf32>, vector<2x16xf32> -> vector<2x32xf32>
    %237 = tpu.concatenate %230, %56 in 1 : vector<2x16xf32>, vector<2x16xf32> -> vector<2x32xf32>
    %c1_52 = arith.constant 1 : index
    %c0_53 = arith.constant 0 : index
    %c0_54 = arith.constant 0 : index
    %238 = vector.load %arg2[%c1_52, %c0_53, %c0_54] : memref<2x64x128xf32, #tpu.memory_space<vmem>>, vector<1x64x128xf32>
    %239 = vector.shape_cast %238 : vector<1x64x128xf32> to vector<64x128xf32>
    %240 = arith.truncf %239 : vector<64x128xf32> to vector<64x128xbf16>
    %c1_55 = arith.constant 1 : index
    %c0_56 = arith.constant 0 : index
    %c0_57 = arith.constant 0 : index
    %241 = vector.load %arg3[%c1_55, %c0_56, %c0_57] : memref<2x32x128xf32, #tpu.memory_space<vmem>>, vector<1x32x128xf32>
    %242 = vector.shape_cast %241 : vector<1x32x128xf32> to vector<32x128xf32>
    %243 = arith.truncf %242 : vector<32x128xf32> to vector<32x128xbf16>
    %c1_58 = arith.constant 1 : index
    %c0_59 = arith.constant 0 : index
    %c0_60 = arith.constant 0 : index
    %244 = vector.load %arg4[%c1_58, %c0_59, %c0_60] : memref<2x1x128xf32, #tpu.memory_space<vmem>>, vector<1x1x128xf32>
    %245 = vector.shape_cast %244 : vector<1x1x128xf32> to vector<1x128xf32>
    %cst_61 = arith.constant 0.000000e+00 : f32
    %246 = vector.broadcast %cst_61 : f32 to vector<2x32xf32>
    %cst_62 = arith.constant 0.000000e+00 : f32
    %247 = vector.broadcast %cst_62 : f32 to vector<2x32xf32>
    %248 = tpu.concatenate %232, %237 in 1 : vector<2x32xf32>, vector<2x32xf32> -> vector<2x64xf32>
    %249 = arith.truncf %248 : vector<2x64xf32> to vector<2x64xbf16>
    %cst_63 = arith.constant dense<0.000000e+00> : vector<2x128xf32>
    %250 = tpu.matmul %249, %240, %cst_63 {dimension_numbers = #tpu.dot_dimension_numbers<[1], [0], [0], [1], [0, 0, 1, 1], [], []>} : vector<2x64xbf16>, vector<64x128xbf16>, vector<2x128xf32> -> vector<2x128xf32>
    %251 = arith.truncf %246 : vector<2x32xf32> to vector<2x32xbf16>
    %cst_64 = arith.constant dense<0.000000e+00> : vector<2x128xf32>
    %252 = tpu.matmul %251, %243, %cst_64 {dimension_numbers = #tpu.dot_dimension_numbers<[1], [0], [0], [1], [0, 0, 1, 1], [], []>} : vector<2x32xbf16>, vector<32x128xbf16>, vector<2x128xf32> -> vector<2x128xf32>
    %253 = arith.addf %250, %252 : vector<2x128xf32>
    %254 = vector.broadcast %245 : vector<1x128xf32> to vector<2x128xf32>
    %255 = arith.addf %253, %254 : vector<2x128xf32>
    %256 = vector.extract_strided_slice %255 {offsets = [0, 0], sizes = [2, 32], strides = [1, 1]} : vector<2x128xf32> to vector<2x32xf32>
    %257 = arith.negf %256 : vector<2x32xf32>
    %258 = math.exp %257 : vector<2x32xf32>
    %cst_65 = arith.constant 1.000000e+00 : f32
    %259 = vector.broadcast %cst_65 : f32 to vector<2x32xf32>
    %260 = arith.addf %259, %258 : vector<2x32xf32>
    %261 = arith.divf %259, %260 : vector<2x32xf32>
    %262 = vector.extract_strided_slice %255 {offsets = [0, 32], sizes = [2, 32], strides = [1, 1]} : vector<2x128xf32> to vector<2x32xf32>
    %263 = arith.negf %262 : vector<2x32xf32>
    %264 = math.exp %263 : vector<2x32xf32>
    %cst_66 = arith.constant 1.000000e+00 : f32
    %265 = vector.broadcast %cst_66 : f32 to vector<2x32xf32>
    %266 = arith.addf %265, %264 : vector<2x32xf32>
    %267 = arith.divf %265, %266 : vector<2x32xf32>
    %268 = vector.extract_strided_slice %255 {offsets = [0, 64], sizes = [2, 32], strides = [1, 1]} : vector<2x128xf32> to vector<2x32xf32>
    %269 = math.tanh %268 : vector<2x32xf32>
    %270 = vector.extract_strided_slice %255 {offsets = [0, 96], sizes = [2, 32], strides = [1, 1]} : vector<2x128xf32> to vector<2x32xf32>
    %271 = arith.negf %270 : vector<2x32xf32>
    %272 = math.exp %271 : vector<2x32xf32>
    %cst_67 = arith.constant 1.000000e+00 : f32
    %273 = vector.broadcast %cst_67 : f32 to vector<2x32xf32>
    %274 = arith.addf %273, %272 : vector<2x32xf32>
    %275 = arith.divf %273, %274 : vector<2x32xf32>
    %276 = arith.mulf %267, %247 : vector<2x32xf32>
    %277 = arith.mulf %261, %269 : vector<2x32xf32>
    %278 = arith.addf %276, %277 : vector<2x32xf32>
    %279 = math.tanh %278 : vector<2x32xf32>
    %280 = arith.mulf %275, %279 : vector<2x32xf32>
    %281 = vector.extract_strided_slice %280 {offsets = [0, 0], sizes = [2, 16], strides = [1, 1]} : vector<2x32xf32> to vector<2x16xf32>
    %282 = vector.extract_strided_slice %280 {offsets = [0, 16], sizes = [2, 16], strides = [1, 1]} : vector<2x32xf32> to vector<2x16xf32>
    %283 = tpu.concatenate %233, %236 in 1 : vector<2x32xf32>, vector<2x32xf32> -> vector<2x64xf32>
    %284 = arith.truncf %283 : vector<2x64xf32> to vector<2x64xbf16>
    %cst_68 = arith.constant dense<0.000000e+00> : vector<2x128xf32>
    %285 = tpu.matmul %284, %240, %cst_68 {dimension_numbers = #tpu.dot_dimension_numbers<[1], [0], [0], [1], [0, 0, 1, 1], [], []>} : vector<2x64xbf16>, vector<64x128xbf16>, vector<2x128xf32> -> vector<2x128xf32>
    %286 = arith.truncf %280 : vector<2x32xf32> to vector<2x32xbf16>
    %cst_69 = arith.constant dense<0.000000e+00> : vector<2x128xf32>
    %287 = tpu.matmul %286, %243, %cst_69 {dimension_numbers = #tpu.dot_dimension_numbers<[1], [0], [0], [1], [0, 0, 1, 1], [], []>} : vector<2x32xbf16>, vector<32x128xbf16>, vector<2x128xf32> -> vector<2x128xf32>
    %288 = arith.addf %285, %287 : vector<2x128xf32>
    %289 = vector.broadcast %245 : vector<1x128xf32> to vector<2x128xf32>
    %290 = arith.addf %288, %289 : vector<2x128xf32>
    %291 = vector.extract_strided_slice %290 {offsets = [0, 0], sizes = [2, 32], strides = [1, 1]} : vector<2x128xf32> to vector<2x32xf32>
    %292 = arith.negf %291 : vector<2x32xf32>
    %293 = math.exp %292 : vector<2x32xf32>
    %cst_70 = arith.constant 1.000000e+00 : f32
    %294 = vector.broadcast %cst_70 : f32 to vector<2x32xf32>
    %295 = arith.addf %294, %293 : vector<2x32xf32>
    %296 = arith.divf %294, %295 : vector<2x32xf32>
    %297 = vector.extract_strided_slice %290 {offsets = [0, 32], sizes = [2, 32], strides = [1, 1]} : vector<2x128xf32> to vector<2x32xf32>
    %298 = arith.negf %297 : vector<2x32xf32>
    %299 = math.exp %298 : vector<2x32xf32>
    %cst_71 = arith.constant 1.000000e+00 : f32
    %300 = vector.broadcast %cst_71 : f32 to vector<2x32xf32>
    %301 = arith.addf %300, %299 : vector<2x32xf32>
    %302 = arith.divf %300, %301 : vector<2x32xf32>
    %303 = vector.extract_strided_slice %290 {offsets = [0, 64], sizes = [2, 32], strides = [1, 1]} : vector<2x128xf32> to vector<2x32xf32>
    %304 = math.tanh %303 : vector<2x32xf32>
    %305 = vector.extract_strided_slice %290 {offsets = [0, 96], sizes = [2, 32], strides = [1, 1]} : vector<2x128xf32> to vector<2x32xf32>
    %306 = arith.negf %305 : vector<2x32xf32>
    %307 = math.exp %306 : vector<2x32xf32>
    %cst_72 = arith.constant 1.000000e+00 : f32
    %308 = vector.broadcast %cst_72 : f32 to vector<2x32xf32>
    %309 = arith.addf %308, %307 : vector<2x32xf32>
    %310 = arith.divf %308, %309 : vector<2x32xf32>
    %311 = arith.mulf %302, %278 : vector<2x32xf32>
    %312 = arith.mulf %296, %304 : vector<2x32xf32>
    %313 = arith.addf %311, %312 : vector<2x32xf32>
    %314 = math.tanh %313 : vector<2x32xf32>
    %315 = arith.mulf %310, %314 : vector<2x32xf32>
    %316 = vector.extract_strided_slice %315 {offsets = [0, 0], sizes = [2, 16], strides = [1, 1]} : vector<2x32xf32> to vector<2x16xf32>
    %317 = vector.extract_strided_slice %315 {offsets = [0, 16], sizes = [2, 16], strides = [1, 1]} : vector<2x32xf32> to vector<2x16xf32>
    %318 = tpu.concatenate %234, %235 in 1 : vector<2x32xf32>, vector<2x32xf32> -> vector<2x64xf32>
    %319 = arith.truncf %318 : vector<2x64xf32> to vector<2x64xbf16>
    %cst_73 = arith.constant dense<0.000000e+00> : vector<2x128xf32>
    %320 = tpu.matmul %319, %240, %cst_73 {dimension_numbers = #tpu.dot_dimension_numbers<[1], [0], [0], [1], [0, 0, 1, 1], [], []>} : vector<2x64xbf16>, vector<64x128xbf16>, vector<2x128xf32> -> vector<2x128xf32>
    %321 = arith.truncf %315 : vector<2x32xf32> to vector<2x32xbf16>
    %cst_74 = arith.constant dense<0.000000e+00> : vector<2x128xf32>
    %322 = tpu.matmul %321, %243, %cst_74 {dimension_numbers = #tpu.dot_dimension_numbers<[1], [0], [0], [1], [0, 0, 1, 1], [], []>} : vector<2x32xbf16>, vector<32x128xbf16>, vector<2x128xf32> -> vector<2x128xf32>
    %323 = arith.addf %320, %322 : vector<2x128xf32>
    %324 = vector.broadcast %245 : vector<1x128xf32> to vector<2x128xf32>
    %325 = arith.addf %323, %324 : vector<2x128xf32>
    %326 = vector.extract_strided_slice %325 {offsets = [0, 0], sizes = [2, 32], strides = [1, 1]} : vector<2x128xf32> to vector<2x32xf32>
    %327 = arith.negf %326 : vector<2x32xf32>
    %328 = math.exp %327 : vector<2x32xf32>
    %cst_75 = arith.constant 1.000000e+00 : f32
    %329 = vector.broadcast %cst_75 : f32 to vector<2x32xf32>
    %330 = arith.addf %329, %328 : vector<2x32xf32>
    %331 = arith.divf %329, %330 : vector<2x32xf32>
    %332 = vector.extract_strided_slice %325 {offsets = [0, 32], sizes = [2, 32], strides = [1, 1]} : vector<2x128xf32> to vector<2x32xf32>
    %333 = arith.negf %332 : vector<2x32xf32>
    %334 = math.exp %333 : vector<2x32xf32>
    %cst_76 = arith.constant 1.000000e+00 : f32
    %335 = vector.broadcast %cst_76 : f32 to vector<2x32xf32>
    %336 = arith.addf %335, %334 : vector<2x32xf32>
    %337 = arith.divf %335, %336 : vector<2x32xf32>
    %338 = vector.extract_strided_slice %325 {offsets = [0, 64], sizes = [2, 32], strides = [1, 1]} : vector<2x128xf32> to vector<2x32xf32>
    %339 = math.tanh %338 : vector<2x32xf32>
    %340 = vector.extract_strided_slice %325 {offsets = [0, 96], sizes = [2, 32], strides = [1, 1]} : vector<2x128xf32> to vector<2x32xf32>
    %341 = arith.negf %340 : vector<2x32xf32>
    %342 = math.exp %341 : vector<2x32xf32>
    %cst_77 = arith.constant 1.000000e+00 : f32
    %343 = vector.broadcast %cst_77 : f32 to vector<2x32xf32>
    %344 = arith.addf %343, %342 : vector<2x32xf32>
    %345 = arith.divf %343, %344 : vector<2x32xf32>
    %346 = arith.mulf %337, %313 : vector<2x32xf32>
    %347 = arith.mulf %331, %339 : vector<2x32xf32>
    %348 = arith.addf %346, %347 : vector<2x32xf32>
    %349 = math.tanh %348 : vector<2x32xf32>
    %350 = arith.mulf %345, %349 : vector<2x32xf32>
    %351 = vector.extract_strided_slice %350 {offsets = [0, 0], sizes = [2, 16], strides = [1, 1]} : vector<2x32xf32> to vector<2x16xf32>
    %352 = vector.extract_strided_slice %350 {offsets = [0, 16], sizes = [2, 16], strides = [1, 1]} : vector<2x32xf32> to vector<2x16xf32>
    %353 = tpu.concatenate %235, %234 in 1 : vector<2x32xf32>, vector<2x32xf32> -> vector<2x64xf32>
    %354 = arith.truncf %353 : vector<2x64xf32> to vector<2x64xbf16>
    %cst_78 = arith.constant dense<0.000000e+00> : vector<2x128xf32>
    %355 = tpu.matmul %354, %240, %cst_78 {dimension_numbers = #tpu.dot_dimension_numbers<[1], [0], [0], [1], [0, 0, 1, 1], [], []>} : vector<2x64xbf16>, vector<64x128xbf16>, vector<2x128xf32> -> vector<2x128xf32>
    %356 = arith.truncf %350 : vector<2x32xf32> to vector<2x32xbf16>
    %cst_79 = arith.constant dense<0.000000e+00> : vector<2x128xf32>
    %357 = tpu.matmul %356, %243, %cst_79 {dimension_numbers = #tpu.dot_dimension_numbers<[1], [0], [0], [1], [0, 0, 1, 1], [], []>} : vector<2x32xbf16>, vector<32x128xbf16>, vector<2x128xf32> -> vector<2x128xf32>
    %358 = arith.addf %355, %357 : vector<2x128xf32>
    %359 = vector.broadcast %245 : vector<1x128xf32> to vector<2x128xf32>
    %360 = arith.addf %358, %359 : vector<2x128xf32>
    %361 = vector.extract_strided_slice %360 {offsets = [0, 0], sizes = [2, 32], strides = [1, 1]} : vector<2x128xf32> to vector<2x32xf32>
    %362 = arith.negf %361 : vector<2x32xf32>
    %363 = math.exp %362 : vector<2x32xf32>
    %cst_80 = arith.constant 1.000000e+00 : f32
    %364 = vector.broadcast %cst_80 : f32 to vector<2x32xf32>
    %365 = arith.addf %364, %363 : vector<2x32xf32>
    %366 = arith.divf %364, %365 : vector<2x32xf32>
    %367 = vector.extract_strided_slice %360 {offsets = [0, 32], sizes = [2, 32], strides = [1, 1]} : vector<2x128xf32> to vector<2x32xf32>
    %368 = arith.negf %367 : vector<2x32xf32>
    %369 = math.exp %368 : vector<2x32xf32>
    %cst_81 = arith.constant 1.000000e+00 : f32
    %370 = vector.broadcast %cst_81 : f32 to vector<2x32xf32>
    %371 = arith.addf %370, %369 : vector<2x32xf32>
    %372 = arith.divf %370, %371 : vector<2x32xf32>
    %373 = vector.extract_strided_slice %360 {offsets = [0, 64], sizes = [2, 32], strides = [1, 1]} : vector<2x128xf32> to vector<2x32xf32>
    %374 = math.tanh %373 : vector<2x32xf32>
    %375 = vector.extract_strided_slice %360 {offsets = [0, 96], sizes = [2, 32], strides = [1, 1]} : vector<2x128xf32> to vector<2x32xf32>
    %376 = arith.negf %375 : vector<2x32xf32>
    %377 = math.exp %376 : vector<2x32xf32>
    %cst_82 = arith.constant 1.000000e+00 : f32
    %378 = vector.broadcast %cst_82 : f32 to vector<2x32xf32>
    %379 = arith.addf %378, %377 : vector<2x32xf32>
    %380 = arith.divf %378, %379 : vector<2x32xf32>
    %381 = arith.mulf %372, %348 : vector<2x32xf32>
    %382 = arith.mulf %366, %374 : vector<2x32xf32>
    %383 = arith.addf %381, %382 : vector<2x32xf32>
    %384 = math.tanh %383 : vector<2x32xf32>
    %385 = arith.mulf %380, %384 : vector<2x32xf32>
    %386 = vector.extract_strided_slice %385 {offsets = [0, 0], sizes = [2, 16], strides = [1, 1]} : vector<2x32xf32> to vector<2x16xf32>
    %387 = vector.extract_strided_slice %385 {offsets = [0, 16], sizes = [2, 16], strides = [1, 1]} : vector<2x32xf32> to vector<2x16xf32>
    %388 = tpu.concatenate %236, %233 in 1 : vector<2x32xf32>, vector<2x32xf32> -> vector<2x64xf32>
    %389 = arith.truncf %388 : vector<2x64xf32> to vector<2x64xbf16>
    %cst_83 = arith.constant dense<0.000000e+00> : vector<2x128xf32>
    %390 = tpu.matmul %389, %240, %cst_83 {dimension_numbers = #tpu.dot_dimension_numbers<[1], [0], [0], [1], [0, 0, 1, 1], [], []>} : vector<2x64xbf16>, vector<64x128xbf16>, vector<2x128xf32> -> vector<2x128xf32>
    %391 = arith.truncf %385 : vector<2x32xf32> to vector<2x32xbf16>
    %cst_84 = arith.constant dense<0.000000e+00> : vector<2x128xf32>
    %392 = tpu.matmul %391, %243, %cst_84 {dimension_numbers = #tpu.dot_dimension_numbers<[1], [0], [0], [1], [0, 0, 1, 1], [], []>} : vector<2x32xbf16>, vector<32x128xbf16>, vector<2x128xf32> -> vector<2x128xf32>
    %393 = arith.addf %390, %392 : vector<2x128xf32>
    %394 = vector.broadcast %245 : vector<1x128xf32> to vector<2x128xf32>
    %395 = arith.addf %393, %394 : vector<2x128xf32>
    %396 = vector.extract_strided_slice %395 {offsets = [0, 0], sizes = [2, 32], strides = [1, 1]} : vector<2x128xf32> to vector<2x32xf32>
    %397 = arith.negf %396 : vector<2x32xf32>
    %398 = math.exp %397 : vector<2x32xf32>
    %cst_85 = arith.constant 1.000000e+00 : f32
    %399 = vector.broadcast %cst_85 : f32 to vector<2x32xf32>
    %400 = arith.addf %399, %398 : vector<2x32xf32>
    %401 = arith.divf %399, %400 : vector<2x32xf32>
    %402 = vector.extract_strided_slice %395 {offsets = [0, 32], sizes = [2, 32], strides = [1, 1]} : vector<2x128xf32> to vector<2x32xf32>
    %403 = arith.negf %402 : vector<2x32xf32>
    %404 = math.exp %403 : vector<2x32xf32>
    %cst_86 = arith.constant 1.000000e+00 : f32
    %405 = vector.broadcast %cst_86 : f32 to vector<2x32xf32>
    %406 = arith.addf %405, %404 : vector<2x32xf32>
    %407 = arith.divf %405, %406 : vector<2x32xf32>
    %408 = vector.extract_strided_slice %395 {offsets = [0, 64], sizes = [2, 32], strides = [1, 1]} : vector<2x128xf32> to vector<2x32xf32>
    %409 = math.tanh %408 : vector<2x32xf32>
    %410 = vector.extract_strided_slice %395 {offsets = [0, 96], sizes = [2, 32], strides = [1, 1]} : vector<2x128xf32> to vector<2x32xf32>
    %411 = arith.negf %410 : vector<2x32xf32>
    %412 = math.exp %411 : vector<2x32xf32>
    %cst_87 = arith.constant 1.000000e+00 : f32
    %413 = vector.broadcast %cst_87 : f32 to vector<2x32xf32>
    %414 = arith.addf %413, %412 : vector<2x32xf32>
    %415 = arith.divf %413, %414 : vector<2x32xf32>
    %416 = arith.mulf %407, %383 : vector<2x32xf32>
    %417 = arith.mulf %401, %409 : vector<2x32xf32>
    %418 = arith.addf %416, %417 : vector<2x32xf32>
    %419 = math.tanh %418 : vector<2x32xf32>
    %420 = arith.mulf %415, %419 : vector<2x32xf32>
    %421 = vector.extract_strided_slice %420 {offsets = [0, 0], sizes = [2, 16], strides = [1, 1]} : vector<2x32xf32> to vector<2x16xf32>
    %422 = vector.extract_strided_slice %420 {offsets = [0, 16], sizes = [2, 16], strides = [1, 1]} : vector<2x32xf32> to vector<2x16xf32>
    %423 = tpu.concatenate %237, %232 in 1 : vector<2x32xf32>, vector<2x32xf32> -> vector<2x64xf32>
    %424 = arith.truncf %423 : vector<2x64xf32> to vector<2x64xbf16>
    %cst_88 = arith.constant dense<0.000000e+00> : vector<2x128xf32>
    %425 = tpu.matmul %424, %240, %cst_88 {dimension_numbers = #tpu.dot_dimension_numbers<[1], [0], [0], [1], [0, 0, 1, 1], [], []>} : vector<2x64xbf16>, vector<64x128xbf16>, vector<2x128xf32> -> vector<2x128xf32>
    %426 = arith.truncf %420 : vector<2x32xf32> to vector<2x32xbf16>
    %cst_89 = arith.constant dense<0.000000e+00> : vector<2x128xf32>
    %427 = tpu.matmul %426, %243, %cst_89 {dimension_numbers = #tpu.dot_dimension_numbers<[1], [0], [0], [1], [0, 0, 1, 1], [], []>} : vector<2x32xbf16>, vector<32x128xbf16>, vector<2x128xf32> -> vector<2x128xf32>
    %428 = arith.addf %425, %427 : vector<2x128xf32>
    %429 = vector.broadcast %245 : vector<1x128xf32> to vector<2x128xf32>
    %430 = arith.addf %428, %429 : vector<2x128xf32>
    %431 = vector.extract_strided_slice %430 {offsets = [0, 0], sizes = [2, 32], strides = [1, 1]} : vector<2x128xf32> to vector<2x32xf32>
    %432 = arith.negf %431 : vector<2x32xf32>
    %433 = math.exp %432 : vector<2x32xf32>
    %cst_90 = arith.constant 1.000000e+00 : f32
    %434 = vector.broadcast %cst_90 : f32 to vector<2x32xf32>
    %435 = arith.addf %434, %433 : vector<2x32xf32>
    %436 = arith.divf %434, %435 : vector<2x32xf32>
    %437 = vector.extract_strided_slice %430 {offsets = [0, 32], sizes = [2, 32], strides = [1, 1]} : vector<2x128xf32> to vector<2x32xf32>
    %438 = arith.negf %437 : vector<2x32xf32>
    %439 = math.exp %438 : vector<2x32xf32>
    %cst_91 = arith.constant 1.000000e+00 : f32
    %440 = vector.broadcast %cst_91 : f32 to vector<2x32xf32>
    %441 = arith.addf %440, %439 : vector<2x32xf32>
    %442 = arith.divf %440, %441 : vector<2x32xf32>
    %443 = vector.extract_strided_slice %430 {offsets = [0, 64], sizes = [2, 32], strides = [1, 1]} : vector<2x128xf32> to vector<2x32xf32>
    %444 = math.tanh %443 : vector<2x32xf32>
    %445 = vector.extract_strided_slice %430 {offsets = [0, 96], sizes = [2, 32], strides = [1, 1]} : vector<2x128xf32> to vector<2x32xf32>
    %446 = arith.negf %445 : vector<2x32xf32>
    %447 = math.exp %446 : vector<2x32xf32>
    %cst_92 = arith.constant 1.000000e+00 : f32
    %448 = vector.broadcast %cst_92 : f32 to vector<2x32xf32>
    %449 = arith.addf %448, %447 : vector<2x32xf32>
    %450 = arith.divf %448, %449 : vector<2x32xf32>
    %451 = arith.mulf %442, %418 : vector<2x32xf32>
    %452 = arith.mulf %436, %444 : vector<2x32xf32>
    %453 = arith.addf %451, %452 : vector<2x32xf32>
    %454 = math.tanh %453 : vector<2x32xf32>
    %455 = arith.mulf %450, %454 : vector<2x32xf32>
    %456 = vector.extract_strided_slice %455 {offsets = [0, 0], sizes = [2, 16], strides = [1, 1]} : vector<2x32xf32> to vector<2x16xf32>
    %457 = vector.extract_strided_slice %455 {offsets = [0, 16], sizes = [2, 16], strides = [1, 1]} : vector<2x32xf32> to vector<2x16xf32>
    %458 = tpu.concatenate %281, %457 in 1 : vector<2x16xf32>, vector<2x16xf32> -> vector<2x32xf32>
    %459 = tpu.concatenate %316, %422 in 1 : vector<2x16xf32>, vector<2x16xf32> -> vector<2x32xf32>
    %460 = tpu.concatenate %351, %387 in 1 : vector<2x16xf32>, vector<2x16xf32> -> vector<2x32xf32>
    %461 = tpu.concatenate %386, %352 in 1 : vector<2x16xf32>, vector<2x16xf32> -> vector<2x32xf32>
    %462 = tpu.concatenate %421, %317 in 1 : vector<2x16xf32>, vector<2x16xf32> -> vector<2x32xf32>
    %463 = tpu.concatenate %456, %282 in 1 : vector<2x16xf32>, vector<2x16xf32> -> vector<2x32xf32>
    %464 = tpu.concatenate %458, %459, %460, %461, %462, %463 in 0 : vector<2x32xf32>, vector<2x32xf32>, vector<2x32xf32>, vector<2x32xf32>, vector<2x32xf32>, vector<2x32xf32> -> vector<12x32xf32>
    %c0_93 = arith.constant 0 : index
    %c0_94 = arith.constant 0 : index
    %465 = vector.load %arg5[%c0_93, %c0_94] : memref<32x128xf32, #tpu.memory_space<vmem>>, vector<32x128xf32>
    %466 = arith.truncf %465 : vector<32x128xf32> to vector<32x128xbf16>
    %467 = arith.truncf %464 : vector<12x32xf32> to vector<12x32xbf16>
    %cst_95 = arith.constant dense<0.000000e+00> : vector<12x128xf32>
    %468 = tpu.matmul %467, %466, %cst_95 {dimension_numbers = #tpu.dot_dimension_numbers<[1], [0], [0], [1], [0, 0, 1, 1], [], []>} : vector<12x32xbf16>, vector<32x128xbf16>, vector<12x128xf32> -> vector<12x128xf32>
    %c0_96 = arith.constant 0 : index
    %c0_97 = arith.constant 0 : index
    %469 = vector.load %arg6[%c0_96, %c0_97] : memref<1x128xf32, #tpu.memory_space<vmem>>, vector<1x128xf32>
    %470 = vector.broadcast %469 : vector<1x128xf32> to vector<12x128xf32>
    %471 = arith.addf %468, %470 : vector<12x128xf32>
    %c0_98 = arith.constant 0 : index
    %c0_99 = arith.constant 0 : index
    %472 = vector.load %arg7[%c0_98, %c0_99] : memref<12x128xf32, #tpu.memory_space<vmem>>, vector<12x128xf32>
    tpu.vector_store %arg7[%c0_98, %c0_99], %471 {strides = array<i32>} : memref<12x128xf32, #tpu.memory_space<vmem>>, vector<12x128xf32>,
    return
  }
  func.func @transform_0(%arg0: i32) -> (i32, i32, i32) {
    %c0_i32 = arith.constant 0 : i32
    %c0_i32_0 = arith.constant 0 : i32
    %c0_i32_1 = arith.constant 0 : i32
    %c0_i32_2 = arith.constant 0 : i32
    return %c0_i32, %c0_i32_0, %c0_i32_1 : i32, i32, i32
  }
  func.func @transform_1(%arg0: i32) -> (i32, i32, i32) {
    %c0_i32 = arith.constant 0 : i32
    %c0_i32_0 = arith.constant 0 : i32
    %c0_i32_1 = arith.constant 0 : i32
    %c0_i32_2 = arith.constant 0 : i32
    return %c0_i32, %c0_i32_0, %c0_i32_1 : i32, i32, i32
  }
  func.func @transform_2(%arg0: i32) -> (i32, i32, i32) {
    %c0_i32 = arith.constant 0 : i32
    %c0_i32_0 = arith.constant 0 : i32
    %c0_i32_1 = arith.constant 0 : i32
    %c0_i32_2 = arith.constant 0 : i32
    return %c0_i32, %c0_i32_0, %c0_i32_1 : i32, i32, i32
  }
  func.func @transform_3(%arg0: i32) -> (i32, i32, i32) {
    %c0_i32 = arith.constant 0 : i32
    %c0_i32_0 = arith.constant 0 : i32
    %c0_i32_1 = arith.constant 0 : i32
    %c0_i32_2 = arith.constant 0 : i32
    return %c0_i32, %c0_i32_0, %c0_i32_1 : i32, i32, i32
  }
  func.func @transform_4(%arg0: i32) -> (i32, i32) {
    %c0_i32 = arith.constant 0 : i32
    %c0_i32_0 = arith.constant 0 : i32
    %c0_i32_1 = arith.constant 0 : i32
    return %c0_i32, %c0_i32_0 : i32, i32
  }
  func.func @transform_5(%arg0: i32) -> (i32, i32) {
    %c0_i32 = arith.constant 0 : i32
    %c0_i32_0 = arith.constant 0 : i32
    %c0_i32_1 = arith.constant 0 : i32
    return %c0_i32, %c0_i32_0 : i32, i32
  }
  func.func @transform_6(%arg0: i32) -> (i32, i32) {
    %c0_i32 = arith.constant 0 : i32
    %c0_i32_0 = arith.constant 0 : i32
    %c0_i32_1 = arith.constant 0 : i32
    return %c0_i32, %c0_i32_0 : i32, i32
  }
}

</mosaic_0001>

<bundles_post_ra>
// kernel: bert_ner_forward.3
= control target key start
LH: loop header
LB: loop body
LE: loop exit
PB: predicated region body
PF: predicated region fallthrough
CT: control target
= control target key end

     0   :  { %s1332_s27 = smov 32   ;;  %v1333_v16 = vmov 0   ;;  %vm58_vm0 = vcmask 261120   ;;  %vm77_vm1 = vcmask 523264   ;;  %s1334_s29 = smov 64   ;;  %s1773_s0 = inlined_call_operand.vmem [shape: f32[6,2,32], index: 0, kind: input, shape index: {}]   ;;  %s1774_s2 = inlined_call_operand.vmem [shape: f32[2,32,128], index: 2, kind: input, shape index: {}]   ;;  %s1775_s1 = inlined_call_operand.vmem [shape: f32[2,64,128], index: 1, kind: input, shape index: {}]   ;;  %s1776_s3 = inlined_call_operand.vmem [shape: f32[2,1,128], index: 3, kind: input, shape index: {}]   ;;  %s1777_s4 = inlined_call_operand.vmem [shape: f32[32,128], index: 4, kind: input, shape index: {}]   ;;  %s1778_s5 = inlined_call_operand.vmem [shape: f32[1,128], index: 5, kind: input, shape index: {}]   ;;  %s1779_s6 = inlined_call_operand.vmem [shape: f32[12,128], index: 6, kind: output, shape index: {}]  }
   0x1   :  { %v1373_v0 = vld [vmem:[%s1773_s0 + $0xa] sm:$0x3]  ;;  %v49_v1 = vld [vmem:[%s1774_s2 + $0x10] sm:$0xff]  ;;  %v50_v2 = vld [vmem:[%s1774_s2 + $0x18] sm:$0xff] }
   0x2   :  { %55 = vrot.lane.b32.xlu0 %v1373_v0, %s1332_s27  ;;  %v52_v3 = vpack.c.bf16 %v50_v2, %v49_v1  ;;  %v41_v4 = vld [vmem:[%s1775_s1 + $0x30] sm:$0xff]  ;;  %v42_v5 = vld [vmem:[%s1775_s1 + $0x38] sm:$0xff]  ;;  %v47_v6 = vld [vmem:[%s1774_s2] sm:$0xff] }
   0x3   :  { %v1392_v7 = vpack.c.bf16 %v42_v5, %v41_v4  ;;  %v48_v8 = vld [vmem:[%s1774_s2 + $0x8] sm:$0xff]  ;;  %v39_v9 = vld [vmem:[%s1775_s1 + $0x20] sm:$0xff]  ;;  %v37_v13 = vld [vmem:[%s1775_s1 + $0x10] sm:$0xff] }
   0x4   :  { %v40_v10 = vld [vmem:[%s1775_s1 + $0x28] sm:$0xff]  ;;  %70 = vmatpush.bf16.msra.mxu0 %v52_v3  ;;  %v51_v11 = vpack.c.bf16 %v48_v8, %v47_v6  ;;  %154 = vmatpush.bf16.msra.mxu2 %v52_v3  ;;  %v38_v14 = vld [vmem:[%s1775_s1 + $0x18] sm:$0xff]  ;;  %v35_v17 = vld [vmem:[%s1775_s1] sm:$0xff] }
   0x5   :  { %85 = vmatpush.bf16.msra.mxu1 %v1392_v7  ;;  %v1404_v12 = vpack.c.bf16 %v40_v10, %v39_v9  ;;  %168 = vmatpush.bf16.msra.mxu3 %v1392_v7  ;;  %v1414_v15 = vpack.c.bf16 %v38_v14, %v37_v13  ;;  %v36_v18 = vld [vmem:[%s1775_s1 + $0x8] sm:$0xff]  ;;  %v1441_v20 = vld [vmem:[%s1773_s0] sm:$0x3]  ;;  %v1465_v53 = vld [vmem:[%s1773_s0 + $0x2] sm:$0x3] }
   0x6   :  { %v1429_v19 = vpack.c.bf16 %v36_v18, %v35_v17  ;;  %v1449_v26 = vld [vmem:[%s1776_s3] ss:$0 sm:$0xff]  ;;  %v1457_v47 = vld [vmem:[%s1773_s0 + $0x8] sm:$0x3] }
   0x7   :  { %136 = vrot.lane.b32.xlu2 %v1457_v47, %s1332_s27 }
   0x8   :  { %71 = vmatpush.bf16.msra.mxu0 %v51_v11  ;;  %155 = vmatpush.bf16.msra.mxu2 %v51_v11 }
   0x9   :  { %86 = vmatpush.bf16.msra.mxu1 %v1404_v12  ;;  %169 = vmatpush.bf16.msra.mxu3 %v1404_v12 }
   0xb   :  { %72 = vmatmul.bf16.vlgmr.msra.gmra.mxu0 %v1333_v16 }
   0xc   :  { %248 = vmatpush.bf16.msrb.mxu2 %v1392_v7  ;;  %234 = vmatpush.bf16.msrb.mxu0 %v52_v3 }
   0xd   :  { %87 = vmatpush.bf16.msra.mxu1 %v1414_v15  ;;  %170 = vmatpush.bf16.msra.mxu3 %v1414_v15 }
  0x10   :  { %249 = vmatpush.bf16.msrb.mxu2 %v1404_v12  ;;  %235 = vmatpush.bf16.msrb.mxu0 %v51_v11 }
  0x11   :  { %88 = vmatpush.bf16.msra.mxu1 %v1429_v19  ;;  %171 = vmatpush.bf16.msra.mxu3 %v1429_v19 }
  0x14   :  { %394 = vmatpush.bf16.msra.mxu0 %v52_v3  ;;  %250 = vmatpush.bf16.msrb.mxu2 %v1414_v15 }
  0x15   :  { %328 = vmatpush.bf16.msrb.mxu3 %v1392_v7  ;;  %314 = vmatpush.bf16.msrb.mxu1 %v52_v3 }
  0x18   :  { %395 = vmatpush.bf16.msra.mxu0 %v51_v11  ;;  %251 = vmatpush.bf16.msrb.mxu2 %v1429_v19 }
  0x19   :  { %329 = vmatpush.bf16.msrb.mxu3 %v1404_v12  ;;  %315 = vmatpush.bf16.msrb.mxu1 %v51_v11 }
  0x1d   :  { %330 = vmatpush.bf16.msrb.mxu3 %v1414_v15 }
  0x21   :  { %331 = vmatpush.bf16.msrb.mxu3 %v1429_v19 }
  0x61   :  { %v137_v52 = vpop.permute.xlu2 %136 }
  0x62   :  { %v139_v54 = vsel %vm58_vm0, %v1465_v53, %v137_v52 }
  0x63   :  { %v140_v55 = vpack.c.bf16 %v139_v54, %v139_v54 }
  0x65   :  { %1155 = vmatmul.msk.bf16.vlgmr.msra.gmra.mxu3 %vm77_vm1, %v140_v55 }
  0x66   :  { %488 = vmatpush.bf16.msra.mxu3 %v1392_v7 }
  0x6a   :  { %489 = vmatpush.bf16.msra.mxu3 %v1404_v12 }
  0x6e   :  { %490 = vmatpush.bf16.msra.mxu3 %v1414_v15 }
  0x72   :  { %491 = vmatpush.bf16.msra.mxu3 %v1429_v19 }
  0x74   :  { %v56_v21 = vpop.permute.xlu0 %55 }
  0x75   :  { %v59_v22 = vsel %vm58_vm0, %v1441_v20, %v56_v21  ;;  %v1149_v21 = vld [vmem:[%s1773_s0 + $0x6] sm:$0x3] }
  0x76   :  { %v60_v23 = vpack.c.bf16 %v59_v22, %v59_v22 }
  0x78   :  { %1152 = vmatmul.msk.bf16.vlgmr.msra.gmra.mxu1 %vm77_vm1, %v60_v23 }
  0x79   :  { %474 = vmatpush.bf16.msra.mxu1 %v52_v3 }
  0x7d   :  { %475 = vmatpush.bf16.msra.mxu1 %v51_v11 }
  0x88   :  { %v73_v24 = vpop.f32.mrf.mxu0 }
  0x90   :  { %v75_v25 = vpop.f32.mrf.mxu0 }
  0xe8   :  { %v173_v60 = vpop.f32.mrf.mxu3 }
  0xf0   :  { %v175_v61 = vpop.f32.mrf.mxu3 }
  0xf5   :  { %v90_v27 = vpop.f32.mrf.mxu1 }
  0xf6   :  { %v91_v28 = vadd.f32 %v90_v27, %v73_v24  ;;  %v1148_v27 = vld [vmem:[%s1773_s0 + $0x4] sm:$0x3] }
  0xf8   :  { %v97_v29 = vadd.f32 %v1449_v26, %v91_v28 }
  0xfa   :  { %1236 = vtanh.f32 %v97_v29  ;;  %v1153_v32 = vmul.f32 -1.442695, %v97_v29 }
  0xfc   :  { %1238 = vpow2.f32 %v1153_v32 }
  0xfd   :  { %v92_v30 = vpop.f32.mrf.mxu1 }
 0x100   :  { %v1237_v31 = vpop.eup %1236 }
 0x101   :  { %120 = vrot.lane.b32.xlu0 %v1237_v31, %s1334_s29 }
 0x102   :  { %v1239_v33 = vpop.eup %1238 }
 0x103   :  { %v101_v34 = vadd.f32 1.0, %v1239_v33 }
 0x105   :  { %1240 = vrcp.f32 %v101_v34  ;;  %v113_v40 = vand.u32 2147483648, %v101_v34  ;;  %vm107_vm3 = vweird.f32 %v101_v34  ;;  %v111_v41 = vand.u32 2147483647, %v101_v34 }
 0x107   :  { %v114_v43 = vor.u32 1.1754944e-38, %v113_v40  ;;  %vm112_vm5 = vcmp.eq.f32.partialorder %v111_v41, 8.507059e+37 }
 0x10b   :  { %v1241_v35 = vpop.eup %1240 }
 0x10c   :  { %v103_v36 = vmul.f32 %v1241_v35, %v101_v34  ;;  %vm108_vm2 = vweird.f32 %v1241_v35 }
 0x10d   :  { %vm109_vm4 = vmor %vm107_vm3, %vm108_vm2 }
 0x10e   :  { %v104_v37 = vsub.f32 1.0, %v103_v36 }
 0x110   :  { %v105_v38 = vmul.f32 %v1241_v35, %v104_v37 }
 0x112   :  { %v106_v39 = vadd.f32 %v1241_v35, %v105_v38 }
 0x114   :  { %v110_v42 = vsel %vm109_vm4, %v1241_v35, %v106_v39 }
 0x115   :  { %v115_v45 = vsel %vm112_vm5, %v114_v43, %v110_v42 }
 0x116   :  { %v118_v48 = vmul.f32 0.0, %v115_v45 }
 0x173   :  { %v121_v44 = vpop.permute.xlu0 %120 }
 0x174   :  { %v123_v46 = vmul.f32 %v121_v44, %v115_v45 }
 0x176   :  { %125 = vrot.lane.b32.xlu1 %v123_v46, %s1332_s27 }
 0x1e8   :  { %v126_v49 = vpop.permute.xlu1 %125 }
 0x1e9   :  { %v128_v50 = vadd.f32 %v126_v49, %v118_v48 }
 0x1eb   :  { %1242 = vtanh.f32 %v128_v50 }
 0x1f1   :  { %v1243_v51 = vpop.eup %1242 }
 0x1f2   :  { %131 = vrot.lane.b32.xlu1 %v1243_v51, %s1334_s29 }
 0x264   :  { %v132_v56 = vpop.permute.xlu1 %131 }
 0x265   :  { %v1474_v57 = vmul.f32 %v132_v56, %v115_v45 }
 0x267   :  { %v141_v58 = vpack.c.bf16 %v1474_v57, %v1474_v57 }
 0x269   :  { %143 = vrot.lane.b32.xlu2 %v141_v58, %s1332_s27 }
 0x2c3   :  { %v144_v59 = vpop.permute.xlu2 %143 }
 0x2c4   :  { %1154 = vmatmul.msk.bf16.vlgmr.msra.gmra.mxu2 %vm58_vm0, %v144_v59 }
 0x2c5   :  { %408 = vmatpush.bf16.msra.mxu2 %v1392_v7 }
 0x2c9   :  { %409 = vmatpush.bf16.msra.mxu2 %v1404_v12 }
 0x2cd   :  { %410 = vmatpush.bf16.msra.mxu2 %v1414_v15 }
 0x2d1   :  { %411 = vmatpush.bf16.msra.mxu2 %v1429_v19 }
 0x347   :  { %v157_v62 = vpop.f32.mrf.mxu2 }
 0x348   :  { %v174_v63 = vadd.f32 %v173_v60, %v157_v62 }
 0x34a   :  { %v177_v1 = vadd.f32 %v1449_v26, %v174_v63 }
 0x34c   :  { %1244 = vtanh.f32 %v177_v1  ;;  %v1156_v4 = vmul.f32 -1.442695, %v177_v1 }
 0x34e   :  { %1246 = vpow2.f32 %v1156_v4 }
 0x34f   :  { %v159_v2 = vpop.f32.mrf.mxu2 }
 0x352   :  { %v1245_v3 = vpop.eup %1244 }
 0x353   :  { %200 = vrot.lane.b32.xlu0 %v1245_v3, %s1334_s29 }
 0x354   :  { %v1247_v5 = vpop.eup %1246 }
 0x355   :  { %v181_v6 = vadd.f32 1.0, %v1247_v5 }
 0x357   :  { %1248 = vrcp.f32 %v181_v6  ;;  %v193_v12 = vand.u32 2147483648, %v181_v6  ;;  %vm187_vm7 = vweird.f32 %v181_v6  ;;  %v191_v13 = vand.u32 2147483647, %v181_v6 }
 0x359   :  { %v194_v15 = vor.u32 1.1754944e-38, %v193_v12  ;;  %vm192_vm9 = vcmp.eq.f32.partialorder %v191_v13, 8.507059e+37 }
 0x35b   :  { %216 = vrot.lane.b32.xlu0 %v1149_v21, %s1332_s27 }
 0x35d   :  { %v1249_v7 = vpop.eup %1248 }
 0x35e   :  { %v183_v8 = vmul.f32 %v1249_v7, %v181_v6  ;;  %vm188_vm6 = vweird.f32 %v1249_v7 }
 0x35f   :  { %vm189_vm8 = vmor %vm187_vm7, %vm188_vm6 }
 0x360   :  { %v184_v9 = vsub.f32 1.0, %v183_v8 }
 0x362   :  { %v185_v10 = vmul.f32 %v1249_v7, %v184_v9 }
 0x364   :  { %v186_v11 = vadd.f32 %v1249_v7, %v185_v10 }
 0x366   :  { %v190_v14 = vsel %vm189_vm8, %v1249_v7, %v186_v11 }
 0x367   :  { %v195_v18 = vsel %vm192_vm9, %v194_v15, %v190_v14 }
 0x368   :  { %v198_v22 = vmul.f32 %v195_v18, %v128_v50 }
 0x3c5   :  { %v201_v17 = vpop.permute.xlu0 %200 }
 0x3c6   :  { %v203_v19 = vmul.f32 %v201_v17, %v195_v18 }
 0x3c8   :  { %205 = vrot.lane.b32.xlu1 %v203_v19, %s1332_s27 }
 0x3cd   :  { %v217_v28 = vpop.permute.xlu0 %216 }
 0x3ce   :  { %v219_v29 = vsel %vm58_vm0, %v1148_v27, %v217_v28 }
 0x3cf   :  { %v220_v30 = vpack.c.bf16 %v219_v29, %v219_v29 }
 0x3d1   :  { %1158 = vmatmul.msk.bf16.vlgmr.msrb.gmra.mxu2 %vm77_vm1, %v220_v30 }
 0x43a   :  { %v206_v23 = vpop.permute.xlu1 %205 }
 0x43b   :  { %v208_v24 = vadd.f32 %v206_v23, %v198_v22 }
 0x43d   :  { %1250 = vtanh.f32 %v208_v24 }
 0x443   :  { %v1251_v25 = vpop.eup %1250 }
 0x444   :  { %211 = vrot.lane.b32.xlu2 %v1251_v25, %s1334_s29 }
 0x454   :  { %v253_v35 = vpop.f32.mrf.mxu2 }
 0x45c   :  { %v255_v36 = vpop.f32.mrf.mxu2 }
 0x49e   :  { %v212_v31 = vpop.permute.xlu2 %211 }
 0x49f   :  { %v1497_v32 = vmul.f32 %v212_v31, %v195_v18 }
 0x4a1   :  { %v221_v33 = vpack.c.bf16 %v1497_v32, %v1497_v32 }
 0x4a3   :  { %223 = vrot.lane.b32.xlu1 %v221_v33, %s1332_s27 }
 0x515   :  { %v224_v34 = vpop.permute.xlu1 %223 }
 0x516   :  { %1157 = vmatmul.msk.bf16.vlgmr.msrb.gmra.mxu0 %vm58_vm0, %v224_v34 }
 0x593   :  { %v237_v37 = vpop.f32.mrf.mxu0 }
 0x594   :  { %v254_v38 = vadd.f32 %v253_v35, %v237_v37 }
 0x596   :  { %v257_v39 = vadd.f32 %v1449_v26, %v254_v38 }
 0x598   :  { %1252 = vtanh.f32 %v257_v39  ;;  %v1159_v42 = vmul.f32 -1.442695, %v257_v39 }
 0x59a   :  { %1254 = vpow2.f32 %v1159_v42 }
 0x59b   :  { %v239_v40 = vpop.f32.mrf.mxu0 }
 0x59e   :  { %v1253_v41 = vpop.eup %1252 }
 0x59f   :  { %280 = vrot.lane.b32.xlu2 %v1253_v41, %s1334_s29 }
 0x5a0   :  { %v1255_v43 = vpop.eup %1254 }
 0x5a1   :  { %v261_v44 = vadd.f32 1.0, %v1255_v43 }
 0x5a3   :  { %1256 = vrcp.f32 %v261_v44  ;;  %v273_v51 = vand.u32 2147483648, %v261_v44  ;;  %vm267_vm11 = vweird.f32 %v261_v44  ;;  %v271_v52 = vand.u32 2147483647, %v261_v44 }
 0x5a5   :  { %v274_v55 = vor.u32 1.1754944e-38, %v273_v51  ;;  %vm272_vm13 = vcmp.eq.f32.partialorder %v271_v52, 8.507059e+37 }
 0x5a7   :  { %296 = vrot.lane.b32.xlu2 %v1148_v27, %s1332_s27 }
 0x5a9   :  { %v1257_v45 = vpop.eup %1256 }
 0x5aa   :  { %v263_v46 = vmul.f32 %v1257_v45, %v261_v44  ;;  %vm268_vm10 = vweird.f32 %v1257_v45 }
 0x5ab   :  { %vm269_vm12 = vmor %vm267_vm11, %vm268_vm10 }
 0x5ac   :  { %v264_v48 = vsub.f32 1.0, %v263_v46 }
 0x5ae   :  { %v265_v49 = vmul.f32 %v1257_v45, %v264_v48 }
 0x5b0   :  { %v266_v50 = vadd.f32 %v1257_v45, %v265_v49 }
 0x5b2   :  { %v270_v54 = vsel %vm269_vm12, %v1257_v45, %v266_v50  ;;  %vm543_vm12 = vcmask 130048  }
 0x5b3   :  { %v275_v58 = vsel %vm272_vm13, %v274_v55, %v270_v54 }
 0x5b4   :  { %v278_v60 = vmul.f32 %v275_v58, %v208_v24 }
 0x5f9   :  { %v281_v56 = vpop.permute.xlu2 %280 }
 0x5fa   :  { %v283_v59 = vmul.f32 %v281_v56, %v275_v58 }
 0x5fc   :  { %285 = vrot.lane.b32.xlu0 %v283_v59, %s1332_s27 }
 0x601   :  { %v297_v1 = vpop.permute.xlu2 %296 }
 0x602   :  { %v299_v2 = vsel %vm58_vm0, %v1149_v21, %v297_v1 }
 0x603   :  { %v300_v3 = vpack.c.bf16 %v299_v2, %v299_v2 }
 0x605   :  { %1161 = vmatmul.msk.bf16.vlgmr.msrb.gmra.mxu3 %vm77_vm1, %v300_v3 }
 0x66e   :  { %v286_v61 = vpop.permute.xlu0 %285 }
 0x66f   :  { %v288_v62 = vadd.f32 %v286_v61, %v278_v60 }
 0x671   :  { %1258 = vtanh.f32 %v288_v62 }
 0x677   :  { %v1259_v63 = vpop.eup %1258 }
 0x678   :  { %291 = vrot.lane.b32.xlu1 %v1259_v63, %s1334_s29 }
 0x688   :  { %v333_v7 = vpop.f32.mrf.mxu3 }
 0x690   :  { %v335_v8 = vpop.f32.mrf.mxu3 }
 0x6ea   :  { %v292_v4 = vpop.permute.xlu1 %291 }
 0x6eb   :  { %v1510_v5 = vmul.f32 %v292_v4, %v275_v58 }
 0x6ed   :  { %v301_v6 = vpack.c.bf16 %v1510_v5, %v1510_v5 }
 0x6ef   :  { %303 = vrot.lane.b32.xlu0 %v301_v6, %s1332_s27 }
 0x761   :  { %v304_v9 = vpop.permute.xlu0 %303 }
 0x762   :  { %1160 = vmatmul.msk.bf16.vlgmr.msrb.gmra.mxu1 %vm58_vm0, %v304_v9 }
 0x7df   :  { %v317_v10 = vpop.f32.mrf.mxu1 }
 0x7e0   :  { %v334_v11 = vadd.f32 %v333_v7, %v317_v10 }
 0x7e2   :  { %v337_v12 = vadd.f32 %v1449_v26, %v334_v11 }
 0x7e4   :  { %1260 = vtanh.f32 %v337_v12  ;;  %v1162_v15 = vmul.f32 -1.442695, %v337_v12 }
 0x7e6   :  { %1262 = vpow2.f32 %v1162_v15 }
 0x7e7   :  { %v319_v13 = vpop.f32.mrf.mxu1 }
 0x7ea   :  { %v1261_v14 = vpop.eup %1260 }
 0x7eb   :  { %360 = vrot.lane.b32.xlu1 %v1261_v14, %s1334_s29 }
 0x7ec   :  { %v1263_v17 = vpop.eup %1262 }
 0x7ed   :  { %v341_v18 = vadd.f32 1.0, %v1263_v17 }
 0x7ef   :  { %1264 = vrcp.f32 %v341_v18  ;;  %v353_v25 = vand.u32 2147483648, %v341_v18  ;;  %vm347_vm15 = vweird.f32 %v341_v18  ;;  %v351_v27 = vand.u32 2147483647, %v341_v18 }
 0x7f1   :  { %v354_v29 = vor.u32 1.1754944e-38, %v353_v25  ;;  %vm352_vm3 = vcmp.eq.f32.partialorder %v351_v27, 8.507059e+37 }
 0x7f3   :  { %376 = vrot.lane.b32.xlu1 %v1465_v53, %s1332_s27 }
 0x7f5   :  { %v1265_v19 = vpop.eup %1264 }
 0x7f6   :  { %v343_v21 = vmul.f32 %v1265_v19, %v341_v18  ;;  %vm348_vm14 = vweird.f32 %v1265_v19 }
 0x7f7   :  { %vm349_vm2 = vmor %vm347_vm15, %vm348_vm14 }
 0x7f8   :  { %v344_v22 = vsub.f32 1.0, %v343_v21 }
 0x7fa   :  { %v345_v23 = vmul.f32 %v1265_v19, %v344_v22 }
 0x7fc   :  { %v346_v24 = vadd.f32 %v1265_v19, %v345_v23 }
 0x7fe   :  { %v350_v28 = vsel %vm349_vm2, %v1265_v19, %v346_v24 }
 0x7ff   :  { %v355_v53 = vsel %vm352_vm3, %v354_v29, %v350_v28 }
 0x800   :  { %v358_v33 = vmul.f32 %v355_v53, %v288_v62 }
 0x85d   :  { %v361_v30 = vpop.permute.xlu1 %360 }
 0x85e   :  { %v363_v31 = vmul.f32 %v361_v30, %v355_v53 }
 0x860   :  { %365 = vrot.lane.b32.xlu2 %v363_v31, %s1332_s27 }
 0x865   :  { %v377_v37 = vpop.permute.xlu1 %376 }
 0x866   :  { %v379_v38 = vsel %vm58_vm0, %v1457_v47, %v377_v37 }
 0x867   :  { %v380_v39 = vpack.c.bf16 %v379_v38, %v379_v38 }
 0x869   :  { %1164 = vmatmul.msk.bf16.vlgmr.msra.gmra.mxu2 %vm77_vm1, %v380_v39 }
 0x8ba   :  { %v366_v34 = vpop.permute.xlu2 %365 }
 0x8bb   :  { %v368_v35 = vadd.f32 %v366_v34, %v358_v33 }
 0x8bd   :  { %1266 = vtanh.f32 %v368_v35 }
 0x8c3   :  { %v1267_v36 = vpop.eup %1266 }
 0x8c4   :  { %371 = vrot.lane.b32.xlu0 %v1267_v36, %s1334_s29 }
 0x8ec   :  { %v413_v44 = vpop.f32.mrf.mxu2 }
 0x8f4   :  { %v415_v45 = vpop.f32.mrf.mxu2 }
 0x936   :  { %v372_v40 = vpop.permute.xlu0 %371 }
 0x937   :  { %v1525_v41 = vmul.f32 %v372_v40, %v355_v53 }
 0x939   :  { %v381_v42 = vpack.c.bf16 %v1525_v41, %v1525_v41 }
 0x93b   :  { %383 = vrot.lane.b32.xlu2 %v381_v42, %s1332_s27 }
 0x995   :  { %v384_v43 = vpop.permute.xlu2 %383 }
 0x996   :  { %1163 = vmatmul.msk.bf16.vlgmr.msra.gmra.mxu0 %vm58_vm0, %v384_v43 }
 0xa13   :  { %v397_v46 = vpop.f32.mrf.mxu0 }
 0xa14   :  { %v414_v48 = vadd.f32 %v413_v44, %v397_v46 }
 0xa16   :  { %v417_v47 = vadd.f32 %v1449_v26, %v414_v48  ;;  %v1175_v48 = vld [vmem:[%s1775_s1 + $0x70] sm:$0xff] }
 0xa18   :  { %1268 = vtanh.f32 %v417_v47  ;;  %v1165_v51 = vmul.f32 -1.442695, %v417_v47  ;;  %v1176_v47 = vld [vmem:[%s1775_s1 + $0x78] sm:$0xff] }
 0xa1a   :  { %1270 = vpow2.f32 %v1165_v51  ;;  %v1179_v51 = vld [vmem:[%s1774_s2 + $0x30] sm:$0xff] }
 0xa1b   :  { %v399_v49 = vpop.f32.mrf.mxu0 }
 0xa1c   :  { %v1173_v49 = vld [vmem:[%s1775_s1 + $0x60] sm:$0xff] }
 0xa1e   :  { %v1269_v50 = vpop.eup %1268 }
 0xa1f   :  { %440 = vrot.lane.b32.xlu0 %v1269_v50, %s1334_s29  ;;  %v1561_v50 = vpack.c.bf16 %v1176_v47, %v1175_v48 }
 0xa20   :  { %v1271_v52 = vpop.eup %1270 }
 0xa21   :  { %v421_v54 = vadd.f32 1.0, %v1271_v52  ;;  %v1180_v52 = vld [vmem:[%s1774_s2 + $0x38] sm:$0xff]  ;;  %614 = vmatpush.bf16.msrb.mxu2 %v1561_v50  ;;  %697 = vmatpush.bf16.msrb.mxu3 %v1561_v50 }
 0xa23   :  { %1272 = vrcp.f32 %v421_v54  ;;  %v433_v61 = vand.u32 2147483648, %v421_v54  ;;  %vm427_vm5 = vweird.f32 %v421_v54  ;;  %v431_v62 = vand.u32 2147483647, %v421_v54 }
 0xa25   :  { %v434_v1 = vor.u32 1.1754944e-38, %v433_v61  ;;  %vm432_vm7 = vcmp.eq.f32.partialorder %v431_v62, 8.507059e+37 }
 0xa27   :  { %456 = vrot.lane.b32.xlu0 %v1441_v20, %s1332_s27 }
 0xa29   :  { %v1273_v55 = vpop.eup %1272 }
 0xa2a   :  { %v423_v56 = vmul.f32 %v1273_v55, %v421_v54  ;;  %vm428_vm4 = vweird.f32 %v1273_v55  ;;  %v1572_v54 = vpack.c.bf16 %v1180_v52, %v1179_v51 }
 0xa2b   :  { %vm429_vm6 = vmor %vm427_vm5, %vm428_vm4 }
 0xa2c   :  { %v424_v58 = vsub.f32 1.0, %v423_v56  ;;  %600 = vmatpush.bf16.msrb.mxu0 %v1572_v54  ;;  %683 = vmatpush.bf16.msrb.mxu1 %v1572_v54 }
 0xa2e   :  { %v425_v59 = vmul.f32 %v1273_v55, %v424_v58  ;;  %v1178_v58 = vld [vmem:[%s1774_s2 + $0x28] sm:$0xff] }
 0xa30   :  { %v426_v60 = vadd.f32 %v1273_v55, %v425_v59  ;;  %v1171_v59 = vld [vmem:[%s1775_s1 + $0x50] sm:$0xff] }
 0xa32   :  { %v430_v63 = vsel %vm429_vm6, %v1273_v55, %v426_v60  ;;  %v1177_v55 = vld [vmem:[%s1774_s2 + $0x20] sm:$0xff]  ;;  %v1172_v60 = vld [vmem:[%s1775_s1 + $0x58] sm:$0xff] }
 0xa33   :  { %v435_v20 = vsel %vm432_vm7, %v434_v1, %v430_v63  ;;  %v1591_v61 = vpack.c.bf16 %v1178_v58, %v1177_v55  ;;  %v1595_v62 = vpack.c.bf16 %v1172_v60, %v1171_v59  ;;  %v1169_v63 = vld [vmem:[%s1775_s1 + $0x40] sm:$0xff]  ;;  %v1170_v1 = vld [vmem:[%s1775_s1 + $0x48] sm:$0xff] }
 0xa34   :  { %v438_v4 = vmul.f32 %v435_v20, %v368_v35 }
 0xa35   :  { %601 = vmatpush.bf16.msrb.mxu0 %v1591_v61  ;;  %684 = vmatpush.bf16.msrb.mxu1 %v1591_v61 }
 0xa38   :  { %602 = vmatmul.bf16.vlgmr.msrb.gmra.mxu0 %v1333_v16 }
 0xa39   :  { %763 = vmatpush.bf16.msra.mxu0 %v1572_v54 }
 0xa3d   :  { %764 = vmatpush.bf16.msra.mxu0 %v1591_v61 }
 0xa41   :  { %923 = vmatpush.bf16.msrb.mxu0 %v1572_v54 }
 0xa45   :  { %924 = vmatpush.bf16.msrb.mxu0 %v1591_v61 }
 0xa91   :  { %v441_v2 = vpop.permute.xlu0 %440 }
 0xa92   :  { %v443_v3 = vmul.f32 %v441_v2, %v435_v20  ;;  %v1609_v2 = vpack.c.bf16 %v1170_v1, %v1169_v63 }
 0xa94   :  { %445 = vrot.lane.b32.xlu1 %v443_v3, %s1332_s27 }
 0xa99   :  { %v457_v9 = vpop.permute.xlu0 %456 }
 0xa9a   :  { %v459_v10 = vsel %vm58_vm0, %v1373_v0, %v457_v9 }
 0xa9b   :  { %v460_v11 = vpack.c.bf16 %v459_v10, %v459_v10 }
 0xa9d   :  { %1167 = vmatmul.msk.bf16.vlgmr.msra.gmra.mxu3 %vm77_vm1, %v460_v11 }
 0xb06   :  { %v446_v6 = vpop.permute.xlu1 %445 }
 0xb07   :  { %v448_v7 = vadd.f32 %v446_v6, %v438_v4 }
 0xb09   :  { %1274 = vtanh.f32 %v448_v7 }
 0xb0f   :  { %v1275_v8 = vpop.eup %1274 }
 0xb10   :  { %451 = vrot.lane.b32.xlu2 %v1275_v8, %s1334_s29  ;;  %v603_v8 = vpop.f32.mrf.mxu0 }
 0xb20   :  { %v493_v15 = vpop.f32.mrf.mxu3 }
 0xb28   :  { %v495_v17 = vpop.f32.mrf.mxu3 }
 0xb6a   :  { %v452_v12 = vpop.permute.xlu2 %451 }
 0xb6b   :  { %v1540_v13 = vmul.f32 %v452_v12, %v435_v20  ;;  %v605_v12 = vpop.f32.mrf.mxu0 }
 0xb6d   :  { %v461_v14 = vpack.c.bf16 %v1540_v13, %v1540_v13 }
 0xb6f   :  { %463 = vrot.lane.b32.xlu1 %v461_v14, %s1332_s27 }
 0xbe1   :  { %v464_v18 = vpop.permute.xlu1 %463 }
 0xbe2   :  { %1166 = vmatmul.msk.bf16.vlgmr.msra.gmra.mxu1 %vm58_vm0, %v464_v18 }
 0xbe3   :  { %843 = vmatpush.bf16.msra.mxu1 %v1572_v54 }
 0xbe7   :  { %844 = vmatpush.bf16.msra.mxu1 %v1591_v61 }
 0xc5f   :  { %v477_v19 = vpop.f32.mrf.mxu1 }
 0xc60   :  { %v494_v21 = vadd.f32 %v493_v15, %v477_v19 }
 0xc62   :  { %v497_v0 = vadd.f32 %v1449_v26, %v494_v21 }
 0xc64   :  { %1276 = vtanh.f32 %v497_v0  ;;  %v1168_v24 = vmul.f32 -1.442695, %v497_v0 }
 0xc66   :  { %1278 = vpow2.f32 %v1168_v24 }
 0xc67   :  { %v479_v22 = vpop.f32.mrf.mxu1 }
 0xc6a   :  { %v1277_v23 = vpop.eup %1276 }
 0xc6b   :  { %520 = vrot.lane.b32.xlu2 %v1277_v23, %s1334_s29 }
 0xc6c   :  { %v1279_v25 = vpop.eup %1278 }
 0xc6d   :  { %v501_v27 = vadd.f32 1.0, %v1279_v25 }
 0xc6f   :  { %1280 = vrcp.f32 %v501_v27  ;;  %v513_v33 = vand.u32 2147483648, %v501_v27  ;;  %vm507_vm9 = vweird.f32 %v501_v27  ;;  %v511_v34 = vand.u32 2147483647, %v501_v27 }
 0xc71   :  { %v514_v35 = vor.u32 1.1754944e-38, %v513_v33  ;;  %vm512_vm11 = vcmp.eq.f32.partialorder %v511_v34, 8.507059e+37 }
 0xc75   :  { %v1281_v28 = vpop.eup %1280 }
 0xc76   :  { %v503_v29 = vmul.f32 %v1281_v28, %v501_v27  ;;  %vm508_vm8 = vweird.f32 %v1281_v28 }
 0xc77   :  { %vm509_vm10 = vmor %vm507_vm9, %vm508_vm8 }
 0xc78   :  { %v504_v30 = vsub.f32 1.0, %v503_v29 }
 0xc7a   :  { %v505_v53 = vmul.f32 %v1281_v28, %v504_v30 }
 0xc7c   :  { %v506_v31 = vadd.f32 %v1281_v28, %v505_v53 }
 0xc7e   :  { %v510_v26 = vsel %vm509_vm10, %v1281_v28, %v506_v31 }
 0xc7f   :  { %v515_v37 = vsel %vm512_vm11, %v514_v35, %v510_v26 }
 0xc80   :  { %v518_v39 = vmul.f32 %v515_v37, %v448_v7  ;;  %v1208_v7 = vpack.i.bf16 %v1540_v13, %v1497_v32  ;;  %v1651_v13 = vld [vmem:[%s1776_s3 + $0x1] ss:$0 sm:$0xff] }
 0xcc5   :  { %v521_v36 = vpop.permute.xlu2 %520 }
 0xcc6   :  { %v523_v38 = vmul.f32 %v521_v36, %v515_v37 }
 0xcc8   :  { %525 = vrot.lane.b32.xlu0 %v523_v38, %s1332_s27 }
 0xd3a   :  { %v526_v40 = vpop.permute.xlu0 %525 }
 0xd3b   :  { %v528_v42 = vadd.f32 %v526_v40, %v518_v39 }
 0xd3d   :  { %1282 = vtanh.f32 %v528_v42 }
 0xd43   :  { %v1283_v43 = vpop.eup %1282 }
 0xd44   :  { %531 = vrot.lane.b32.xlu1 %v1283_v43, %s1334_s29 }
 0xdb6   :  { %v532_v44 = vpop.permute.xlu1 %531 }
 0xdb7   :  { %v534_v45 = vmul.f32 %v532_v44, %v515_v37 }
 0xdb9   :  { %v1203_v46 = vpack.i.bf16 %v534_v45, %v1474_v57  ;;  %v1174_v57 = vld [vmem:[%s1775_s1 + $0x68] sm:$0xff] }
 0xdba   :  { %v1578_v56 = vpack.c.bf16 %v1174_v57, %v1173_v49  ;;  %v1213_v57 = vpack.i.bf16 %v1525_v41, %v1510_v5 }
 0xdbb   :  { %1204 = vrot.lane.b32.xlu2 %v1203_v46, %s1332_s27 }
 0xdbc   :  { %615 = vmatpush.bf16.msrb.mxu2 %v1578_v56  ;;  %698 = vmatpush.bf16.msrb.mxu3 %v1578_v56 }
 0xdc0   :  { %616 = vmatpush.bf16.msrb.mxu2 %v1595_v62  ;;  %699 = vmatpush.bf16.msrb.mxu3 %v1595_v62 }
 0xdc4   :  { %617 = vmatpush.bf16.msrb.mxu2 %v1609_v2  ;;  %700 = vmatpush.bf16.msrb.mxu3 %v1609_v2 }
 0xdc8   :  { %777 = vmatpush.bf16.msra.mxu2 %v1561_v50  ;;  %857 = vmatpush.bf16.msra.mxu3 %v1561_v50 }
 0xdcc   :  { %778 = vmatpush.bf16.msra.mxu2 %v1578_v56  ;;  %858 = vmatpush.bf16.msra.mxu3 %v1578_v56 }
 0xdd0   :  { %779 = vmatpush.bf16.msra.mxu2 %v1595_v62  ;;  %859 = vmatpush.bf16.msra.mxu3 %v1595_v62 }
 0xdd4   :  { %780 = vmatpush.bf16.msra.mxu2 %v1609_v2  ;;  %860 = vmatpush.bf16.msra.mxu3 %v1609_v2 }
 0xe15   :  { %v1205_v20 = vpop.permute.xlu2 %1204 }
 0xe16   :  { %v1207_v16 = vunpack.i.h.bf16 %v1205_v20  ;;  %v1206_v3 = vunpack.i.l.bf16 %v1205_v20 }
 0xe18   :  { %v1624_v4 = vsel %vm543_vm12, %v1207_v16, %v1206_v3  ;;  %v1627_v6 = vsel %vm543_vm12, %v1206_v3, %v1207_v16 }
 0xe19   :  { %589 = vrot.lane.b32.xlu0 %v1624_v4, %s1332_s27 }
 0xe21   :  { %1209 = vrot.lane.b32.xlu0 %v1208_v7, %s1332_s27 }
 0xe8b   :  { %v590_v9 = vpop.permute.xlu0 %589 }
 0xe8c   :  { %v592_v10 = vsel %vm58_vm0, %v1627_v6, %v590_v9 }
 0xe8d   :  { %v593_v11 = vpack.c.bf16 %v592_v10, %v592_v10 }
 0xe8f   :  { %1182 = vmatmul.msk.bf16.vlgmr.msrb.gmra.mxu2 %vm77_vm1, %v593_v11 }
 0xe90   :  { %937 = vmatpush.bf16.msrb.mxu2 %v1561_v50 }
 0xe93   :  { %v1210_v14 = vpop.permute.xlu0 %1209 }
 0xe94   :  { %v1212_v15 = vunpack.i.h.bf16 %v1210_v14  ;;  %v1211_v17 = vunpack.i.l.bf16 %v1210_v14  ;;  %938 = vmatpush.bf16.msrb.mxu2 %v1578_v56 }
 0xe96   :  { %v1644_v32 = vsel %vm543_vm12, %v1211_v17, %v1212_v15  ;;  %v1657_v38 = vsel %vm543_vm12, %v1212_v15, %v1211_v17 }
 0xe98   :  { %939 = vmatpush.bf16.msrb.mxu2 %v1595_v62 }
 0xe9c   :  { %940 = vmatpush.bf16.msrb.mxu2 %v1609_v2 }
 0xf12   :  { %v619_v18 = vpop.f32.mrf.mxu2 }
 0xf13   :  { %v620_v19 = vadd.f32 %v619_v18, %v603_v8 }
 0xf15   :  { %v626_v21 = vadd.f32 %v1651_v13, %v620_v19 }
 0xf17   :  { %1284 = vtanh.f32 %v626_v21  ;;  %v1183_v23 = vmul.f32 -1.442695, %v626_v21 }
 0xf19   :  { %1286 = vpow2.f32 %v1183_v23 }
 0xf1a   :  { %v621_v0 = vpop.f32.mrf.mxu2 }
 0xf1d   :  { %v1285_v22 = vpop.eup %1284 }
 0xf1e   :  { %649 = vrot.lane.b32.xlu1 %v1285_v22, %s1334_s29 }
 0xf1f   :  { %v1287_v24 = vpop.eup %1286 }
 0xf20   :  { %v630_v25 = vadd.f32 1.0, %v1287_v24 }
 0xf22   :  { %1288 = vrcp.f32 %v630_v25  ;;  %v642_v31 = vand.u32 2147483648, %v630_v25  ;;  %vm636_vm14 = vweird.f32 %v630_v25  ;;  %v640_v33 = vand.u32 2147483647, %v630_v25 }
 0xf24   :  { %v643_v26 = vor.u32 1.1754944e-38, %v642_v31  ;;  %vm641_vm2 = vcmp.eq.f32.partialorder %v640_v33, 8.507059e+37 }
 0xf28   :  { %v1289_v27 = vpop.eup %1288 }
 0xf29   :  { %v632_v28 = vmul.f32 %v1289_v27, %v630_v25  ;;  %vm637_vm13 = vweird.f32 %v1289_v27 }
 0xf2a   :  { %vm638_vm15 = vmor %vm636_vm14, %vm637_vm13 }
 0xf2b   :  { %v633_v29 = vsub.f32 1.0, %v632_v28 }
 0xf2d   :  { %v634_v30 = vmul.f32 %v1289_v27, %v633_v29 }
 0xf2f   :  { %v635_v53 = vadd.f32 %v1289_v27, %v634_v30 }
 0xf31   :  { %v639_v34 = vsel %vm638_vm15, %v1289_v27, %v635_v53 }
 0xf32   :  { %v644_v36 = vsel %vm641_vm2, %v643_v26, %v639_v34 }
 0xf33   :  { %v647_v39 = vmul.f32 0.0, %v644_v36 }
 0xf90   :  { %v650_v35 = vpop.permute.xlu1 %649 }
 0xf91   :  { %v652_v37 = vmul.f32 %v650_v35, %v644_v36 }
 0xf93   :  { %654 = vrot.lane.b32.xlu2 %v652_v37, %s1332_s27 }
 0xf9b   :  { %665 = vrot.lane.b32.xlu2 %v1657_v38, %s1332_s27 }
 0xfed   :  { %v655_v40 = vpop.permute.xlu2 %654 }
 0xfee   :  { %v657_v42 = vadd.f32 %v655_v40, %v647_v39 }
 0xff0   :  { %1290 = vtanh.f32 %v657_v42 }
 0xff5   :  { %v666_v43 = vpop.permute.xlu2 %665 }
 0xff6   :  { %v1291_v44 = vpop.eup %1290  ;;  %v668_v45 = vsel %vm58_vm0, %v1644_v32, %v666_v43 }
 0xff7   :  { %v669_v46 = vpack.c.bf16 %v668_v45, %v668_v45  ;;  %660 = vrot.lane.b32.xlu1 %v1291_v44, %s1334_s29 }
 0xff9   :  { %1185 = vmatmul.msk.bf16.vlgmr.msrb.gmra.mxu3 %vm77_vm1, %v669_v46 }
 0xffa   :  { %1017 = vmatpush.bf16.msrb.mxu3 %v1561_v50 }
 0xffe   :  { %1018 = vmatpush.bf16.msrb.mxu3 %v1578_v56 }
0x1002   :  { %1019 = vmatpush.bf16.msrb.mxu3 %v1595_v62 }
0x1006   :  { %1020 = vmatpush.bf16.msrb.mxu3 %v1609_v2 }
0x1069   :  { %v661_v48 = vpop.permute.xlu1 %660 }
0x106a   :  { %v1669_v47 = vmul.f32 %v661_v48, %v644_v36 }
0x106c   :  { %v670_v49 = vpack.c.bf16 %v1669_v47, %v1669_v47 }
0x106e   :  { %672 = vrot.lane.b32.xlu0 %v670_v49, %s1332_s27 }
0x1076   :  { %1214 = vrot.lane.b32.xlu0 %v1213_v57, %s1332_s27 }
0x107c   :  { %v702_v50 = vpop.f32.mrf.mxu3 }
0x1084   :  { %v704_v51 = vpop.f32.mrf.mxu3 }
0x10e0   :  { %v673_v52 = vpop.permute.xlu0 %672 }
0x10e1   :  { %1184 = vmatmul.msk.bf16.vlgmr.msrb.gmra.mxu1 %vm58_vm0, %v673_v52 }
0x10e2   :  { %1003 = vmatpush.bf16.msrb.mxu1 %v1572_v54 }
0x10e6   :  { %1004 = vmatpush.bf16.msrb.mxu1 %v1591_v61 }
0x10e8   :  { %v1215_v55 = vpop.permute.xlu0 %1214 }
0x10e9   :  { %v1217_v56 = vunpack.i.h.bf16 %v1215_v55  ;;  %v1216_v58 = vunpack.i.l.bf16 %v1215_v55 }
0x10eb   :  { %v562_v59 = vsel %vm543_vm12, %v1216_v58, %v1217_v56  ;;  %v563_v17 = vsel %vm543_vm12, %v1217_v56, %v1216_v58 }
0x115e   :  { %v686_v60 = vpop.f32.mrf.mxu1 }
0x115f   :  { %v703_v62 = vadd.f32 %v702_v50, %v686_v60 }
0x1161   :  { %v706_v5 = vadd.f32 %v1651_v13, %v703_v62 }
0x1163   :  { %1292 = vtanh.f32 %v706_v5  ;;  %v1186_v1 = vmul.f32 -1.442695, %v706_v5 }
0x1165   :  { %1294 = vpow2.f32 %v1186_v1 }
0x1166   :  { %v688_v41 = vpop.f32.mrf.mxu1 }
0x1169   :  { %v1293_v63 = vpop.eup %1292 }
0x116a   :  { %729 = vrot.lane.b32.xlu1 %v1293_v63, %s1334_s29 }
0x116b   :  { %v1295_v2 = vpop.eup %1294 }
0x116c   :  { %v710_v54 = vadd.f32 1.0, %v1295_v2 }
0x116e   :  { %1296 = vrcp.f32 %v710_v54  ;;  %v722_v8 = vand.u32 2147483648, %v710_v54  ;;  %vm716_vm4 = vweird.f32 %v710_v54  ;;  %v720_v9 = vand.u32 2147483647, %v710_v54 }
0x1170   :  { %v723_v11 = vor.u32 1.1754944e-38, %v722_v8  ;;  %vm721_vm6 = vcmp.eq.f32.partialorder %v720_v9, 8.507059e+37 }
0x1174   :  { %v1297_v61 = vpop.eup %1296 }
0x1175   :  { %v712_v20 = vmul.f32 %v1297_v61, %v710_v54  ;;  %vm717_vm3 = vweird.f32 %v1297_v61 }
0x1176   :  { %vm718_vm5 = vmor %vm716_vm4, %vm717_vm3 }
0x1177   :  { %v713_v16 = vsub.f32 1.0, %v712_v20 }
0x1179   :  { %v714_v3 = vmul.f32 %v1297_v61, %v713_v16 }
0x117b   :  { %v715_v7 = vadd.f32 %v1297_v61, %v714_v3 }
0x117d   :  { %v719_v10 = vsel %vm718_vm5, %v1297_v61, %v715_v7 }
0x117e   :  { %v724_v14 = vsel %vm721_vm6, %v723_v11, %v719_v10 }
0x117f   :  { %v727_v18 = vmul.f32 %v724_v14, %v657_v42 }
0x11dc   :  { %v730_v12 = vpop.permute.xlu1 %729 }
0x11dd   :  { %v732_v15 = vmul.f32 %v730_v12, %v724_v14 }
0x11df   :  { %734 = vrot.lane.b32.xlu2 %v732_v15, %s1332_s27 }
0x11e7   :  { %745 = vrot.lane.b32.xlu2 %v563_v17, %s1332_s27 }
0x1239   :  { %v735_v19 = vpop.permute.xlu2 %734 }
0x123a   :  { %v737_v21 = vadd.f32 %v735_v19, %v727_v18 }
0x123c   :  { %1298 = vtanh.f32 %v737_v21 }
0x1241   :  { %v746_v0 = vpop.permute.xlu2 %745 }
0x1242   :  { %v1299_v22 = vpop.eup %1298  ;;  %v748_v23 = vsel %vm58_vm0, %v562_v59, %v746_v0 }
0x1243   :  { %v749_v24 = vpack.c.bf16 %v748_v23, %v748_v23  ;;  %740 = vrot.lane.b32.xlu1 %v1299_v22, %s1334_s29 }
0x1245   :  { %1188 = vmatmul.msk.bf16.vlgmr.msra.gmra.mxu2 %vm77_vm1, %v749_v24 }
0x12b5   :  { %v741_v25 = vpop.permute.xlu1 %740 }
0x12b6   :  { %v1689_v27 = vmul.f32 %v741_v25, %v724_v14 }
0x12b8   :  { %v750_v28 = vpack.c.bf16 %v1689_v27, %v1689_v27 }
0x12ba   :  { %752 = vrot.lane.b32.xlu0 %v750_v28, %s1332_s27 }
0x12c8   :  { %v782_v29 = vpop.f32.mrf.mxu2 }
0x12d0   :  { %v784_v30 = vpop.f32.mrf.mxu2 }
0x132c   :  { %v753_v53 = vpop.permute.xlu0 %752 }
0x132d   :  { %1187 = vmatmul.msk.bf16.vlgmr.msra.gmra.mxu0 %vm58_vm0, %v753_v53 }
0x13aa   :  { %v766_v31 = vpop.f32.mrf.mxu0 }
0x13ab   :  { %v783_v33 = vadd.f32 %v782_v29, %v766_v31 }
0x13ad   :  { %v786_v34 = vadd.f32 %v1651_v13, %v783_v33 }
0x13af   :  { %1300 = vtanh.f32 %v786_v34  ;;  %v1189_v36 = vmul.f32 -1.442695, %v786_v34 }
0x13b1   :  { %1302 = vpow2.f32 %v1189_v36 }
0x13b2   :  { %v768_v26 = vpop.f32.mrf.mxu0 }
0x13b5   :  { %v1301_v35 = vpop.eup %1300 }
0x13b6   :  { %809 = vrot.lane.b32.xlu1 %v1301_v35, %s1334_s29 }
0x13b7   :  { %v1303_v37 = vpop.eup %1302 }
0x13b8   :  { %v790_v39 = vadd.f32 1.0, %v1303_v37 }
0x13ba   :  { %1304 = vrcp.f32 %v790_v39  ;;  %v802_v46 = vand.u32 2147483648, %v790_v39  ;;  %vm796_vm8 = vweird.f32 %v790_v39  ;;  %v800_v48 = vand.u32 2147483647, %v790_v39 }
0x13bc   :  { %v803_v57 = vor.u32 1.1754944e-38, %v802_v46  ;;  %vm801_vm10 = vcmp.eq.f32.partialorder %v800_v48, 8.507059e+37 }
0x13be   :  { %825 = vrot.lane.b32.xlu1 %v562_v59, %s1332_s27 }
0x13c0   :  { %v1305_v40 = vpop.eup %1304 }
0x13c1   :  { %v792_v42 = vmul.f32 %v1305_v40, %v790_v39  ;;  %vm797_vm7 = vweird.f32 %v1305_v40 }
0x13c2   :  { %vm798_vm9 = vmor %vm796_vm8, %vm797_vm7 }
0x13c3   :  { %v793_v43 = vsub.f32 1.0, %v792_v42 }
0x13c5   :  { %v794_v44 = vmul.f32 %v1305_v40, %v793_v43 }
0x13c7   :  { %v795_v45 = vadd.f32 %v1305_v40, %v794_v44 }
0x13c9   :  { %v799_v49 = vsel %vm798_vm9, %v1305_v40, %v795_v45  ;;  %vm1106_vm9 = vcmask 1041408  }
0x13ca   :  { %v804_v51 = vsel %vm801_vm10, %v803_v57, %v799_v49  ;;  %vm1108_vm10 = vcmask 1043456  }
0x13cb   :  { %v807_v59 = vmul.f32 %v804_v51, %v737_v21 }
0x1428   :  { %v810_v50 = vpop.permute.xlu1 %809 }
0x1429   :  { %v812_v52 = vmul.f32 %v810_v50, %v804_v51 }
0x142b   :  { %814 = vrot.lane.b32.xlu2 %v812_v52, %s1332_s27 }
0x1430   :  { %v826_v55 = vpop.permute.xlu1 %825 }
0x1431   :  { %v828_v56 = vsel %vm58_vm0, %v563_v17, %v826_v55 }
0x1432   :  { %v829_v58 = vpack.c.bf16 %v828_v56, %v828_v56 }
0x1434   :  { %1191 = vmatmul.msk.bf16.vlgmr.msra.gmra.mxu3 %vm77_vm1, %v829_v58 }
0x1485   :  { %v815_v60 = vpop.permute.xlu2 %814 }
0x1486   :  { %v817_v62 = vadd.f32 %v815_v60, %v807_v59 }
0x1488   :  { %1306 = vtanh.f32 %v817_v62 }
0x148e   :  { %v1307_v5 = vpop.eup %1306 }
0x148f   :  { %820 = vrot.lane.b32.xlu0 %v1307_v5, %s1334_s29 }
0x14b7   :  { %v862_v41 = vpop.f32.mrf.mxu3 }
0x14bf   :  { %v864_v63 = vpop.f32.mrf.mxu3 }
0x1501   :  { %v821_v1 = vpop.permute.xlu0 %820 }
0x1502   :  { %v1702_v2 = vmul.f32 %v821_v1, %v804_v51 }
0x1504   :  { %v830_v54 = vpack.c.bf16 %v1702_v2, %v1702_v2 }
0x1506   :  { %832 = vrot.lane.b32.xlu2 %v830_v54, %s1332_s27 }
0x1560   :  { %v833_v61 = vpop.permute.xlu2 %832 }
0x1561   :  { %1190 = vmatmul.msk.bf16.vlgmr.msra.gmra.mxu1 %vm58_vm0, %v833_v61 }
0x15de   :  { %v846_v20 = vpop.f32.mrf.mxu1 }
0x15df   :  { %v863_v16 = vadd.f32 %v862_v41, %v846_v20 }
0x15e1   :  { %v866_v3 = vadd.f32 %v1651_v13, %v863_v16 }
0x15e3   :  { %1308 = vtanh.f32 %v866_v3  ;;  %v1192_v9 = vmul.f32 -1.442695, %v866_v3 }
0x15e5   :  { %1310 = vpow2.f32 %v1192_v9 }
0x15e6   :  { %v848_v7 = vpop.f32.mrf.mxu1 }
0x15e9   :  { %v1309_v8 = vpop.eup %1308 }
0x15ea   :  { %889 = vrot.lane.b32.xlu0 %v1309_v8, %s1334_s29 }
0x15eb   :  { %v1311_v10 = vpop.eup %1310 }
0x15ec   :  { %v870_v11 = vadd.f32 1.0, %v1311_v10 }
0x15ee   :  { %1312 = vrcp.f32 %v870_v11  ;;  %v882_v19 = vand.u32 2147483648, %v870_v11  ;;  %vm876_vm13 = vweird.f32 %v870_v11  ;;  %v880_v21 = vand.u32 2147483647, %v870_v11 }
0x15f0   :  { %v883_v22 = vor.u32 1.1754944e-38, %v882_v19  ;;  %vm881_vm15 = vcmp.eq.f32.partialorder %v880_v21, 8.507059e+37 }
0x15f2   :  { %905 = vrot.lane.b32.xlu0 %v1644_v32, %s1332_s27 }
0x15f4   :  { %v1313_v12 = vpop.eup %1312 }
0x15f5   :  { %v872_v14 = vmul.f32 %v1313_v12, %v870_v11  ;;  %vm877_vm11 = vweird.f32 %v1313_v12 }
0x15f6   :  { %vm878_vm14 = vmor %vm876_vm13, %vm877_vm11  ;;  %vm1110_vm11 = vcmask 1045504  }
0x15f7   :  { %v873_v15 = vsub.f32 1.0, %v872_v14 }
0x15f9   :  { %v874_v17 = vmul.f32 %v1313_v12, %v873_v15 }
0x15fb   :  { %v875_v18 = vadd.f32 %v1313_v12, %v874_v17 }
0x15fd   :  { %v879_v0 = vsel %vm878_vm14, %v1313_v12, %v875_v18 }
0x15fe   :  { %v884_v32 = vsel %vm881_vm15, %v883_v22, %v879_v0 }
0x15ff   :  { %v887_v30 = vmul.f32 %v884_v32, %v817_v62 }
0x165c   :  { %v890_v23 = vpop.permute.xlu0 %889 }
0x165d   :  { %v892_v24 = vmul.f32 %v890_v23, %v884_v32 }
0x165f   :  { %894 = vrot.lane.b32.xlu1 %v892_v24, %s1332_s27 }
0x1664   :  { %v906_v25 = vpop.permute.xlu0 %905 }
0x1665   :  { %v908_v28 = vsel %vm58_vm0, %v1657_v38, %v906_v25 }
0x1666   :  { %v909_v29 = vpack.c.bf16 %v908_v28, %v908_v28 }
0x1668   :  { %1194 = vmatmul.msk.bf16.vlgmr.msrb.gmra.mxu2 %vm77_vm1, %v909_v29 }
0x16d1   :  { %v895_v53 = vpop.permute.xlu1 %894 }
0x16d2   :  { %v897_v31 = vadd.f32 %v895_v53, %v887_v30 }
0x16d4   :  { %1314 = vtanh.f32 %v897_v31 }
0x16da   :  { %v1315_v33 = vpop.eup %1314 }
0x16db   :  { %900 = vrot.lane.b32.xlu2 %v1315_v33, %s1334_s29 }
0x16eb   :  { %v942_v34 = vpop.f32.mrf.mxu2 }
0x16f3   :  { %v944_v26 = vpop.f32.mrf.mxu2 }
0x1735   :  { %v901_v35 = vpop.permute.xlu2 %900 }
0x1736   :  { %v1717_v36 = vmul.f32 %v901_v35, %v884_v32 }
0x1738   :  { %v910_v37 = vpack.c.bf16 %v1717_v36, %v1717_v36 }
0x173a   :  { %912 = vrot.lane.b32.xlu1 %v910_v37, %s1332_s27  ;;  %v1115_v37 = vld [vmem:[%s1777_s4 + $0x10] sm:$0xff] }
0x17ac   :  { %v913_v38 = vpop.permute.xlu1 %912 }
0x17ad   :  { %1193 = vmatmul.msk.bf16.vlgmr.msrb.gmra.mxu0 %vm58_vm0, %v913_v38  ;;  %v1116_v38 = vld [vmem:[%s1777_s4 + $0x18] sm:$0xff] }
0x182a   :  { %v926_v39 = vpop.f32.mrf.mxu0 }
0x182b   :  { %v943_v40 = vadd.f32 %v942_v34, %v926_v39  ;;  %v1118_v39 = vpack.c.bf16 %v1116_v38, %v1115_v37 }
0x182d   :  { %v946_v42 = vadd.f32 %v1651_v13, %v943_v40  ;;  %1133 = vmatpush.bf16.msra.mxu0 %v1118_v39 }
0x182f   :  { %1316 = vtanh.f32 %v946_v42  ;;  %v1195_v45 = vmul.f32 -1.442695, %v946_v42  ;;  %v1113_v42 = vld [vmem:[%s1777_s4] sm:$0xff] }
0x1831   :  { %1318 = vpow2.f32 %v1195_v45 }
0x1832   :  { %v928_v43 = vpop.f32.mrf.mxu0 }
0x1833   :  { %v1114_v43 = vld [vmem:[%s1777_s4 + $0x8] sm:$0xff] }
0x1835   :  { %v1317_v44 = vpop.eup %1316 }
0x1836   :  { %969 = vrot.lane.b32.xlu2 %v1317_v44, %s1334_s29  ;;  %v1117_v44 = vpack.c.bf16 %v1114_v43, %v1113_v42 }
0x1837   :  { %v1319_v46 = vpop.eup %1318 }
0x1838   :  { %v950_v48 = vadd.f32 1.0, %v1319_v46  ;;  %1134 = vmatpush.bf16.msra.mxu0 %v1117_v44 }
0x183a   :  { %1320 = vrcp.f32 %v950_v48  ;;  %v962_v55 = vand.u32 2147483648, %v950_v48  ;;  %vm956_vm3 = vweird.f32 %v950_v48  ;;  %v960_v56 = vand.u32 2147483647, %v950_v48 }
0x183c   :  { %v963_v59 = vor.u32 1.1754944e-38, %v962_v55  ;;  %vm961_vm5 = vcmp.eq.f32.partialorder %v960_v56, 8.507059e+37 }
0x183e   :  { %985 = vrot.lane.b32.xlu2 %v1627_v6, %s1332_s27 }
0x1840   :  { %v1321_v49 = vpop.eup %1320 }
0x1841   :  { %v952_v57 = vmul.f32 %v1321_v49, %v950_v48  ;;  %vm957_vm2 = vweird.f32 %v1321_v49 }
0x1842   :  { %vm958_vm4 = vmor %vm956_vm3, %vm957_vm2 }
0x1843   :  { %v953_v50 = vsub.f32 1.0, %v952_v57 }
0x1845   :  { %v954_v51 = vmul.f32 %v1321_v49, %v953_v50 }
0x1847   :  { %v955_v52 = vadd.f32 %v1321_v49, %v954_v51 }
0x1849   :  { %v959_v58 = vsel %vm958_vm4, %v1321_v49, %v955_v52 }
0x184a   :  { %v964_v6 = vsel %vm961_vm5, %v963_v59, %v959_v58 }
0x184b   :  { %v967_v1 = vmul.f32 %v964_v6, %v897_v31  ;;  %v1223_v31 = vpack.i.bf16 %v1717_v36, %v1702_v2 }
0x1890   :  { %v970_v60 = vpop.permute.xlu2 %969 }
0x1891   :  { %v972_v62 = vmul.f32 %v970_v60, %v964_v6 }
0x1893   :  { %974 = vrot.lane.b32.xlu0 %v972_v62, %s1332_s27 }
0x1898   :  { %v986_v5 = vpop.permute.xlu2 %985 }
0x1899   :  { %v988_v41 = vsel %vm58_vm0, %v1624_v4, %v986_v5 }
0x189a   :  { %v989_v63 = vpack.c.bf16 %v988_v41, %v988_v41 }
0x189c   :  { %1197 = vmatmul.msk.bf16.vlgmr.msrb.gmra.mxu3 %vm77_vm1, %v989_v63 }
0x1905   :  { %v975_v54 = vpop.permute.xlu0 %974 }
0x1906   :  { %v977_v61 = vadd.f32 %v975_v54, %v967_v1 }
0x1908   :  { %1322 = vtanh.f32 %v977_v61 }
0x190e   :  { %v1323_v20 = vpop.eup %1322 }
0x190f   :  { %980 = vrot.lane.b32.xlu1 %v1323_v20, %s1334_s29 }
0x191f   :  { %v1022_v16 = vpop.f32.mrf.mxu3 }
0x1927   :  { %v1024_v3 = vpop.f32.mrf.mxu3 }
0x1928   :  { %v1235_v3 = vld [vmem:[%s1778_s5] ss:$0 sm:$0xff] }
0x1981   :  { %v981_v7 = vpop.permute.xlu1 %980 }
0x1982   :  { %v983_v8 = vmul.f32 %v981_v7, %v964_v6 }
0x1984   :  { %v990_v9 = vpack.c.bf16 %v983_v8, %v983_v8  ;;  %v1218_v17 = vpack.i.bf16 %v983_v8, %v1689_v27 }
0x1986   :  { %992 = vrot.lane.b32.xlu0 %v990_v9, %s1332_s27 }
0x19f8   :  { %v993_v10 = vpop.permute.xlu0 %992 }
0x19f9   :  { %1196 = vmatmul.msk.bf16.vlgmr.msrb.gmra.mxu1 %vm58_vm0, %v993_v10 }
0x1a76   :  { %v1006_v4 = vpop.f32.mrf.mxu1 }
0x1a77   :  { %v1023_v11 = vadd.f32 %v1022_v16, %v1006_v4 }
0x1a79   :  { %v1026_v12 = vadd.f32 %v1651_v13, %v1023_v11 }
0x1a7b   :  { %1324 = vtanh.f32 %v1026_v12  ;;  %v1198_v18 = vmul.f32 -1.442695, %v1026_v12 }
0x1a7d   :  { %1326 = vpow2.f32 %v1198_v18 }
0x1a7e   :  { %v1008_v14 = vpop.f32.mrf.mxu1 }
0x1a81   :  { %v1325_v15 = vpop.eup %1324 }
0x1a82   :  { %1049 = vrot.lane.b32.xlu1 %v1325_v15, %s1334_s29 }
0x1a83   :  { %v1327_v19 = vpop.eup %1326 }
0x1a84   :  { %v1030_v21 = vadd.f32 1.0, %v1327_v19 }
0x1a86   :  { %1328 = vrcp.f32 %v1030_v21  ;;  %v1042_v13 = vand.u32 2147483648, %v1030_v21  ;;  %vm1036_vm6 = vweird.f32 %v1030_v21  ;;  %v1040_v25 = vand.u32 2147483647, %v1030_v21 }
0x1a88   :  { %v1043_v29 = vor.u32 1.1754944e-38, %v1042_v13  ;;  %vm1041_vm8 = vcmp.eq.f32.partialorder %v1040_v25, 8.507059e+37 }
0x1a8a   :  { %1219 = vrot.lane.b32.xlu1 %v1218_v17, %s1332_s27 }
0x1a8c   :  { %v1329_v0 = vpop.eup %1328 }
0x1a8d   :  { %v1032_v22 = vmul.f32 %v1329_v0, %v1030_v21  ;;  %vm1037_vm1 = vweird.f32 %v1329_v0 }
0x1a8e   :  { %vm1038_vm7 = vmor %vm1036_vm6, %vm1037_vm1 }
0x1a8f   :  { %v1033_v23 = vsub.f32 1.0, %v1032_v22 }
0x1a91   :  { %v1034_v32 = vmul.f32 %v1329_v0, %v1033_v23 }
0x1a93   :  { %v1035_v24 = vadd.f32 %v1329_v0, %v1034_v32 }
0x1a95   :  { %v1039_v28 = vsel %vm1038_vm7, %v1329_v0, %v1035_v24 }
0x1a96   :  { %v1044_v30 = vsel %vm1041_vm8, %v1043_v29, %v1039_v28 }
0x1a97   :  { %v1047_v33 = vmul.f32 %v1044_v30, %v977_v61 }
0x1af4   :  { %v1050_v27 = vpop.permute.xlu1 %1049 }
0x1af5   :  { %v1052_v53 = vmul.f32 %v1050_v27, %v1044_v30 }
0x1af7   :  { %1054 = vrot.lane.b32.xlu2 %v1052_v53, %s1332_s27 }
0x1afc   :  { %v1220_v45 = vpop.permute.xlu1 %1219 }
0x1afd   :  { %v1222_v48 = vunpack.i.h.bf16 %v1220_v45  ;;  %v1221_v49 = vunpack.i.l.bf16 %v1220_v45 }
0x1aff   :  { %1224 = vrot.lane.b32.xlu2 %v1223_v31, %s1332_s27  ;;  %v1092_v1 = vsel %vm543_vm12, %v1222_v48, %v1221_v49 }
0x1b51   :  { %v1055_v34 = vpop.permute.xlu2 %1054 }
0x1b52   :  { %v1057_v26 = vadd.f32 %v1055_v34, %v1047_v33 }
0x1b54   :  { %1330 = vtanh.f32 %v1057_v26 }
0x1b59   :  { %v1225_v46 = vpop.permute.xlu2 %1224 }
0x1b5a   :  { %v1331_v35 = vpop.eup %1330  ;;  %v1227_v57 = vunpack.i.h.bf16 %v1225_v46  ;;  %v1226_v50 = vunpack.i.l.bf16 %v1225_v46 }
0x1b5b   :  { %1060 = vrot.lane.b32.xlu0 %v1331_v35, %s1334_s29 }
0x1b5c   :  { %v1090_v51 = vsel %vm543_vm12, %v1226_v50, %v1227_v57  ;;  %v1091_v55 = vsel %vm543_vm12, %v1227_v57, %v1226_v50 }
0x1b5d   :  { %v1098_v60 = vrot.slane %v1090_v51, 4  ;;  %v1101_v5 = vrot.slane %v1091_v55, 2 }
0x1bcd   :  { %v1061_v2 = vpop.permute.xlu0 %1060 }
0x1bce   :  { %v1063_v36 = vmul.f32 %v1061_v2, %v1044_v30 }
0x1bd0   :  { %v1228_v40 = vpack.i.bf16 %v1063_v36, %v1669_v47  ;;  %v1081_v47 = vsel %vm543_vm12, %v1221_v49, %v1222_v48 }
0x1bd1   :  { %v1095_v59 = vrot.slane %v1081_v47, 6 }
0x1bd2   :  { %1229 = vrot.lane.b32.xlu0 %v1228_v40, %s1332_s27 }
0x1c44   :  { %v1230_v52 = vpop.permute.xlu0 %1229 }
0x1c45   :  { %v1232_v56 = vunpack.i.h.bf16 %v1230_v52  ;;  %v1231_v58 = vunpack.i.l.bf16 %v1230_v52 }
0x1c47   :  { %v1072_v6 = vsel %vm543_vm12, %v1231_v58, %v1232_v56  ;;  %v1093_v62 = vsel %vm543_vm12, %v1232_v56, %v1231_v58 }
0x1c48   :  { %v1104_v41 = vrot.slane %v1093_v62, 6  ;;  %v1107_v63 = vsel %vm1106_vm9, %v1072_v6, %v1095_v59 }
0x1c49   :  { %v1109_v54 = vsel %vm1108_vm10, %v1107_v63, %v1098_v60 }
0x1c4a   :  { %v1111_v61 = vsel %vm1110_vm11, %v1109_v54, %v1101_v5  ;;  %v1112_v20 = vsel %vm1106_vm9, %v1092_v1, %v1104_v41 }
0x1c4b   :  { %v1119_v16 = vpack.c.bf16 %v1112_v20, %v1111_v61 }
0x1c4d   :  { %1199 = vmatmul.msk.bf16.vlgmr.msra.gmra.mxu0 %vm58_vm0, %v1119_v16 }
0x1cca   :  { %v1136_v7 = vpop.f32.mrf.mxu0 }
0x1ccb   :  { %v1137_v8 = vadd.f32 %v1235_v3, %v1136_v7 }
0x1ccd   :  { %1141 = vst [vmem:[%s1779_s6] sm:$0xff] %v1137_v8 }
0x1cd2   :  { %v1138_v9 = vpop.f32.mrf.mxu0 }
0x1cd3   :  { %v1139_v10 = vadd.f32 %v1235_v3, %v1138_v9 }
0x1cd5   :  { %1142 = vst [vmem:[%s1779_s6 + $0x8] sm:$0xf] %v1139_v10 }

// kernel: bert_ner_forward.2
= control target key start
LH: loop header
LB: loop body
LE: loop exit
PB: predicated region body
PF: predicated region fallthrough
CT: control target
= control target key end

     0   :  { %vm58_vm0 = vcmask 261120   ;;  %v1555_v4 = vmov 32.0   ;;  %s1556_s24 = smov 96   ;;  %s1558_s25 = smov 80   ;;  %vm189_vm8 = vcmask 130048   ;;  %vm228_vm9 = vcmask 1043456   ;;  %s2007_s0 = inlined_call_operand.vmem [shape: f32[16,32], index: 0, kind: input, shape index: {}]   ;;  %s2008_s2 = inlined_call_operand.vmem [shape: f32[1,32], index: 2, kind: input, shape index: {}]   ;;  %s2009_s3 = inlined_call_operand.vmem [shape: f32[1,32], index: 3, kind: input, shape index: {}]   ;;  %s2010_s5 = inlined_call_operand.vmem [shape: f32[2,1,96], index: 5, kind: input, shape index: {}]   ;;  %s2011_s4 = inlined_call_operand.vmem [shape: f32[2,32,96], index: 4, kind: input, shape index: {}]   ;;  %s2012_s1 = inlined_call_operand.vmem [shape: f32[2,8], index: 1, kind: input, shape index: {}]   ;;  %s2013_s6 = inlined_call_operand.vmem [shape: f32[2,32,32], index: 6, kind: input, shape index: {}]   ;;  %s2014_s7 = inlined_call_operand.vmem [shape: f32[2,1,32], index: 7, kind: input, shape index: {}]   ;;  %s2015_s8 = inlined_call_operand.vmem [shape: f32[2,1,32], index: 8, kind: input, shape index: {}]   ;;  %s2016_s9 = inlined_call_operand.vmem [shape: f32[2,1,32], index: 9, kind: input, shape index: {}]   ;;  %s2017_s11 = inlined_call_operand.vmem [shape: f32[2,1,64], index: 11, kind: input, shape index: {}]   ;;  %s2018_s10 = inlined_call_operand.vmem [shape: f32[2,32,64], index: 10, kind: input, shape index: {}]   ;;  %s2019_s12 = inlined_call_operand.vmem [shape: f32[2,64,32], index: 12, kind: input, shape index: {}]   ;;  %s2020_s13 = inlined_call_operand.vmem [shape: f32[2,1,32], index: 13, kind: input, shape index: {}]   ;;  %s2021_s14 = inlined_call_operand.vmem [shape: f32[2,1,32], index: 14, kind: input, shape index: {}]   ;;  %s2022_s15 = inlined_call_operand.vmem [shape: f32[2,1,32], index: 15, kind: input, shape index: {}]   ;;  %s2023_s16 = inlined_call_operand.vmem [shape: f32[16,32], index: 16, kind: output, shape index: {}]  }
   0x1   :  { %2025 = sst [smem:[#allocation2_spill]] %s2007_s0  ;;  %1493 = vrcp.f32 %v1555_v4  ;;  %v125_v21 = vld [vmem:[%s2011_s4 + $0x10] sm:$0xff]  ;;  %v126_v22 = vld [vmem:[%s2011_s4 + $0x18] sm:$0xff]  ;;  %v123_v24 = vld [vmem:[%s2011_s4] sm:$0xff]  ;;  %s1559_s26 = smov 64   ;;  %vm209_vm10 = vcmask 64512  }
   0x2   :  { %s2026_s23 = sld [smem:[#allocation2_spill]]  ;;  %v129_v23 = vpack.c.bf16 %v126_v22, %v125_v21  ;;  %v124_v25 = vld [vmem:[%s2011_s4 + $0x8] sm:$0xff]  ;;  %v1475_v46 = vld [vmem:[%s2008_s2] ss:$0 sm:$0xff]  ;;  %s1561_s18 = smov 16  }
   0x3   :  { %v128_v27 = vpack.c.bf16 %v124_v25, %v123_v24  ;;  %v1476_v51 = vld [vmem:[%s2009_s3] ss:$0 sm:$0xff]  ;;  %s1557_s3 = smov 112  }
   0x4   :  { %143 = vmatpush.bf16.msra.mxu0 %v129_v23  ;;  %v1477_v56 = vld [vmem:[%s2010_s5] ss:$0 sm:$0xff] }
   0x7   :  { %v1494_v5 = vpop.eup %1493 }
   0x8   :  { %v54_v0 = vld [vmem:[%s2026_s23] sm:$0xff]  ;;  %v55_v2 = vld [vmem:[%s2026_s23 + $0x8] sm:$0xff]  ;;  %v66_v6 = vmul.f32 32.0, %v1494_v5  ;;  %vm70_vm1 = vweird.f32 %v1494_v5  ;;  %144 = vmatpush.bf16.msra.mxu0 %v128_v27 }
   0x9   :  { %v59_v1 = vsel %vm58_vm0, %v54_v0, 0.0  ;;  %v62_v3 = vsel %vm58_vm0, %v55_v2, 0.0 }
   0xa   :  { %60 = vadd.xlane.f32.xlu0 %v59_v1  ;;  %v67_v7 = vsub.f32 1.0, %v66_v6 }
   0xc   :  { %v68_v8 = vmul.f32 %v1494_v5, %v67_v7 }
   0xe   :  { %v69_v9 = vadd.f32 %v1494_v5, %v68_v8 }
  0x10   :  { %v1655_v10 = vsel %vm70_vm1, %v1494_v5, %v69_v9 }
  0x12   :  { %63 = vadd.xlane.f32.xlu0 %v62_v3 }
  0x7d   :  { %v61_v11 = vpop.xlane.xlu0 %60 }
  0x7e   :  { %v72_v12 = vmul.f32 %v1655_v10, %v61_v11 }
  0x80   :  { %v74_v13 = vsub.f32 %v54_v0, %v72_v12 }
  0x82   :  { %v76_v14 = vmul.f32 %v74_v13, %v74_v13 }
  0x84   :  { %v78_v15 = vsel %vm58_vm0, %v76_v14, 0.0 }
  0x85   :  { %79 = vadd.xlane.f32.xlu1 %v78_v15  ;;  %v64_v16 = vpop.xlane.xlu0 %63 }
  0x86   :  { %v73_v17 = vmul.f32 %v1655_v10, %v64_v16 }
  0x88   :  { %v75_v18 = vsub.f32 %v55_v2, %v73_v17 }
  0x8a   :  { %v77_v19 = vmul.f32 %v75_v18, %v75_v18 }
  0x8c   :  { %v81_v20 = vsel %vm58_vm0, %v77_v19, 0.0 }
  0x8d   :  { %82 = vadd.xlane.f32.xlu1 %v81_v20 }
  0xf8   :  { %v80_v26 = vpop.xlane.xlu1 %79 }
  0xf9   :  { %v84_v28 = vmul.f32 %v80_v26, %v1655_v10 }
  0xfb   :  { %v86_v29 = vadd.f32 1e-12, %v84_v28 }
  0xfd   :  { %1495 = vrsqrt.f32 %v86_v29  ;;  %vm94_vm3 = vweird.f32 %v86_v29 }
 0x100   :  { %v83_v30 = vpop.xlane.xlu1 %82 }
 0x101   :  { %v85_v31 = vmul.f32 %v83_v30, %v1655_v10 }
 0x103   :  { %v1496_v32 = vpop.eup %1495  ;;  %v87_v33 = vadd.f32 1e-12, %v85_v31 }
 0x104   :  { %v89_v34 = vmul.f32 %v1496_v32, %v86_v29  ;;  %vm95_vm2 = vweird.f32 %v1496_v32 }
 0x105   :  { %1497 = vrsqrt.f32 %v87_v33  ;;  %vm96_vm4 = vmor %vm94_vm3, %vm95_vm2  ;;  %vm104_vm6 = vweird.f32 %v87_v33  ;;  %vm671_vm2 = vcmask 523264  }
 0x106   :  { %v90_v35 = vmul.f32 %v1496_v32, %v89_v34 }
 0x108   :  { %v91_v36 = vmul.f32 0.5, %v90_v35 }
 0x10a   :  { %v92_v37 = vsub.f32 1.5, %v91_v36 }
 0x10b   :  { %v1498_v38 = vpop.eup %1497 }
 0x10c   :  { %v93_v39 = vmul.f32 %v1496_v32, %v92_v37  ;;  %v99_v40 = vmul.f32 %v1498_v38, %v87_v33  ;;  %vm105_vm5 = vweird.f32 %v1498_v38 }
 0x10d   :  { %vm106_vm7 = vmor %vm104_vm6, %vm105_vm5 }
 0x10e   :  { %v100_v41 = vmul.f32 %v1498_v38, %v99_v40  ;;  %v97_v42 = vsel %vm96_vm4, %v1496_v32, %v93_v39 }
 0x10f   :  { %v108_v45 = vmul.f32 %v97_v42, %v74_v13 }
 0x110   :  { %v101_v43 = vmul.f32 0.5, %v100_v41 }
 0x111   :  { %v113_v50 = vmul.f32 %v1475_v46, %v108_v45 }
 0x112   :  { %v102_v44 = vsub.f32 1.5, %v101_v43 }
 0x113   :  { %v1681_v53 = vadd.f32 %v1476_v51, %v113_v50 }
 0x114   :  { %v103_v47 = vmul.f32 %v1498_v38, %v102_v44 }
 0x116   :  { %v107_v48 = vsel %vm106_vm7, %v1498_v38, %v103_v47 }
 0x117   :  { %v109_v49 = vmul.f32 %v107_v48, %v75_v18  ;;  %v120_v18 = vld [vmem:[%s2012_s1] sm:$0x3]  ;;  %s1560_s1 = smov 48  }
 0x118   :  { %v121_v19 = vsub.f32 1.0, %v120_v18 }
 0x119   :  { %v114_v52 = vmul.f32 %v1475_v46, %v109_v49 }
 0x11a   :  { %v122_v20 = vmul.f32 -1e+09, %v121_v19 }
 0x11b   :  { %v1683_v54 = vadd.f32 %v1476_v51, %v114_v52 }
 0x11c   :  { %v1711_v21 = vperm.slane %v122_v20, 0  ;;  %v1716_v27 = vperm.slane %v122_v20, 1 }
 0x11d   :  { %v127_v55 = vpack.c.bf16 %v1683_v54, %v1681_v53 }
 0x11f   :  { %1395 = vmatmul.msk.bf16.vlgmr.msra.gmra.mxu0 %vm58_vm0, %v127_v55 }
 0x19c   :  { %v146_v57 = vpop.f32.mrf.mxu0 }
 0x19d   :  { %v147_v58 = vadd.f32 %v1477_v56, %v146_v57 }
 0x19f   :  { %v1691_v59 = vpack.c.bf16 %v147_v58, %v147_v58  ;;  %152 = vrot.lane.b32.xlu2 %v147_v58, %s1556_s24 }
 0x1a1   :  { %281 = vrot.lane.b32.xlu0 %v1691_v59, %s1557_s3 }
 0x1a4   :  { %v148_v60 = vpop.f32.mrf.mxu0 }
 0x1a5   :  { %v149_v61 = vadd.f32 %v1477_v56, %v148_v60 }
 0x1a7   :  { %v1455_v62 = vpack.i.bf16 %v149_v61, %v147_v58  ;;  %v1697_v3 = vpack.c.bf16 %v149_v61, %v149_v61 }
 0x1a9   :  { %1456 = vrot.lane.b32.xlu1 %v1455_v62, %s1558_s25 }
 0x1f9   :  { %v153_v63 = vpop.permute.xlu2 %152 }
 0x1fa   :  { %155 = vxpose.xlu2.b32.start.end [1/1] (short) (narrow) %v153_v63, 16 }
 0x213   :  { %v282_v7 = vpop.permute.xlu0 %281 }
 0x21b   :  { %v1457_v0 = vpop.permute.xlu1 %1456 }
 0x21c   :  { %v1458_v1 = vunpack.i.l.bf16 %v1457_v0  ;;  %v1459_v2 = vunpack.i.h.bf16 %v1457_v0 }
 0x21e   :  { %248 = vxpose.xlu1.b32.start.end [1/1] (short) (narrow) %v1458_v1, 16  ;;  %433 = vxpose.xlu0.b32.start.end [1/1] (short) (narrow) %v1459_v2, 16 }
 0x26b   :  { %466 = vrot.lane.b32.xlu2 %v1697_v3, %s1557_s3 }
 0x280   :  { %223 = vrot.lane.b32.xlu1 %v1691_v59, %s1559_s26 }
 0x293   :  { %v171_v4 = vpop.trf.xlu2 }
 0x29b   :  { %v172_v5 = vpop.trf.xlu2 }
 0x29c   :  { %v188_v6 = vpack.c.bf16 %v172_v5, %v171_v4 }
 0x29e   :  { %200 = vmatpush.bf16.msra.mxu1 %v188_v6 }
 0x2a1   :  { %1396 = vmatmul.msk.bf16.vlgmr.msra.gmra.mxu1 %vm189_vm8, %v1691_v59 }
 0x2c2   :  { %v264_v8 = vpop.trf.xlu1  ;;  %v449_v9 = vpop.trf.xlu0 }
 0x2c5   :  { %v467_v15 = vpop.permute.xlu2 %466 }
 0x2ca   :  { %v265_v11 = vpop.trf.xlu1  ;;  %v450_v12 = vpop.trf.xlu0 }
 0x2cb   :  { %v465_v13 = vpack.c.bf16 %v450_v12, %v449_v9  ;;  %v280_v14 = vpack.c.bf16 %v265_v11, %v264_v8 }
 0x2cd   :  { %293 = vmatpush.bf16.msra.mxu3 %v280_v14  ;;  %478 = vmatpush.bf16.msrb.mxu0 %v465_v13 }
 0x2d0   :  { %1398 = vmatmul.msk.bf16.vlgmr.msra.gmra.mxu3 %vm189_vm8, %v282_v7  ;;  %1402 = vmatmul.msk.bf16.vlgmr.msrb.gmra.mxu0 %vm189_vm8, %v467_v15 }
 0x2f2   :  { %v224_v16 = vpop.permute.xlu1 %223 }
 0x2f3   :  { %v230_v17 = vsel %vm228_vm9, %v224_v16, 0 }
 0x2f4   :  { %239 = vmatpush.bf16.msra.mxu2 %v230_v17 }
 0x31e   :  { %v202_v22 = vpop.f32.mrf.mxu1 }
 0x31f   :  { %v206_v23 = vmul.f32 0.25, %v202_v22 }
 0x321   :  { %v208_v24 = vadd.f32 %v1711_v21, %v206_v23 }
 0x323   :  { %v210_v25 = vsel %vm209_vm10, %v208_v24, -inf }
 0x324   :  { %211 = vmax.xlane.f32.xlu0 %v210_v25 }
 0x326   :  { %v204_v26 = vpop.f32.mrf.mxu1 }
 0x338   :  { %340 = vrot.lane.b32.xlu0 %v149_v61, %s1556_s24 }
 0x34d   :  { %v480_v28 = vpop.f32.mrf.mxu0 }
 0x34e   :  { %v484_v29 = vmul.f32 0.25, %v480_v28 }
 0x350   :  { %v485_v30 = vadd.f32 %v484_v29, %v1716_v27 }
 0x352   :  { %v486_v31 = vsel %vm209_vm10, %v485_v30, -inf }
 0x353   :  { %v295_v32 = vpop.f32.mrf.mxu3  ;;  %487 = vmax.xlane.f32.xlu2 %v486_v31  ;;  %v526_v31 = vld [vmem:[%s2013_s6 + $0x10] sm:$0xff] }
 0x354   :  { %v299_v45 = vmul.f32 0.25, %v295_v32  ;;  %v527_v32 = vld [vmem:[%s2013_s6 + $0x18] sm:$0xff] }
 0x355   :  { %v482_v33 = vpop.f32.mrf.mxu0 }
 0x356   :  { %v300_v46 = vadd.f32 %v299_v45, %v1711_v21  ;;  %v530_v33 = vpack.c.bf16 %v527_v32, %v526_v31 }
 0x358   :  { %v301_v47 = vsel %vm209_vm10, %v300_v46, -inf }
 0x35b   :  { %v297_v34 = vpop.f32.mrf.mxu3 }
 0x397   :  { %v212_v35 = vpop.xlane.xlu0 %211 }
 0x398   :  { %v213_v36 = vsub.f32 %v208_v24, %v212_v35 }
 0x39a   :  { %v214_v37 = vmul.f32 1.442695, %v213_v36 }
 0x39c   :  { %1499 = vpow2.f32 %v214_v37 }
 0x3a2   :  { %v1500_v38 = vpop.eup %1499 }
 0x3a3   :  { %v216_v39 = vsel %vm209_vm10, %v1500_v38, 0.0 }
 0x3a4   :  { %217 = vadd.xlane.f32.xlu0 %v216_v39 }
 0x3aa   :  { %v341_v40 = vpop.permute.xlu0 %340 }
 0x3c6   :  { %v488_v61 = vpop.xlane.xlu2 %487 }
 0x3c7   :  { %v489_v62 = vsub.f32 %v485_v30, %v488_v61 }
 0x3c9   :  { %v490_v63 = vmul.f32 1.442695, %v489_v62 }
 0x3cd   :  { %343 = vxpose.xlu0.b32.start.end [1/1] (short) (narrow) %v341_v40, 16  ;;  %v524_v40 = vld [vmem:[%s2013_s6] sm:$0xff] }
 0x417   :  { %v218_v41 = vpop.xlane.xlu0 %217 }
 0x418   :  { %1501 = vrcp.f32 %v218_v41  ;;  %v525_v41 = vld [vmem:[%s2013_s6 + $0x8] sm:$0xff] }
 0x41e   :  { %v1502_v42 = vpop.eup %1501 }
 0x41f   :  { %v220_v43 = vmul.f32 %v1502_v42, %v1500_v38  ;;  %v529_v42 = vpack.c.bf16 %v525_v41, %v524_v40 }
 0x421   :  { %v221_v44 = vpack.c.bf16 %v220_v43, %v220_v43 }
 0x423   :  { %1397 = vmatmul.msk.bf16.vlgmr.msra.gmra.mxu2 %vm209_vm10, %v221_v44 }
 0x446   :  { %302 = vmax.xlane.f32.xlu0 %v301_v47 }
 0x471   :  { %v359_v48 = vpop.trf.xlu0 }
 0x479   :  { %v360_v49 = vpop.trf.xlu0 }
 0x47a   :  { %v376_v50 = vpack.c.bf16 %v360_v49, %v359_v48 }
 0x47c   :  { %387 = vmatpush.bf16.msrb.mxu2 %v376_v50 }
 0x47f   :  { %1400 = vmatmul.msk.bf16.vlgmr.msrb.gmra.mxu2 %vm189_vm8, %v1697_v3 }
 0x480   :  { %540 = vmatpush.bf16.msra.mxu2 %v530_v33  ;;  %v1479_v33 = vld [vmem:[%s2015_s8] ss:$0 sm:$0xff] }
 0x484   :  { %541 = vmatpush.bf16.msra.mxu2 %v529_v42 }
 0x4a6   :  { %v1726_v51 = vpop.f32.mrf.mxu2 }
 0x4ae   :  { %v243_v52 = vpop.f32.mrf.mxu2 }
 0x4af   :  { %v1478_v52 = vld [vmem:[%s2014_s7] ss:$0 sm:$0xff] }
 0x4b9   :  { %v303_v55 = vpop.xlane.xlu0 %302 }
 0x4ba   :  { %v304_v56 = vsub.f32 %v300_v46, %v303_v55 }
 0x4bc   :  { %v305_v57 = vmul.f32 1.442695, %v304_v56 }
 0x4be   :  { %1503 = vpow2.f32 %v305_v57 }
 0x4bf   :  { %1505 = vpow2.f32 %v490_v63 }
 0x4c4   :  { %v1504_v58 = vpop.eup %1503 }
 0x4c5   :  { %v307_v60 = vsel %vm209_vm10, %v1504_v58, 0.0  ;;  %v1506_v1 = vpop.eup %1505 }
 0x4c6   :  { %308 = vadd.xlane.f32.xlu2 %v307_v60  ;;  %v492_v5 = vsel %vm209_vm10, %v1506_v1, 0.0 }
 0x4de   :  { %313 = vrot.lane.b32.xlu2 %v1691_v59, %s1560_s1 }
 0x502   :  { %v389_v0 = vpop.f32.mrf.mxu2 }
 0x503   :  { %v393_v2 = vmul.f32 0.25, %v389_v0 }
 0x505   :  { %v395_v4 = vadd.f32 %v1716_v27, %v393_v2 }
 0x507   :  { %493 = vadd.xlane.f32.xlu2 %v492_v5  ;;  %v396_v6 = vsel %vm209_vm10, %v395_v4, -inf }
 0x508   :  { %397 = vmax.xlane.f32.xlu1 %v396_v6 }
 0x50a   :  { %v391_v7 = vpop.f32.mrf.mxu2 }
 0x51f   :  { %409 = vrot.lane.b32.xlu2 %v1697_v3, %s1559_s26 }
 0x521   :  { %498 = vrot.lane.b32.xlu1 %v1697_v3, %s1560_s1 }
 0x539   :  { %v309_v59 = vpop.xlane.xlu2 %308 }
 0x53a   :  { %1507 = vrcp.f32 %v309_v59 }
 0x540   :  { %v1508_v8 = vpop.eup %1507 }
 0x541   :  { %v311_v9 = vmul.f32 %v1508_v8, %v1504_v58  ;;  %v314_v11 = vpop.permute.xlu2 %313  ;;  %v615_v8 = vld [vmem:[%s2018_s10 + $0x18] sm:$0xff] }
 0x542   :  { %v319_v12 = vsel %vm228_vm9, %v314_v11, 0 }
 0x543   :  { %328 = vmatpush.bf16.msrb.mxu1 %v319_v12  ;;  %v312_v13 = vpack.c.bf16 %v311_v9, %v311_v9 }
 0x546   :  { %1399 = vmatmul.msk.bf16.vlgmr.msrb.gmra.mxu1 %vm209_vm10, %v312_v13  ;;  %v612_v13 = vld [vmem:[%s2018_s10] sm:$0xff] }
 0x57a   :  { %v494_v14 = vpop.xlane.xlu2 %493 }
 0x57b   :  { %v398_v15 = vpop.xlane.xlu1 %397 }
 0x57c   :  { %v399_v16 = vsub.f32 %v395_v4, %v398_v15 }
 0x57e   :  { %v400_v17 = vmul.f32 1.442695, %v399_v16 }
 0x580   :  { %1509 = vpow2.f32 %v400_v17 }
 0x581   :  { %1511 = vrcp.f32 %v494_v14  ;;  %v613_v14 = vld [vmem:[%s2018_s10 + $0x8] sm:$0xff] }
 0x582   :  { %v410_v18 = vpop.permute.xlu2 %409  ;;  %v617_v15 = vpack.c.bf16 %v613_v14, %v612_v13 }
 0x583   :  { %v415_v19 = vsel %vm228_vm9, %v410_v18, 0 }
 0x584   :  { %424 = vmatpush.bf16.msrb.mxu3 %v415_v19 }
 0x586   :  { %v1510_v3 = vpop.eup %1509 }
 0x587   :  { %v402_v20 = vsel %vm209_vm10, %v1510_v3, 0.0  ;;  %v1512_v22 = vpop.eup %1511 }
 0x588   :  { %403 = vadd.xlane.f32.xlu1 %v402_v20  ;;  %v496_v23 = vmul.f32 %v1512_v22, %v1506_v1 }
 0x58a   :  { %v497_v26 = vpack.c.bf16 %v496_v23, %v496_v23 }
 0x593   :  { %v499_v24 = vpop.permute.xlu1 %498 }
 0x594   :  { %v504_v25 = vsel %vm228_vm9, %v499_v24, 0 }
 0x595   :  { %513 = vmatpush.bf16.msra.mxu1 %v504_v25 }
 0x598   :  { %1403 = vmatmul.msk.bf16.vlgmr.msra.gmra.mxu1 %vm209_vm10, %v497_v26 }
 0x5c3   :  { %v330_v28 = vpop.f32.mrf.mxu1 }
 0x5cb   :  { %v332_v29 = vpop.f32.mrf.mxu1 }
 0x5fb   :  { %v404_v30 = vpop.xlane.xlu1 %403 }
 0x5fc   :  { %1513 = vrcp.f32 %v404_v30 }
 0x602   :  { %v1514_v34 = vpop.eup %1513 }
 0x603   :  { %v406_v35 = vmul.f32 %v1514_v34, %v1510_v3 }
 0x605   :  { %v407_v36 = vpack.c.bf16 %v406_v35, %v406_v35 }
 0x607   :  { %1401 = vmatmul.msk.bf16.vlgmr.msrb.gmra.mxu3 %vm209_vm10, %v407_v36 }
 0x615   :  { %v515_v37 = vpop.f32.mrf.mxu1 }
 0x616   :  { %v1460_v38 = vpack.i.bf16 %v515_v37, %v330_v28  ;;  %v1480_v37 = vld [vmem:[%s2016_s9] ss:$0 sm:$0xff] }
 0x618   :  { %1461 = vrot.lane.b32.xlu0 %v1460_v38, %s1561_s18 }
 0x61d   :  { %v517_v39 = vpop.f32.mrf.mxu1 }
 0x68a   :  { %v426_v43 = vpop.f32.mrf.mxu3  ;;  %v1462_v44 = vpop.permute.xlu0 %1461 }
 0x68b   :  { %v1464_v45 = vunpack.i.h.bf16 %v1462_v44  ;;  %v1463_v46 = vunpack.i.l.bf16 %v1462_v44  ;;  %v664_v44 = vld [vmem:[%s2019_s12 + $0x30] sm:$0xff] }
 0x68d   :  { %v523_v47 = vsel %vm189_vm8, %v426_v43, %v1464_v45  ;;  %v338_v48 = vsel %vm189_vm8, %v1726_v51, %v1463_v46  ;;  %v665_v45 = vld [vmem:[%s2019_s12 + $0x38] sm:$0xff] }
 0x68e   :  { %v528_v49 = vpack.c.bf16 %v523_v47, %v338_v48  ;;  %v670_v46 = vpack.c.bf16 %v665_v45, %v664_v44  ;;  %v662_v47 = vld [vmem:[%s2019_s12 + $0x20] sm:$0xff]  ;;  %v663_v48 = vld [vmem:[%s2019_s12 + $0x28] sm:$0xff] }
 0x68f   :  { %v1408_v44 = vld [vmem:[%s2011_s4 + $0x28] sm:$0xff] }
 0x690   :  { %1404 = vmatmul.msk.bf16.vlgmr.msra.gmra.mxu2 %vm58_vm0, %v528_v49  ;;  %679 = vmatpush.bf16.msra.mxu0 %v670_v46  ;;  %v669_v49 = vpack.c.bf16 %v663_v48, %v662_v47 }
 0x692   :  { %v428_v50 = vpop.f32.mrf.mxu3 }
 0x693   :  { %v660_v50 = vld [vmem:[%s2019_s12 + $0x10] sm:$0xff] }
 0x694   :  { %680 = vmatpush.bf16.msra.mxu0 %v669_v49 }
 0x713   :  { %v543_v55 = vpop.f32.mrf.mxu2 }
 0x714   :  { %v548_v56 = vadd.f32 %v543_v55, %v1681_v53 }
 0x716   :  { %v554_v57 = vadd.f32 %v1478_v52, %v548_v56  ;;  %v1481_v56 = vld [vmem:[%s2017_s11] ss:$0 sm:$0xff] }
 0x718   :  { %v558_v58 = vsel %vm58_vm0, %v554_v57, 0.0 }
 0x719   :  { %559 = vadd.xlane.f32.xlu0 %v558_v58  ;;  %v659_v58 = vld [vmem:[%s2019_s12 + $0x8] sm:$0xff] }
 0x71b   :  { %v545_v60 = vpop.f32.mrf.mxu2 }
 0x71c   :  { %v549_v61 = vadd.f32 %v545_v60, %v1683_v54  ;;  %v614_v54 = vld [vmem:[%s2018_s10 + $0x10] sm:$0xff] }
 0x71d   :  { %v618_v9 = vpack.c.bf16 %v615_v8, %v614_v54 }
 0x71e   :  { %v555_v62 = vadd.f32 %v1478_v52, %v549_v61  ;;  %v661_v52 = vld [vmem:[%s2019_s12 + $0x18] sm:$0xff] }
 0x71f   :  { %632 = vmatpush.bf16.msra.mxu3 %v618_v9  ;;  %v668_v55 = vpack.c.bf16 %v661_v52, %v660_v50 }
 0x720   :  { %v561_v51 = vsel %vm58_vm0, %v555_v62, 0.0 }
 0x721   :  { %562 = vadd.xlane.f32.xlu2 %v561_v51  ;;  %681 = vmatpush.bf16.msra.mxu0 %v668_v55 }
 0x723   :  { %633 = vmatpush.bf16.msra.mxu3 %v617_v15 }
 0x78c   :  { %v560_v63 = vpop.xlane.xlu0 %559 }
 0x78d   :  { %v564_v0 = vmul.f32 %v560_v63, %v1655_v10 }
 0x78f   :  { %v566_v1 = vsub.f32 %v554_v57, %v564_v0  ;;  %v658_v57 = vld [vmem:[%s2019_s12] sm:$0xff] }
 0x790   :  { %v667_v60 = vpack.c.bf16 %v659_v58, %v658_v57 }
 0x791   :  { %v568_v2 = vmul.f32 %v566_v1, %v566_v1 }
 0x792   :  { %682 = vmatpush.bf16.msra.mxu0 %v667_v60 }
 0x793   :  { %v570_v4 = vsel %vm58_vm0, %v568_v2, 0.0 }
 0x794   :  { %571 = vadd.xlane.f32.xlu1 %v570_v4  ;;  %v563_v53 = vpop.xlane.xlu2 %562 }
 0x795   :  { %v565_v5 = vmul.f32 %v563_v53, %v1655_v10 }
 0x797   :  { %v567_v6 = vsub.f32 %v555_v62, %v565_v5 }
 0x799   :  { %v569_v7 = vmul.f32 %v567_v6, %v567_v6 }
 0x79b   :  { %v573_v59 = vsel %vm58_vm0, %v569_v7, 0.0 }
 0x79c   :  { %574 = vadd.xlane.f32.xlu1 %v573_v59 }
 0x807   :  { %v572_v11 = vpop.xlane.xlu1 %571 }
 0x808   :  { %v576_v12 = vmul.f32 %v572_v11, %v1655_v10 }
 0x80a   :  { %v578_v16 = vadd.f32 1e-12, %v576_v12 }
 0x80c   :  { %1515 = vrsqrt.f32 %v578_v16  ;;  %vm586_vm12 = vweird.f32 %v578_v16 }
 0x80f   :  { %v575_v17 = vpop.xlane.xlu1 %574 }
 0x810   :  { %v577_v18 = vmul.f32 %v575_v17, %v1655_v10 }
 0x812   :  { %v1516_v19 = vpop.eup %1515  ;;  %v579_v3 = vadd.f32 1e-12, %v577_v18  ;;  %v1482_v18 = vld [vmem:[%s2020_s13] ss:$0 sm:$0xff] }
 0x813   :  { %v581_v20 = vmul.f32 %v1516_v19, %v578_v16  ;;  %vm587_vm11 = vweird.f32 %v1516_v19 }
 0x814   :  { %1517 = vrsqrt.f32 %v579_v3  ;;  %vm588_vm13 = vmor %vm586_vm12, %vm587_vm11  ;;  %vm596_vm15 = vweird.f32 %v579_v3 }
 0x815   :  { %v582_v22 = vmul.f32 %v1516_v19, %v581_v20 }
 0x817   :  { %v583_v23 = vmul.f32 0.5, %v582_v22 }
 0x819   :  { %v584_v24 = vsub.f32 1.5, %v583_v23 }
 0x81a   :  { %v1518_v25 = vpop.eup %1517 }
 0x81b   :  { %v585_v26 = vmul.f32 %v1516_v19, %v584_v24  ;;  %v591_v28 = vmul.f32 %v1518_v25, %v579_v3  ;;  %vm597_vm14 = vweird.f32 %v1518_v25 }
 0x81c   :  { %vm598_vm1 = vmor %vm596_vm15, %vm597_vm14 }
 0x81d   :  { %v592_v29 = vmul.f32 %v1518_v25, %v591_v28  ;;  %v589_v30 = vsel %vm588_vm13, %v1516_v19, %v585_v26 }
 0x81e   :  { %v600_v34 = vmul.f32 %v589_v30, %v566_v1 }
 0x81f   :  { %v593_v31 = vmul.f32 0.5, %v592_v29 }
 0x820   :  { %v605_v38 = vmul.f32 %v1479_v33, %v600_v34 }
 0x821   :  { %v594_v32 = vsub.f32 1.5, %v593_v31 }
 0x822   :  { %v610_v41 = vadd.f32 %v1480_v37, %v605_v38  ;;  %v1409_v38 = vld [vmem:[%s2011_s4 + $0x30] sm:$0xff] }
 0x823   :  { %v595_v35 = vmul.f32 %v1518_v25, %v594_v32 }
 0x825   :  { %v599_v36 = vsel %vm598_vm1, %v1518_v25, %v595_v35 }
 0x826   :  { %v601_v39 = vmul.f32 %v599_v36, %v567_v6 }
 0x828   :  { %v606_v40 = vmul.f32 %v1479_v33, %v601_v39  ;;  %v1410_v39 = vld [vmem:[%s2011_s4 + $0x38] sm:$0xff] }
 0x82a   :  { %v611_v42 = vadd.f32 %v1480_v37, %v606_v40  ;;  %v760_v40 = vpack.c.bf16 %v1410_v39, %v1409_v38 }
 0x82c   :  { %v616_v43 = vpack.c.bf16 %v611_v42, %v610_v41  ;;  %775 = vmatpush.bf16.msrb.mxu1 %v760_v40 }
 0x82e   :  { %1405 = vmatmul.msk.bf16.vlgmr.msra.gmra.mxu3 %vm58_vm0, %v616_v43  ;;  %v1407_v43 = vld [vmem:[%s2011_s4 + $0x20] sm:$0xff] }
 0x82f   :  { %v759_v45 = vpack.c.bf16 %v1408_v44, %v1407_v43 }
 0x831   :  { %776 = vmatpush.bf16.msrb.mxu1 %v759_v45 }
 0x8b1   :  { %v635_v61 = vpop.f32.mrf.mxu3 }
 0x8b2   :  { %v636_v62 = vadd.f32 %v1481_v56, %v635_v61 }
 0x8b4   :  { %v640_v51 = vmul.f32 %v636_v62, %v636_v62 }
 0x8b6   :  { %v642_v63 = vmul.f32 %v640_v51, %v636_v62 }
 0x8b8   :  { %v644_v0 = vmul.f32 0.044715, %v642_v63 }
 0x8b9   :  { %v637_v1 = vpop.f32.mrf.mxu3 }
 0x8ba   :  { %v646_v2 = vadd.f32 %v644_v0, %v636_v62  ;;  %v638_v4 = vadd.f32 %v1481_v56, %v637_v1  ;;  %v1483_v1 = vld [vmem:[%s2021_s14] ss:$0 sm:$0xff] }
 0x8bc   :  { %v648_v53 = vmul.f32 0.7978846, %v646_v2  ;;  %v641_v5 = vmul.f32 %v638_v4, %v638_v4 }
 0x8be   :  { %v643_v6 = vmul.f32 %v641_v5, %v638_v4  ;;  %1519 = vtanh.f32 %v648_v53  ;;  %v1484_v5 = vld [vmem:[%s2022_s15] ss:$0 sm:$0xff] }
 0x8c0   :  { %v645_v7 = vmul.f32 0.044715, %v643_v6 }
 0x8c2   :  { %v647_v59 = vadd.f32 %v645_v7, %v638_v4 }
 0x8c4   :  { %v649_v54 = vmul.f32 0.7978846, %v647_v59  ;;  %v1520_v8 = vpop.eup %1519 }
 0x8c5   :  { %v652_v9 = vadd.f32 1.0, %v1520_v8 }
 0x8c6   :  { %1521 = vtanh.f32 %v649_v54 }
 0x8c7   :  { %v654_v12 = vmul.f32 0.5, %v652_v9 }
 0x8c9   :  { %v656_v15 = vmul.f32 %v654_v12, %v636_v62 }
 0x8cc   :  { %v1522_v11 = vpop.eup %1521 }
 0x8cd   :  { %v653_v13 = vadd.f32 1.0, %v1522_v11  ;;  %v1485_v11 = vld [vmem:[%s2010_s5 + $0x1] ss:$0 sm:$0xff] }
 0x8cf   :  { %v655_v14 = vmul.f32 0.5, %v653_v13 }
 0x8d1   :  { %v657_v16 = vmul.f32 %v655_v14, %v638_v4 }
 0x8d3   :  { %v666_v17 = vpack.c.bf16 %v657_v16, %v656_v15 }
 0x8d5   :  { %1406 = vmatmul.msk.bf16.vlgmr.msra.gmra.mxu0 %vm671_vm2, %v666_v17 }
 0x952   :  { %v684_v19 = vpop.f32.mrf.mxu0 }
 0x953   :  { %v689_v3 = vadd.f32 %v684_v19, %v610_v41 }
 0x955   :  { %v695_v20 = vadd.f32 %v1482_v18, %v689_v3 }
 0x957   :  { %v699_v22 = vsel %vm58_vm0, %v695_v20, 0.0 }
 0x958   :  { %700 = vadd.xlane.f32.xlu1 %v699_v22 }
 0x95a   :  { %v686_v23 = vpop.f32.mrf.mxu0 }
 0x95b   :  { %v690_v24 = vadd.f32 %v686_v23, %v611_v42 }
 0x95d   :  { %v696_v25 = vadd.f32 %v1482_v18, %v690_v24 }
 0x95f   :  { %v702_v26 = vsel %vm58_vm0, %v696_v25, 0.0 }
 0x960   :  { %703 = vadd.xlane.f32.xlu1 %v702_v26 }
 0x9cb   :  { %v701_v28 = vpop.xlane.xlu1 %700 }
 0x9cc   :  { %v705_v29 = vmul.f32 %v701_v28, %v1655_v10 }
 0x9ce   :  { %v707_v30 = vsub.f32 %v695_v20, %v705_v29 }
 0x9d0   :  { %v709_v31 = vmul.f32 %v707_v30, %v707_v30 }
 0x9d2   :  { %v711_v32 = vsel %vm58_vm0, %v709_v31, 0.0 }
 0x9d3   :  { %712 = vadd.xlane.f32.xlu1 %v711_v32  ;;  %v704_v33 = vpop.xlane.xlu1 %703 }
 0x9d4   :  { %v706_v34 = vmul.f32 %v704_v33, %v1655_v10 }
 0x9d6   :  { %v708_v35 = vsub.f32 %v696_v25, %v706_v34 }
 0x9d8   :  { %v710_v36 = vmul.f32 %v708_v35, %v708_v35 }
 0x9da   :  { %v714_v37 = vsel %vm58_vm0, %v710_v36, 0.0 }
 0x9db   :  { %715 = vadd.xlane.f32.xlu2 %v714_v37 }
 0xa46   :  { %v713_v41 = vpop.xlane.xlu1 %712 }
 0xa47   :  { %v717_v42 = vmul.f32 %v713_v41, %v1655_v10 }
 0xa49   :  { %v719_v46 = vadd.f32 1e-12, %v717_v42 }
 0xa4b   :  { %1523 = vrsqrt.f32 %v719_v46  ;;  %vm727_vm4 = vweird.f32 %v719_v46 }
 0xa4e   :  { %v716_v47 = vpop.xlane.xlu2 %715 }
 0xa4f   :  { %v718_v48 = vmul.f32 %v716_v47, %v1655_v10 }
 0xa51   :  { %v1524_v49 = vpop.eup %1523  ;;  %v720_v50 = vadd.f32 1e-12, %v718_v48 }
 0xa52   :  { %v722_v52 = vmul.f32 %v1524_v49, %v719_v46  ;;  %vm728_vm3 = vweird.f32 %v1524_v49 }
 0xa53   :  { %1525 = vrsqrt.f32 %v720_v50  ;;  %vm729_vm5 = vmor %vm727_vm4, %vm728_vm3  ;;  %vm737_vm7 = vweird.f32 %v720_v50 }
 0xa54   :  { %v723_v55 = vmul.f32 %v1524_v49, %v722_v52 }
 0xa56   :  { %v724_v56 = vmul.f32 0.5, %v723_v55 }
 0xa58   :  { %v725_v57 = vsub.f32 1.5, %v724_v56 }
 0xa59   :  { %v1526_v58 = vpop.eup %1525 }
 0xa5a   :  { %v726_v60 = vmul.f32 %v1524_v49, %v725_v57  ;;  %v732_v61 = vmul.f32 %v1526_v58, %v720_v50  ;;  %vm738_vm6 = vweird.f32 %v1526_v58 }
 0xa5b   :  { %vm739_vm11 = vmor %vm737_vm7, %vm738_vm6 }
 0xa5c   :  { %v733_v62 = vmul.f32 %v1526_v58, %v732_v61  ;;  %v730_v51 = vsel %vm729_vm5, %v1524_v49, %v726_v60 }
 0xa5d   :  { %v741_v2 = vmul.f32 %v730_v51, %v707_v30 }
 0xa5e   :  { %v734_v63 = vmul.f32 0.5, %v733_v62 }
 0xa5f   :  { %v746_v6 = vmul.f32 %v1483_v1, %v741_v2 }
 0xa60   :  { %v735_v0 = vsub.f32 1.5, %v734_v63 }
 0xa61   :  { %v1851_v54 = vadd.f32 %v1484_v5, %v746_v6 }
 0xa62   :  { %v736_v4 = vmul.f32 %v1526_v58, %v735_v0 }
 0xa64   :  { %v740_v53 = vsel %vm739_vm11, %v1526_v58, %v736_v4 }
 0xa65   :  { %v742_v7 = vmul.f32 %v740_v53, %v708_v35 }
 0xa67   :  { %v747_v59 = vmul.f32 %v1483_v1, %v742_v7 }
 0xa69   :  { %v1853_v8 = vadd.f32 %v1484_v5, %v747_v59 }
 0xa6b   :  { %v758_v9 = vpack.c.bf16 %v1853_v8, %v1851_v54 }
 0xa6d   :  { %1412 = vmatmul.msk.bf16.vlgmr.msrb.gmra.mxu1 %vm58_vm0, %v758_v9 }
 0xaea   :  { %v778_v12 = vpop.f32.mrf.mxu1 }
 0xaeb   :  { %v779_v13 = vadd.f32 %v1485_v11, %v778_v12 }
 0xaed   :  { %v1861_v14 = vpack.c.bf16 %v779_v13, %v779_v13  ;;  %784 = vrot.lane.b32.xlu2 %v779_v13, %s1556_s24 }
 0xaef   :  { %909 = vrot.lane.b32.xlu1 %v1861_v14, %s1557_s3 }
 0xaf2   :  { %v780_v15 = vpop.f32.mrf.mxu1 }
 0xaf3   :  { %v781_v16 = vadd.f32 %v1485_v11, %v780_v15 }
 0xaf5   :  { %v1866_v17 = vpack.c.bf16 %v781_v16, %v781_v16  ;;  %968 = vrot.lane.b32.xlu2 %v781_v16, %s1556_s24  ;;  %v1465_v18 = vpack.i.bf16 %v781_v16, %v779_v13 }
 0xaf7   :  { %1466 = vrot.lane.b32.xlu0 %v1465_v18, %s1558_s25  ;;  %1093 = vrot.lane.b32.xlu1 %v1866_v17, %s1557_s3 }
 0xb47   :  { %v785_v19 = vpop.permute.xlu2 %784 }
 0xb48   :  { %787 = vxpose.xlu2.b32.start.end [1/1] (short) (narrow) %v785_v19, 16 }
 0xb4f   :  { %v969_v23 = vpop.permute.xlu2 %968 }
 0xb61   :  { %v910_v28 = vpop.permute.xlu1 %909 }
 0xb69   :  { %v1467_v3 = vpop.permute.xlu0 %1466  ;;  %v1094_v29 = vpop.permute.xlu1 %1093 }
 0xb6a   :  { %v1469_v20 = vunpack.i.h.bf16 %v1467_v3  ;;  %v1468_v22 = vunpack.i.l.bf16 %v1467_v3 }
 0xb6c   :  { %876 = vxpose.xlu0.b32.start.end [1/1] (short) (narrow) %v1468_v22, 16  ;;  %1060 = vxpose.xlu1.b32.start.end [1/1] (short) (narrow) %v1469_v20, 16 }
 0xb7c   :  { %971 = vxpose.xlu0.b32.start.end [1/1] (short) (narrow) %v969_v23, 16 }
 0xbe1   :  { %v803_v24 = vpop.trf.xlu2 }
 0xbe9   :  { %v804_v25 = vpop.trf.xlu2 }
 0xbea   :  { %v820_v26 = vpack.c.bf16 %v804_v25, %v803_v24 }
 0xbec   :  { %831 = vmatpush.bf16.msrb.mxu2 %v820_v26 }
 0xbef   :  { %1413 = vmatmul.msk.bf16.vlgmr.msrb.gmra.mxu2 %vm189_vm8, %v1861_v14 }
 0xc10   :  { %v892_v30 = vpop.trf.xlu0  ;;  %v1076_v31 = vpop.trf.xlu1 }
 0xc18   :  { %v893_v32 = vpop.trf.xlu0  ;;  %v1077_v33 = vpop.trf.xlu1 }
 0xc19   :  { %v908_v34 = vpack.c.bf16 %v893_v32, %v892_v30  ;;  %v1092_v35 = vpack.c.bf16 %v1077_v33, %v1076_v31 }
 0xc1b   :  { %921 = vmatpush.bf16.msrb.mxu0 %v908_v34 }
 0xc1e   :  { %1415 = vmatmul.msk.bf16.vlgmr.msrb.gmra.mxu0 %vm189_vm8, %v910_v28 }
 0xc1f   :  { %1105 = vmatpush.bf16.msra.mxu0 %v1092_v35 }
 0xc20   :  { %v987_v36 = vpop.trf.xlu0 }
 0xc28   :  { %v988_v37 = vpop.trf.xlu0 }
 0xc29   :  { %v1004_v38 = vpack.c.bf16 %v988_v37, %v987_v36 }
 0xc2b   :  { %1015 = vmatpush.bf16.msra.mxu2 %v1004_v38 }
 0xc2e   :  { %1417 = vmatmul.msk.bf16.vlgmr.msra.gmra.mxu2 %vm189_vm8, %v1866_v17  ;;  %1419 = vmatmul.msk.bf16.vlgmr.msra.gmra.mxu0 %vm189_vm8, %v1094_v29 }
 0xc72   :  { %v833_v39 = vpop.f32.mrf.mxu2 }
 0xc73   :  { %v837_v40 = vmul.f32 0.25, %v833_v39 }
 0xc75   :  { %v838_v41 = vadd.f32 %v837_v40, %v1711_v21 }
 0xc77   :  { %v839_v42 = vsel %vm209_vm10, %v838_v41, -inf }
 0xc78   :  { %840 = vmax.xlane.f32.xlu1 %v839_v42 }
 0xc7a   :  { %v835_v43 = vpop.f32.mrf.mxu2 }
 0xc9b   :  { %v923_v44 = vpop.f32.mrf.mxu0 }
 0xc9c   :  { %v927_v45 = vmul.f32 0.25, %v923_v44 }
 0xc9e   :  { %v928_v46 = vadd.f32 %v927_v45, %v1711_v21 }
 0xca0   :  { %v929_v47 = vsel %vm209_vm10, %v928_v46, -inf }
 0xca1   :  { %930 = vmax.xlane.f32.xlu0 %v929_v47  ;;  %v1423_v47 = vld [vmem:[%s2013_s6 + $0x30] sm:$0xff] }
 0xca3   :  { %v925_v48 = vpop.f32.mrf.mxu0 }
 0xca4   :  { %v1424_v48 = vld [vmem:[%s2013_s6 + $0x38] sm:$0xff] }
 0xcab   :  { %v1107_v49 = vpop.f32.mrf.mxu0 }
 0xcac   :  { %v1111_v50 = vmul.f32 0.25, %v1107_v49  ;;  %v1158_v49 = vpack.c.bf16 %v1424_v48, %v1423_v47  ;;  %v1488_v47 = vld [vmem:[%s2016_s9 + $0x1] ss:$0 sm:$0xff] }
 0xcae   :  { %v1112_v52 = vadd.f32 %v1111_v50, %v1716_v27  ;;  %1168 = vmatpush.bf16.msrb.mxu2 %v1158_v49 }
 0xcb0   :  { %v1113_v55 = vsel %vm209_vm10, %v1112_v52, -inf }
 0xcb1   :  { %1114 = vmax.xlane.f32.xlu2 %v1113_v55  ;;  %v1017_v56 = vpop.f32.mrf.mxu2 }
 0xcb2   :  { %v1021_v57 = vmul.f32 0.25, %v1017_v56 }
 0xcb3   :  { %v1109_v58 = vpop.f32.mrf.mxu0 }
 0xcb4   :  { %v1022_v60 = vadd.f32 %v1021_v57, %v1716_v27  ;;  %v1421_v57 = vld [vmem:[%s2013_s6 + $0x20] sm:$0xff]  ;;  %v1422_v58 = vld [vmem:[%s2013_s6 + $0x28] sm:$0xff] }
 0xcb6   :  { %v1023_v61 = vsel %vm209_vm10, %v1022_v60, -inf }
 0xcb7   :  { %1024 = vmax.xlane.f32.xlu0 %v1023_v61 }
 0xcb9   :  { %v1019_v21 = vpop.f32.mrf.mxu2 }
 0xcc9   :  { %941 = vrot.lane.b32.xlu2 %v1861_v14, %s1560_s1 }
 0xceb   :  { %v841_v62 = vpop.xlane.xlu1 %840 }
 0xcec   :  { %v842_v51 = vsub.f32 %v838_v41, %v841_v62 }
 0xcee   :  { %v843_v63 = vmul.f32 1.442695, %v842_v51 }
 0xcf0   :  { %1527 = vpow2.f32 %v843_v63 }
 0xcf6   :  { %v1528_v0 = vpop.eup %1527 }
 0xcf7   :  { %v845_v1 = vsel %vm209_vm10, %v1528_v0, 0.0 }
 0xcf8   :  { %846 = vadd.xlane.f32.xlu0 %v845_v1  ;;  %v1486_v1 = vld [vmem:[%s2014_s7 + $0x1] ss:$0 sm:$0xff] }
 0xd14   :  { %v931_v2 = vpop.xlane.xlu0 %930 }
 0xd15   :  { %v932_v4 = vsub.f32 %v928_v46, %v931_v2 }
 0xd17   :  { %v933_v53 = vmul.f32 1.442695, %v932_v4 }
 0xd19   :  { %1529 = vpow2.f32 %v933_v53 }
 0xd1f   :  { %v1530_v27 = vpop.eup %1529 }
 0xd20   :  { %v935_v5 = vsel %vm209_vm10, %v1530_v27, 0.0 }
 0xd21   :  { %936 = vadd.xlane.f32.xlu1 %v935_v5 }
 0xd24   :  { %v1115_v6 = vpop.xlane.xlu2 %1114 }
 0xd25   :  { %v1116_v7 = vsub.f32 %v1112_v52, %v1115_v6 }
 0xd27   :  { %v1117_v59 = vmul.f32 1.442695, %v1116_v7 }
 0xd29   :  { %1531 = vpow2.f32 %v1117_v59 }
 0xd2a   :  { %v1025_v9 = vpop.xlane.xlu0 %1024 }
 0xd2b   :  { %v1026_v11 = vsub.f32 %v1022_v60, %v1025_v9  ;;  %v1157_v60 = vpack.c.bf16 %v1422_v58, %v1421_v57  ;;  %v1441_v57 = vld [vmem:[%s2019_s12 + $0x70] sm:$0xff]  ;;  %v1442_v58 = vld [vmem:[%s2019_s12 + $0x78] sm:$0xff] }
 0xd2c   :  { %v942_v12 = vpop.permute.xlu2 %941 }
 0xd2d   :  { %v1027_v13 = vmul.f32 1.442695, %v1026_v11  ;;  %v947_v15 = vsel %vm228_vm9, %v942_v12, 0  ;;  %1169 = vmatpush.bf16.msrb.mxu2 %v1157_v60  ;;  %v1304_v60 = vpack.c.bf16 %v1442_v58, %v1441_v57 }
 0xd2e   :  { %956 = vmatpush.bf16.msra.mxu1 %v947_v15 }
 0xd2f   :  { %v1532_v16 = vpop.eup %1531  ;;  %1533 = vpow2.f32 %v1027_v13  ;;  %1312 = vmatpush.bf16.msrb.mxu0 %v1304_v60 }
 0xd30   :  { %v1119_v18 = vsel %vm209_vm10, %v1532_v16, 0.0 }
 0xd31   :  { %1120 = vadd.xlane.f32.xlu0 %v1119_v18 }
 0xd35   :  { %v1534_v19 = vpop.eup %1533 }
 0xd36   :  { %v1029_v3 = vsel %vm209_vm10, %v1534_v19, 0.0 }
 0xd37   :  { %1030 = vadd.xlane.f32.xlu2 %v1029_v3 }
 0xd3a   :  { %1125 = vrot.lane.b32.xlu1 %v1866_v17, %s1560_s1 }
 0xd42   :  { %1036 = vrot.lane.b32.xlu1 %v1866_v17, %s1559_s26 }
 0xd45   :  { %852 = vrot.lane.b32.xlu0 %v1861_v14, %s1559_s26 }
 0xd6b   :  { %v847_v23 = vpop.xlane.xlu0 %846 }
 0xd94   :  { %v937_v20 = vpop.xlane.xlu1 %936 }
 0xd95   :  { %1535 = vrcp.f32 %v937_v20  ;;  %v1432_v20 = vld [vmem:[%s2018_s10 + $0x38] sm:$0xff] }
 0xd9b   :  { %v1536_v22 = vpop.eup %1535 }
 0xd9c   :  { %v939_v24 = vmul.f32 %v1536_v22, %v1530_v27 }
 0xd9e   :  { %v940_v25 = vpack.c.bf16 %v939_v24, %v939_v24 }
 0xda0   :  { %1416 = vmatmul.msk.bf16.vlgmr.msra.gmra.mxu1 %vm209_vm10, %v940_v25  ;;  %v1429_v25 = vld [vmem:[%s2018_s10 + $0x20] sm:$0xff] }
 0xda4   :  { %v1121_v26 = vpop.xlane.xlu0 %1120 }
 0xda5   :  { %1537 = vrcp.f32 %v1121_v26  ;;  %v1430_v26 = vld [vmem:[%s2018_s10 + $0x28] sm:$0xff] }
 0xda6   :  { %1539 = vrcp.f32 %v847_v23 }
 0xdaa   :  { %v1031_v38 = vpop.xlane.xlu2 %1030 }
 0xdab   :  { %v1538_v28 = vpop.eup %1537  ;;  %1541 = vrcp.f32 %v1031_v38 }
 0xdac   :  { %v1123_v29 = vmul.f32 %v1538_v28, %v1532_v16  ;;  %v1126_v30 = vpop.permute.xlu1 %1125  ;;  %v1540_v14 = vpop.eup %1539  ;;  %v1249_v28 = vpack.c.bf16 %v1430_v26, %v1429_v25 }
 0xdad   :  { %v1131_v31 = vsel %vm228_vm9, %v1126_v30, 0  ;;  %v849_v32 = vmul.f32 %v1540_v14, %v1528_v0 }
 0xdae   :  { %v1124_v17 = vpack.c.bf16 %v1123_v29, %v1123_v29  ;;  %1140 = vmatpush.bf16.msrb.mxu1 %v1131_v31 }
 0xdaf   :  { %v850_v37 = vpack.c.bf16 %v849_v32, %v849_v32 }
 0xdb1   :  { %1420 = vmatmul.msk.bf16.vlgmr.msrb.gmra.mxu1 %vm209_vm10, %v1124_v17  ;;  %v1542_v39 = vpop.eup %1541 }
 0xdb2   :  { %v1033_v40 = vmul.f32 %v1542_v39, %v1534_v19 }
 0xdb4   :  { %v1037_v33 = vpop.permute.xlu1 %1036  ;;  %v1034_v41 = vpack.c.bf16 %v1033_v40, %v1033_v40 }
 0xdb5   :  { %v1042_v36 = vsel %vm228_vm9, %v1037_v33, 0 }
 0xdb7   :  { %v853_v34 = vpop.permute.xlu0 %852 }
 0xdb8   :  { %v858_v35 = vsel %vm228_vm9, %v853_v34, 0 }
 0xdb9   :  { %867 = vmatpush.bf16.msrb.mxu3 %v858_v35 }
 0xdbc   :  { %1414 = vmatmul.msk.bf16.vlgmr.msrb.gmra.mxu3 %vm209_vm10, %v850_v37 }
 0xdbd   :  { %1051 = vmatpush.bf16.msra.mxu3 %v1042_v36 }
 0xdcc   :  { %1418 = vmatmul.msk.bf16.vlgmr.msra.gmra.mxu3 %vm209_vm10, %v1034_v41 }
 0xe1d   :  { %v958_v42 = vpop.f32.mrf.mxu1 }
 0xe25   :  { %v960_v43 = vpop.f32.mrf.mxu1 }
 0xe26   :  { %v1487_v43 = vld [vmem:[%s2015_s8 + $0x1] ss:$0 sm:$0xff] }
 0xe2e   :  { %v1142_v44 = vpop.f32.mrf.mxu1 }
 0xe2f   :  { %v1470_v45 = vpack.i.bf16 %v1142_v44, %v958_v42 }
 0xe31   :  { %1471 = vrot.lane.b32.xlu1 %v1470_v45, %s1561_s18 }
 0xe36   :  { %v1144_v46 = vpop.f32.mrf.mxu1 }
 0xe3f   :  { %v869_v50 = vpop.f32.mrf.mxu3 }
 0xe47   :  { %v871_v52 = vpop.f32.mrf.mxu3 }
 0xe4f   :  { %v1053_v55 = vpop.f32.mrf.mxu3 }
 0xe57   :  { %v1055_v56 = vpop.f32.mrf.mxu3 }
 0xea3   :  { %v1472_v61 = vpop.permute.xlu1 %1471 }
 0xea4   :  { %v1474_v21 = vunpack.i.h.bf16 %v1472_v61  ;;  %v1473_v62 = vunpack.i.l.bf16 %v1472_v61  ;;  %v1439_v61 = vld [vmem:[%s2019_s12 + $0x60] sm:$0xff] }
 0xea6   :  { %v966_v51 = vsel %vm189_vm8, %v869_v50, %v1473_v62  ;;  %v1150_v63 = vsel %vm189_vm8, %v1053_v55, %v1474_v21  ;;  %v1440_v21 = vld [vmem:[%s2019_s12 + $0x68] sm:$0xff] }
 0xea7   :  { %v1156_v0 = vpack.c.bf16 %v1150_v63, %v966_v51  ;;  %v1303_v62 = vpack.c.bf16 %v1440_v21, %v1439_v61  ;;  %v1437_v51 = vld [vmem:[%s2019_s12 + $0x50] sm:$0xff]  ;;  %v1438_v63 = vld [vmem:[%s2019_s12 + $0x58] sm:$0xff] }
 0xea9   :  { %1425 = vmatmul.msk.bf16.vlgmr.msrb.gmra.mxu2 %vm58_vm0, %v1156_v0  ;;  %1313 = vmatpush.bf16.msrb.mxu0 %v1303_v62  ;;  %v1302_v0 = vpack.c.bf16 %v1438_v63, %v1437_v51  ;;  %v1491_v51 = vld [vmem:[%s2021_s14 + $0x1] ss:$0 sm:$0xff] }
 0xead   :  { %1314 = vmatpush.bf16.msrb.mxu0 %v1302_v0 }
 0xf2c   :  { %v1171_v2 = vpop.f32.mrf.mxu2 }
 0xf2d   :  { %v1176_v4 = vadd.f32 %v1171_v2, %v1851_v54  ;;  %v1435_v2 = vld [vmem:[%s2019_s12 + $0x40] sm:$0xff] }
 0xf2f   :  { %v1183_v53 = vadd.f32 %v1486_v1, %v1176_v4  ;;  %v1436_v4 = vld [vmem:[%s2019_s12 + $0x48] sm:$0xff] }
 0xf31   :  { %v1189_v27 = vsel %vm58_vm0, %v1183_v53, 0.0 }
 0xf32   :  { %1190 = vadd.xlane.f32.xlu0 %v1189_v27 }
 0xf34   :  { %v1173_v5 = vpop.f32.mrf.mxu2 }
 0xf35   :  { %v1177_v6 = vadd.f32 %v1173_v5, %v1853_v8  ;;  %v1431_v8 = vld [vmem:[%s2018_s10 + $0x30] sm:$0xff] }
 0xf36   :  { %v1250_v22 = vpack.c.bf16 %v1432_v20, %v1431_v8 }
 0xf37   :  { %v1184_v7 = vadd.f32 %v1486_v1, %v1177_v6  ;;  %v1489_v1 = vld [vmem:[%s2017_s11 + $0x1] ss:$0 sm:$0xff] }
 0xf38   :  { %1265 = vmatpush.bf16.msrb.mxu3 %v1250_v22 }
 0xf39   :  { %v1192_v59 = vsel %vm58_vm0, %v1184_v7, 0.0 }
 0xf3a   :  { %1193 = vadd.xlane.f32.xlu1 %v1192_v59 }
 0xf3c   :  { %1266 = vmatpush.bf16.msrb.mxu3 %v1249_v28 }
 0xfa5   :  { %v1191_v9 = vpop.xlane.xlu0 %1190 }
 0xfa6   :  { %v1195_v11 = vmul.f32 %v1191_v9, %v1655_v10 }
 0xfa8   :  { %v1197_v12 = vsub.f32 %v1183_v53, %v1195_v11  ;;  %v1301_v53 = vpack.c.bf16 %v1436_v4, %v1435_v2 }
 0xfaa   :  { %v1199_v13 = vmul.f32 %v1197_v12, %v1197_v12  ;;  %1315 = vmatpush.bf16.msrb.mxu0 %v1301_v53 }
 0xfac   :  { %v1201_v15 = vsel %vm58_vm0, %v1199_v13, 0.0 }
 0xfad   :  { %1202 = vadd.xlane.f32.xlu2 %v1201_v15  ;;  %v1194_v54 = vpop.xlane.xlu1 %1193 }
 0xfae   :  { %v1196_v16 = vmul.f32 %v1194_v54, %v1655_v10 }
 0xfb0   :  { %v1198_v18 = vsub.f32 %v1184_v7, %v1196_v16 }
 0xfb2   :  { %v1200_v19 = vmul.f32 %v1198_v18, %v1198_v18 }
 0xfb4   :  { %v1204_v3 = vsel %vm58_vm0, %v1200_v19, 0.0 }
 0xfb5   :  { %1205 = vadd.xlane.f32.xlu2 %v1204_v3 }
0x1020   :  { %v1203_v23 = vpop.xlane.xlu2 %1202 }
0x1021   :  { %v1207_v24 = vmul.f32 %v1203_v23, %v1655_v10 }
0x1023   :  { %v1209_v29 = vadd.f32 1e-12, %v1207_v24 }
0x1025   :  { %1543 = vrsqrt.f32 %v1209_v29  ;;  %vm1217_vm9 = vweird.f32 %v1209_v29 }
0x1028   :  { %v1206_v30 = vpop.xlane.xlu2 %1205 }
0x1029   :  { %v1208_v31 = vmul.f32 %v1206_v30, %v1655_v10 }
0x102b   :  { %v1544_v17 = vpop.eup %1543  ;;  %v1210_v14 = vadd.f32 1e-12, %v1208_v31 }
0x102c   :  { %v1212_v32 = vmul.f32 %v1544_v17, %v1209_v29  ;;  %vm1218_vm8 = vweird.f32 %v1544_v17  ;;  %v1490_v29 = vld [vmem:[%s2020_s13 + $0x1] ss:$0 sm:$0xff] }
0x102d   :  { %1545 = vrsqrt.f32 %v1210_v14  ;;  %vm1219_vm10 = vmor %vm1217_vm9, %vm1218_vm8  ;;  %vm1227_vm13 = vweird.f32 %v1210_v14 }
0x102e   :  { %v1213_v33 = vmul.f32 %v1544_v17, %v1212_v32 }
0x1030   :  { %v1214_v34 = vmul.f32 0.5, %v1213_v33 }
0x1032   :  { %v1215_v35 = vsub.f32 1.5, %v1214_v34 }
0x1033   :  { %v1546_v36 = vpop.eup %1545 }
0x1034   :  { %v1216_v37 = vmul.f32 %v1544_v17, %v1215_v35  ;;  %v1222_v38 = vmul.f32 %v1546_v36, %v1210_v14  ;;  %vm1228_vm12 = vweird.f32 %v1546_v36 }
0x1035   :  { %vm1229_vm14 = vmor %vm1227_vm13, %vm1228_vm12 }
0x1036   :  { %v1223_v39 = vmul.f32 %v1546_v36, %v1222_v38  ;;  %v1220_v40 = vsel %vm1219_vm10, %v1544_v17, %v1216_v37 }
0x1037   :  { %v1231_v44 = vmul.f32 %v1220_v40, %v1197_v12 }
0x1038   :  { %v1224_v41 = vmul.f32 0.5, %v1223_v39 }
0x1039   :  { %v1236_v48 = vmul.f32 %v1487_v43, %v1231_v44 }
0x103a   :  { %v1225_v42 = vsub.f32 1.5, %v1224_v41 }
0x103b   :  { %v1241_v52 = vadd.f32 %v1488_v47, %v1236_v48 }
0x103c   :  { %v1226_v45 = vmul.f32 %v1546_v36, %v1225_v42 }
0x103e   :  { %v1230_v46 = vsel %vm1229_vm14, %v1546_v36, %v1226_v45 }
0x103f   :  { %v1232_v49 = vmul.f32 %v1230_v46, %v1198_v18 }
0x1041   :  { %v1237_v50 = vmul.f32 %v1487_v43, %v1232_v49 }
0x1043   :  { %v1242_v55 = vadd.f32 %v1488_v47, %v1237_v50 }
0x1045   :  { %v1248_v56 = vpack.c.bf16 %v1242_v55, %v1241_v52 }
0x1047   :  { %1434 = vmatmul.msk.bf16.vlgmr.msrb.gmra.mxu3 %vm58_vm0, %v1248_v56 }
0x10ca   :  { %v1268_v27 = vpop.f32.mrf.mxu3 }
0x10cb   :  { %v1269_v5 = vadd.f32 %v1489_v1, %v1268_v27 }
0x10cd   :  { %v1273_v6 = vmul.f32 %v1269_v5, %v1269_v5 }
0x10cf   :  { %v1275_v7 = vmul.f32 %v1273_v6, %v1269_v5 }
0x10d1   :  { %v1277_v59 = vmul.f32 0.044715, %v1275_v7 }
0x10d2   :  { %v1270_v9 = vpop.f32.mrf.mxu3 }
0x10d3   :  { %v1279_v11 = vadd.f32 %v1277_v59, %v1269_v5  ;;  %v1271_v12 = vadd.f32 %v1489_v1, %v1270_v9 }
0x10d5   :  { %v1281_v13 = vmul.f32 0.7978846, %v1279_v11  ;;  %v1274_v15 = vmul.f32 %v1271_v12, %v1271_v12 }
0x10d7   :  { %v1276_v54 = vmul.f32 %v1274_v15, %v1271_v12  ;;  %1547 = vtanh.f32 %v1281_v13 }
0x10d9   :  { %v1278_v16 = vmul.f32 0.044715, %v1276_v54 }
0x10db   :  { %v1280_v18 = vadd.f32 %v1278_v16, %v1271_v12 }
0x10dd   :  { %v1282_v19 = vmul.f32 0.7978846, %v1280_v18  ;;  %v1548_v3 = vpop.eup %1547 }
0x10de   :  { %v1285_v8 = vadd.f32 1.0, %v1548_v3 }
0x10df   :  { %1549 = vtanh.f32 %v1282_v19 }
0x10e0   :  { %v1287_v22 = vmul.f32 0.5, %v1285_v8 }
0x10e2   :  { %v1289_v25 = vmul.f32 %v1287_v22, %v1269_v5 }
0x10e5   :  { %v1550_v20 = vpop.eup %1549 }
0x10e6   :  { %v1286_v23 = vadd.f32 1.0, %v1550_v20 }
0x10e8   :  { %v1288_v24 = vmul.f32 0.5, %v1286_v23 }
0x10ea   :  { %v1290_v26 = vmul.f32 %v1288_v24, %v1271_v12 }
0x10ec   :  { %v1300_v28 = vpack.c.bf16 %v1290_v26, %v1289_v25 }
0x10ee   :  { %1443 = vmatmul.msk.bf16.vlgmr.msrb.gmra.mxu0 %vm671_vm2, %v1300_v28 }
0x116b   :  { %v1317_v30 = vpop.f32.mrf.mxu0 }
0x116c   :  { %v1322_v31 = vadd.f32 %v1317_v30, %v1241_v52 }
0x116e   :  { %v1329_v17 = vadd.f32 %v1490_v29, %v1322_v31 }
0x1170   :  { %v1335_v14 = vsel %vm58_vm0, %v1329_v17, 0.0 }
0x1171   :  { %1336 = vadd.xlane.f32.xlu0 %v1335_v14 }
0x1173   :  { %v1319_v32 = vpop.f32.mrf.mxu0 }
0x1174   :  { %v1323_v33 = vadd.f32 %v1319_v32, %v1242_v55 }
0x1176   :  { %v1330_v34 = vadd.f32 %v1490_v29, %v1323_v33 }
0x1178   :  { %v1338_v35 = vsel %vm58_vm0, %v1330_v34, 0.0 }
0x1179   :  { %1339 = vadd.xlane.f32.xlu2 %v1338_v35 }
0x11e4   :  { %v1337_v36 = vpop.xlane.xlu0 %1336 }
0x11e5   :  { %v1341_v37 = vmul.f32 %v1337_v36, %v1655_v10 }
0x11e7   :  { %v1343_v38 = vsub.f32 %v1329_v17, %v1341_v37 }
0x11e9   :  { %v1345_v39 = vmul.f32 %v1343_v38, %v1343_v38 }
0x11eb   :  { %v1347_v40 = vsel %vm58_vm0, %v1345_v39, 0.0 }
0x11ec   :  { %1348 = vadd.xlane.f32.xlu1 %v1347_v40  ;;  %v1340_v41 = vpop.xlane.xlu2 %1339 }
0x11ed   :  { %v1342_v42 = vmul.f32 %v1340_v41, %v1655_v10 }
0x11ef   :  { %v1344_v43 = vsub.f32 %v1330_v34, %v1342_v42 }
0x11f1   :  { %v1346_v44 = vmul.f32 %v1344_v43, %v1344_v43 }
0x11f3   :  { %v1350_v45 = vsel %vm58_vm0, %v1346_v44, 0.0 }
0x11f4   :  { %1351 = vadd.xlane.f32.xlu0 %v1350_v45 }
0x125f   :  { %v1349_v46 = vpop.xlane.xlu1 %1348 }
0x1260   :  { %v1353_v47 = vmul.f32 %v1349_v46, %v1655_v10 }
0x1262   :  { %v1355_v48 = vadd.f32 1e-12, %v1353_v47 }
0x1264   :  { %1551 = vrsqrt.f32 %v1355_v48  ;;  %vm1363_vm1 = vweird.f32 %v1355_v48 }
0x1267   :  { %v1352_v49 = vpop.xlane.xlu0 %1351 }
0x1268   :  { %v1354_v50 = vmul.f32 %v1352_v49, %v1655_v10  ;;  %v1492_v10 = vld [vmem:[%s2022_s15 + $0x1] ss:$0 sm:$0xff] }
0x126a   :  { %v1552_v52 = vpop.eup %1551  ;;  %v1356_v55 = vadd.f32 1e-12, %v1354_v50 }
0x126b   :  { %v1358_v56 = vmul.f32 %v1552_v52, %v1355_v48  ;;  %vm1364_vm15 = vweird.f32 %v1552_v52 }
0x126c   :  { %1553 = vrsqrt.f32 %v1356_v55  ;;  %vm1365_vm2 = vmor %vm1363_vm1, %vm1364_vm15  ;;  %vm1373_vm4 = vweird.f32 %v1356_v55 }
0x126d   :  { %v1359_v57 = vmul.f32 %v1552_v52, %v1358_v56 }
0x126f   :  { %v1360_v58 = vmul.f32 0.5, %v1359_v57 }
0x1271   :  { %v1361_v60 = vsub.f32 1.5, %v1360_v58 }
0x1272   :  { %v1554_v61 = vpop.eup %1553 }
0x1273   :  { %v1362_v21 = vmul.f32 %v1552_v52, %v1361_v60  ;;  %v1368_v62 = vmul.f32 %v1554_v61, %v1356_v55  ;;  %vm1374_vm3 = vweird.f32 %v1554_v61 }
0x1274   :  { %vm1375_vm5 = vmor %vm1373_vm4, %vm1374_vm3 }
0x1275   :  { %v1366_v63 = vsel %vm1365_vm2, %v1552_v52, %v1362_v21  ;;  %v1369_v0 = vmul.f32 %v1554_v61, %v1368_v62 }
0x1276   :  { %v1377_v1 = vmul.f32 %v1366_v63, %v1343_v38 }
0x1277   :  { %v1370_v2 = vmul.f32 0.5, %v1369_v0 }
0x1278   :  { %v1382_v4 = vmul.f32 %v1491_v51, %v1377_v1 }
0x1279   :  { %v1371_v53 = vsub.f32 1.5, %v1370_v2 }
0x127a   :  { %v1387_v27 = vadd.f32 %v1492_v10, %v1382_v4 }
0x127b   :  { %v1372_v5 = vmul.f32 %v1554_v61, %v1371_v53 }
0x127c   :  { %1389 = vst.msk [vmem:[%s2023_s16] sm:$0xff] %vm58_vm0, %v1387_v27 }
0x127d   :  { %v1376_v6 = vsel %vm1375_vm5, %v1554_v61, %v1372_v5 }
0x127e   :  { %v1378_v7 = vmul.f32 %v1376_v6, %v1344_v43 }
0x1280   :  { %v1383_v59 = vmul.f32 %v1491_v51, %v1378_v7 }
0x1282   :  { %v1388_v9 = vadd.f32 %v1492_v10, %v1383_v59 }
0x1284   :  { %1390 = vst.msk [vmem:[%s2023_s16 + $0x8] sm:$0xff] %vm58_vm0, %v1388_v9 }

</bundles_post_ra>
